<compile_context>
chip_gen: v7x
topology: tpu7x:2x2x1
jax: 0.10.0
libtpu: 0.0.40
codegen_flags: <defaults>
</compile_context>

<pallas_src>
import math

import jax
import jax.numpy as jnp
from jax.experimental import pallas as pl
from jax.experimental.pallas import tpu as pltpu


# ---------------------------------------------------------------------------
# Small helpers
# ---------------------------------------------------------------------------
def _tile(n, preferred):
    """First preferred tile that divides n, else the full extent."""
    for t in preferred:
        if n % t == 0:
            return t
    return n


def _row_tile(S, d_in, *, itembytes=4, budget=8 * 1024 * 1024):
    """Row tile for the projection kernels: as large as possible (mem-bound
    kernels reach ~85% of HBM roofline at 512 rows) but capped so the
    (tr, d_in) input block stays within a fixed VMEM budget."""
    prefs = tuple(t for t in (512, 256, 128) if t * d_in * itembytes <= budget)
    return _tile(S, prefs + (128,))


def _vmem_limit_bytes():
    """Per-generation VMEM cap.  v7x: 64 MiB physical per TC -> leave headroom.
    v4/v5e/v6e: 128 MiB physical -> raise well above the 16/32 MiB default so
    the memory-bound projection kernels can use big tiles."""
    try:
        kind = jax.devices()[0].device_kind.lower()
    except Exception:
        return None
    if "v7" in kind:
        return 52 * 1024 * 1024
    if any(v in kind for v in ("v6", "v5", "v4")):
        return 100 * 1024 * 1024
    return None


def _compiler_params(dimension_semantics, vmem_limit):
    kwargs = dict(dimension_semantics=dimension_semantics)
    if vmem_limit is not None:
        kwargs["vmem_limit_bytes"] = vmem_limit
    return pltpu.CompilerParams(**kwargs)


# ---------------------------------------------------------------------------
# Kernel 1: generic N-tiled linear  y = x @ W + b   (used for QKV and out proj)
# grid = (batch, row-tile, out-feature-tile); the weight block is only
# (d_in, tn) so VMEM never holds a full d_model x d_model matrix.
# ---------------------------------------------------------------------------
def _linear_kernel(compute_dtype):
    def kernel(x_ref, w_ref, b_ref, o_ref):
        x = x_ref[...].astype(compute_dtype)
        y = jnp.dot(x, w_ref[...], preferred_element_type=jnp.float32) + b_ref[...]
        o_ref[...] = y.astype(o_ref.dtype)
    return kernel


def _linear(x, w_t, bias, *, out_dtype, compute_dtype, vmem_limit):
    B, S, d_in = x.shape
    d_out = w_t.shape[1]
    tr = _row_tile(S, d_in)
    tn = _tile(d_out, (512, 256, 128))

    x_spec = pl.BlockSpec((None, tr, d_in), lambda b, r, n: (b, r, 0))   # resident over n
    w_spec = pl.BlockSpec((d_in, tn), lambda b, r, n: (0, n))
    b_spec = pl.BlockSpec((1, tn), lambda b, r, n: (0, n))
    o_spec = pl.BlockSpec((None, tr, tn), lambda b, r, n: (b, r, n))

    return pl.pallas_call(
        _linear_kernel(compute_dtype),
        out_shape=jax.ShapeDtypeStruct((B, S, d_out), out_dtype),
        grid_spec=pltpu.PrefetchScalarGridSpec(
            num_scalar_prefetch=0,
            grid=(B, S // tr, d_out // tn),       # n innermost: x block fetched once
            in_specs=[x_spec, w_spec, b_spec],
            out_specs=o_spec),
        compiler_params=_compiler_params(("parallel", "parallel", "parallel"),
                                         vmem_limit),
    )(x, w_t, bias)


# ---------------------------------------------------------------------------
# Kernel 2: flash attention (online softmax), grid = (batch, head, q-tile, kv-tile)
# kv is the innermost 'arbitrary' reduction; m/l/acc live in f32 VMEM scratch.
# The same body serves both the lane-aligned (d_head % 128 == 0) path, where
# q/k/v blocks are indexed straight out of the [B, S, d_model] projections,
# and the head-major (d_head < 128) path.
# ---------------------------------------------------------------------------
def _flash_attn_kernel(q_ref, k_ref, v_ref, o_ref, m_sc, l_sc, acc_sc):
    ki = pl.program_id(3)

    @pl.when(ki == 0)
    def _init():
        m_sc[...] = jnp.full(m_sc.shape, -jnp.inf, dtype=m_sc.dtype)
        l_sc[...] = jnp.zeros(l_sc.shape, dtype=l_sc.dtype)
        acc_sc[...] = jnp.zeros(acc_sc.shape, dtype=acc_sc.dtype)

    q = q_ref[...]                      # (Tq, d_head); 1/sqrt(d_head) already folded in
    k = k_ref[...]                      # (Tk, d_head)
    v = v_ref[...]                      # (Tk, d_head)

    # scores[a, b] = <q[a], k[b]>  — contract feature dims on the MXU, f32 acc.
    s = jax.lax.dot_general(q, k, (((1,), (1,)), ((), ())),
                            preferred_element_type=jnp.float32)

    # Online softmax update, all in f32 (v5e has no bf16 VPU/EUP).
    m_prev = m_sc[...]
    m_new = jnp.maximum(m_prev, jnp.max(s, axis=-1, keepdims=True))
    alpha = jnp.exp(m_prev - m_new)
    p = jnp.exp(s - m_new)
    l_sc[...] = alpha * l_sc[...] + jnp.sum(p, axis=-1, keepdims=True)
    acc_sc[...] = alpha * acc_sc[...] + jnp.dot(
        p.astype(v.dtype), v, preferred_element_type=jnp.float32)
    m_sc[...] = m_new

    @pl.when(ki == pl.num_programs(3) - 1)
    def _finalize():
        inv_l = pl.reciprocal(l_sc[...], approx=True)   # EUP slot, off the VALU path
        o_ref[...] = (acc_sc[...] * inv_l).astype(o_ref.dtype)


def _head_spec(t, d_head, head_off, kv):
    """Block over [B, S, D] picking head-block `h + head_off` on the last dim."""
    if kv:
        return pl.BlockSpec((None, t, d_head),
                            lambda b, h, qi, ki: (b, ki, h + head_off))
    return pl.BlockSpec((None, t, d_head),
                        lambda b, h, qi, ki: (b, qi, h + head_off))


def _flash_attention_packed(q_arr, k_arr, v_arr, *, n_heads, d_head,
                            q_off, k_off, v_off, compute_dtype, vmem_limit):
    """d_head % 128 == 0: heads indexed directly on the [B, S, *] layout."""
    B, S, _ = q_arr.shape
    d_model = n_heads * d_head
    tq = _tile(S, (128,))
    tk = _tile(S, (256, 128))           # 256 fills the 256-deep MXU on v6e/v7x

    o_spec = pl.BlockSpec((None, tq, d_head), lambda b, h, qi, ki: (b, qi, h))

    return pl.pallas_call(
        _flash_attn_kernel,
        out_shape=jax.ShapeDtypeStruct((B, S, d_model), compute_dtype),
        grid_spec=pltpu.PrefetchScalarGridSpec(
            num_scalar_prefetch=0,
            grid=(B, n_heads, S // tq, S // tk),
            in_specs=[_head_spec(tq, d_head, q_off, kv=False),
                      _head_spec(tk, d_head, k_off, kv=True),
                      _head_spec(tk, d_head, v_off, kv=True)],
            out_specs=o_spec,
            scratch_shapes=[pltpu.VMEM((tq, 1), jnp.float32),        # running max m
                            pltpu.VMEM((tq, 1), jnp.float32),        # running sum l
                            pltpu.VMEM((tq, d_head), jnp.float32)],  # un-normalized acc
        ),
        compiler_params=_compiler_params(
            ("parallel", "parallel", "parallel", "arbitrary"), vmem_limit),
    )(q_arr, k_arr, v_arr)


def _flash_attention_headmajor(qh, kh, vh, *, compute_dtype, vmem_limit):
    """d_head < 128 path: head-major [B, H, S, dh] blocks."""
    B, H, S, dh = qh.shape
    tq = _tile(S, (128,))
    tk = _tile(S, (256, 128))

    q_spec = pl.BlockSpec((None, None, tq, dh), lambda b, h, qi, ki: (b, h, qi, 0))
    kv_spec = pl.BlockSpec((None, None, tk, dh), lambda b, h, qi, ki: (b, h, ki, 0))
    o_spec = pl.BlockSpec((None, None, tq, dh), lambda b, h, qi, ki: (b, h, qi, 0))

    return pl.pallas_call(
        _flash_attn_kernel,
        out_shape=jax.ShapeDtypeStruct((B, H, S, dh), compute_dtype),
        grid_spec=pltpu.PrefetchScalarGridSpec(
            num_scalar_prefetch=0,
            grid=(B, H, S // tq, S // tk),
            in_specs=[q_spec, kv_spec, kv_spec],
            out_specs=o_spec,
            scratch_shapes=[pltpu.VMEM((tq, 1), jnp.float32),
                            pltpu.VMEM((tq, 1), jnp.float32),
                            pltpu.VMEM((tq, dh), jnp.float32)]),
        compiler_params=_compiler_params(
            ("parallel", "parallel", "parallel", "arbitrary"), vmem_limit),
    )(qh, kh, vh)


# ---------------------------------------------------------------------------
# Kernel 3 (d_head < 128 only): output projection that consumes head-major y
# directly, reducing over heads — out = sum_h y_h @ Wo_t[h*dh:(h+1)*dh, :] + bo.
# Avoids the transpose-back HBM round trip.
# ---------------------------------------------------------------------------
def _out_proj_headmajor_kernel(compute_dtype):
    def kernel(y_ref, w_ref, b_ref, o_ref, acc_ref):
        h = pl.program_id(3)

        @pl.when(h == 0)
        def _init():
            acc_ref[...] = jnp.zeros(acc_ref.shape, dtype=acc_ref.dtype)

        y = y_ref[...].astype(compute_dtype)          # (tr, dh)
        acc_ref[...] += jnp.dot(y, w_ref[...], preferred_element_type=jnp.float32)

        @pl.when(h == pl.num_programs(3) - 1)
        def _finalize():
            o_ref[...] = (acc_ref[...] + b_ref[...]).astype(o_ref.dtype)
    return kernel


def _out_proj_headmajor(yh, wo_t, bo, *, out_dtype, compute_dtype, vmem_limit):
    B, H, S, dh = yh.shape
    d_model = wo_t.shape[1]
    tr = _tile(S, (512, 256, 128))
    tn = _tile(d_model, (512, 256, 128))

    y_spec = pl.BlockSpec((None, None, tr, dh), lambda b, r, n, h: (b, h, r, 0))
    w_spec = pl.BlockSpec((dh, tn), lambda b, r, n, h: (h, n))
    b_spec = pl.BlockSpec((1, tn), lambda b, r, n, h: (0, n))
    o_spec = pl.BlockSpec((None, tr, tn), lambda b, r, n, h: (b, r, n))

    return pl.pallas_call(
        _out_proj_headmajor_kernel(compute_dtype),
        out_shape=jax.ShapeDtypeStruct((B, S, d_model), out_dtype),
        grid_spec=pltpu.PrefetchScalarGridSpec(
            num_scalar_prefetch=0,
            grid=(B, S // tr, d_model // tn, H),      # head reduction innermost
            in_specs=[y_spec, w_spec, b_spec],
            out_specs=o_spec,
            scratch_shapes=[pltpu.VMEM((tr, tn), jnp.float32)]),
        compiler_params=_compiler_params(
            ("parallel", "parallel", "parallel", "arbitrary"), vmem_limit),
    )(yh, wo_t, bo)


# ---------------------------------------------------------------------------
# Wrapper
# ---------------------------------------------------------------------------
def multihead_attention(q, k, v, params, n_heads, *,
                        compute_dtype=jnp.float32, self_attention=None):
    """q, k, v: [B, S, d_model].  params: PyTorch-layout (out, in) weights + biases.

    compute_dtype is the MXU operand dtype (use jnp.bfloat16 on v6e/v7x); all
    accumulation, softmax and bias math stays in float32.  Pass
    self_attention=True when q/k/v are the same tensor under jit (identity
    detection only works outside tracing)."""
    B, S, d_model = q.shape
    assert k.shape == (B, S, d_model) and v.shape == (B, S, d_model)
    assert d_model % n_heads == 0
    d_head = d_model // n_heads
    assert d_head % 8 == 0, "head dim must be a multiple of 8 for TPU tiling"
    scale = 1.0 / math.sqrt(d_head)
    out_dtype = q.dtype
    vmem_limit = _vmem_limit_bytes()
    if self_attention is None:
        self_attention = (q is k) and (k is v)

    # nn.Linear keeps W as [out, in]; kernels compute x @ W^T + b.
    # The 1/sqrt(d_head) scale is folded into the Q weights/bias (done once on a
    # d_model x d_model tensor; in a real model it would be folded offline), so
    # no [Tq, Tk] score tile ever sees an extra VPU multiply.
    wq_t = (params["wq"].T * scale).astype(compute_dtype)
    wk_t = params["wk"].T.astype(compute_dtype)
    wv_t = params["wv"].T.astype(compute_dtype)
    wo_t = params["wo"].T.astype(compute_dtype)
    bq = (params["bq"] * scale).reshape(1, d_model).astype(jnp.float32)
    bk = params["bk"].reshape(1, d_model).astype(jnp.float32)
    bv = params["bv"].reshape(1, d_model).astype(jnp.float32)
    bo = params["bo"].reshape(1, d_model).astype(jnp.float32)

    # ---- 1) input projections -------------------------------------------------
    if self_attention:
        # One fused [d_model, 3*d_model] RHS: x read once, one wide MXU matmul
        # per (row, n) tile instead of three narrow ones.
        w_qkv = jnp.concatenate([wq_t, wk_t, wv_t], axis=1)
        b_qkv = jnp.concatenate([bq, bk, bv], axis=1)
        qkv = _linear(q, w_qkv, b_qkv, out_dtype=compute_dtype,
                      compute_dtype=compute_dtype, vmem_limit=vmem_limit)
        qp = kp = vp = None
    else:
        qkv = None
        qp = _linear(q, wq_t, bq, out_dtype=compute_dtype,
                     compute_dtype=compute_dtype, vmem_limit=vmem_limit)
        kp = _linear(k, wk_t, bk, out_dtype=compute_dtype,
                     compute_dtype=compute_dtype, vmem_limit=vmem_limit)
        vp = _linear(v, wv_t, bv, out_dtype=compute_dtype,
                     compute_dtype=compute_dtype, vmem_limit=vmem_limit)

    # ---- 2) attention + 3) output projection -----------------------------------
    if d_head % 128 == 0:
        # Heads are lane-aligned 128-wide feature blocks of the projected
        # [B, S, (3*)d_model] tensors: index them directly — no head relayout,
        # no transposes, lane-dense loads and stores throughout.
        if self_attention:
            y = _flash_attention_packed(
                qkv, qkv, qkv, n_heads=n_heads, d_head=d_head,
                q_off=0, k_off=n_heads, v_off=2 * n_heads,
                compute_dtype=compute_dtype, vmem_limit=vmem_limit)
        else:
            y = _flash_attention_packed(
                qp, kp, vp, n_heads=n_heads, d_head=d_head,
                q_off=0, k_off=0, v_off=0,
                compute_dtype=compute_dtype, vmem_limit=vmem_limit)
        out = _linear(y, wo_t, bo, out_dtype=out_dtype,
                      compute_dtype=compute_dtype, vmem_limit=vmem_limit)
    else:
        # d_head < 128: one head-major relayout for q/k/v (wrapper-side layout
        # plumbing), per-head flash attention, then the output projection
        # consumes head-major y with a head-reduction axis (no transpose back).
        if self_attention:
            qkvh = qkv.reshape(B, S, 3, n_heads, d_head).transpose(2, 0, 3, 1, 4)
            qh, kh, vh = qkvh[0], qkvh[1], qkvh[2]
        else:
            def to_heads(x):
                return x.reshape(B, S, n_heads, d_head).transpose(0, 2, 1, 3)
            qh, kh, vh = to_heads(qp), to_heads(kp), to_heads(vp)
        yh = _flash_attention_headmajor(qh, kh, vh, compute_dtype=compute_dtype,
                                        vmem_limit=vmem_limit)
        out = _out_proj_headmajor(yh, wo_t, bo, out_dtype=out_dtype,
                                  compute_dtype=compute_dtype, vmem_limit=vmem_limit)
    return out


# ---------------------------------------------------------------------------
# Pure-JAX reference mirroring the PyTorch module's forward (mask=None).
# ---------------------------------------------------------------------------
def _reference(q, k, v, params, n_heads):
    B, S, d_model = q.shape
    d_head = d_model // n_heads

    def lin(x, w, b):
        return x @ w.T + b

    qp = lin(q, params["wq"], params["bq"]).reshape(B, S, n_heads, d_head)
    kp = lin(k, params["wk"], params["bk"]).reshape(B, S, n_heads, d_head)
    vp = lin(v, params["wv"], params["bv"]).reshape(B, S, n_heads, d_head)

    s = jnp.einsum("bqhd,bkhd->bhqk", qp, kp) / math.sqrt(d_head)
    p = jax.nn.softmax(s, axis=-1)
    y = jnp.einsum("bhqk,bkhd->bqhd", p, vp).reshape(B, S, d_model)
    return lin(y, params["wo"], params["bo"])


def _make_params(key, d_model):
    keys = jax.random.split(key, 8)
    s = 1.0 / math.sqrt(d_model)

    def u(kk, shape):
        return jax.random.uniform(kk, shape, jnp.float32, -s, s)

    return {
        "wq": u(keys[0], (d_model, d_model)), "bq": u(keys[1], (d_model,)),
        "wk": u(keys[2], (d_model, d_model)), "bk": u(keys[3], (d_model,)),
        "wv": u(keys[4], (d_model, d_model)), "bv": u(keys[5], (d_model,)),
        "wo": u(keys[6], (d_model, d_model)), "bo": u(keys[7], (d_model,)),
    }


if __name__ == "__main__":
    root = jax.random.PRNGKey(0)
    kpa, kxa, kqa, kka, kpb, kxb = jax.random.split(root, 6)

    mha = jax.jit(multihead_attention,
                  static_argnames=("n_heads", "compute_dtype", "self_attention"))

    # --- Config A: d_head = 128 (lane-aligned heads, zero-relayout path) --------
    B, S, D, H = 2, 512, 256, 2
    params_a = _make_params(kpa, D)
    x = jax.random.normal(kxa, (B, S, D), jnp.float32)

    ref_self = _reference(x, x, x, params_a, H)
    out_self = jax.block_until_ready(
        mha(x, x, x, params_a, n_heads=H, self_attention=True))
    assert out_self.shape == (B, S, D)
    # Tolerance covers XLA default-precision f32 matmuls on TPU (bf16 passes).
    assert jnp.allclose(out_self, ref_self, atol=2e-2, rtol=2e-2), \
        "case A self-attention mismatch vs reference"

    qa = jax.random.normal(kqa, (B, S, D), jnp.float32)
    ka = jax.random.normal(kka, (B, S, D), jnp.float32)
    ref_cross = _reference(qa, ka, x, params_a, H)
    out_cross = jax.block_until_ready(
        mha(qa, ka, x, params_a, n_heads=H, self_attention=False))
    assert jnp.allclose(out_cross, ref_cross, atol=2e-2, rtol=2e-2), \
        "case A cross-attention mismatch vs reference"

    # bf16 MXU operands (v6e/v7x path), f32 accumulation — loose check.
    out_bf16 = jax.block_until_ready(
        mha(x, x, x, params_a, n_heads=H, compute_dtype=jnp.bfloat16,
            self_attention=True))
    assert jnp.allclose(out_bf16, ref_self, atol=1e-1, rtol=1e-1), \
        "case A bf16 mismatch vs reference"

    # --- Config B: d_head = 32 (< 128), head-major path --------------------------
    B2, S2, D2, H2 = 2, 384, 128, 4
    params_b = _make_params(kpb, D2)
    xb = jax.random.normal(kxb, (B2, S2, D2), jnp.float32)
    ref_b = _reference(xb, xb, xb, params_b, H2)
    out_b = jax.block_until_ready(
        mha(xb, xb, xb, params_b, n_heads=H2, self_attention=True))
    assert out_b.shape == (B2, S2, D2)
    assert jnp.allclose(out_b, ref_b, atol=2e-2, rtol=2e-2), \
        "case B (d_head < 128) mismatch vs reference"

    print("KERNEL_OK")
</pallas_src>

<mosaic_0001>
module attributes {stable_mosaic.version = 11 : i64} {
  func.func @kernel(%arg0: i32, %arg1: i32, %arg2: i32, %arg3: memref<1x512x256xf32, #tpu.memory_space<vmem>>, %arg4: memref<256x256xf32, #tpu.memory_space<vmem>>, %arg5: memref<1x256xf32, #tpu.memory_space<vmem>>, %arg6: memref<1x512x256xf32, #tpu.memory_space<vmem>>) attributes {dimension_semantics = [#tpu.dimension_semantics<parallel>, #tpu.dimension_semantics<parallel>, #tpu.dimension_semantics<parallel>], iteration_bounds = array<i64: 2, 1, 3>, scalar_prefetch = 0 : i64, scratch_operands = 0 : i64, tpu.core_type = #tpu.core_type<tc>, window_params = [{transform_indices = @transform_0, window_bounds = array<i64: 1, 512, 256>}, {transform_indices = @transform_1, window_bounds = array<i64: 256, 256>}, {transform_indices = @transform_2, window_bounds = array<i64: 1, 256>}, {transform_indices = @transform_3, window_bounds = array<i64: 1, 512, 256>}]} {
    %c0 = arith.constant 0 : index
    %c0_0 = arith.constant 0 : index
    %c0_1 = arith.constant 0 : index
    %0 = vector.load %arg3[%c0, %c0_0, %c0_1] : memref<1x512x256xf32, #tpu.memory_space<vmem>>, vector<1x512x256xf32>
    %1 = vector.shape_cast %0 : vector<1x512x256xf32> to vector<512x256xf32>
    %c0_2 = arith.constant 0 : index
    %c0_3 = arith.constant 0 : index
    %2 = vector.load %arg4[%c0_2, %c0_3] : memref<256x256xf32, #tpu.memory_space<vmem>>, vector<256x256xf32>
    %cst = arith.constant dense<0.000000e+00> : vector<512x256xf32>
    %3 = tpu.matmul %1, %2, %cst {dimension_numbers = #tpu.dot_dimension_numbers<[1], [0], [0], [1], [0, 0, 1, 1], [], []>} : vector<512x256xf32>, vector<256x256xf32>, vector<512x256xf32> -> vector<512x256xf32>
    %c0_4 = arith.constant 0 : index
    %c0_5 = arith.constant 0 : index
    %4 = vector.load %arg5[%c0_4, %c0_5] : memref<1x256xf32, #tpu.memory_space<vmem>>, vector<1x256xf32>
    %5 = vector.broadcast %4 : vector<1x256xf32> to vector<512x256xf32>
    %6 = arith.addf %3, %5 : vector<512x256xf32>
    %c0_6 = arith.constant 0 : index
    %c0_7 = arith.constant 0 : index
    %c0_8 = arith.constant 0 : index
    %7 = vector.load %arg6[%c0_6, %c0_7, %c0_8] : memref<1x512x256xf32, #tpu.memory_space<vmem>>, vector<1x512x256xf32>
    %8 = vector.shape_cast %7 : vector<1x512x256xf32> to vector<512x256xf32>
    %9 = vector.shape_cast %6 : vector<512x256xf32> to vector<1x512x256xf32>
    tpu.vector_store %arg6[%c0_6, %c0_7, %c0_8], %9 {strides = array<i32>} : memref<1x512x256xf32, #tpu.memory_space<vmem>>, vector<1x512x256xf32>,
    return
  }
  func.func @transform_0(%arg0: i32, %arg1: i32, %arg2: i32) -> (i32, i32, i32) {
    %c0_i32 = arith.constant 0 : i32
    %c0_i32_0 = arith.constant 0 : i32
    return %arg0, %arg1, %c0_i32 : i32, i32, i32
  }
  func.func @transform_1(%arg0: i32, %arg1: i32, %arg2: i32) -> (i32, i32) {
    %c0_i32 = arith.constant 0 : i32
    %c0_i32_0 = arith.constant 0 : i32
    return %c0_i32, %arg2 : i32, i32
  }
  func.func @transform_2(%arg0: i32, %arg1: i32, %arg2: i32) -> (i32, i32) {
    %c0_i32 = arith.constant 0 : i32
    %c0_i32_0 = arith.constant 0 : i32
    return %c0_i32, %arg2 : i32, i32
  }
  func.func @transform_3(%arg0: i32, %arg1: i32, %arg2: i32) -> (i32, i32, i32) {
    %c0_i32 = arith.constant 0 : i32
    return %arg0, %arg1, %arg2 : i32, i32, i32
  }
}

module attributes {stable_mosaic.version = 11 : i64} {
  func.func @_flash_attn_kernel(%arg0: i32, %arg1: i32, %arg2: i32, %arg3: i32, %arg4: memref<1x128x128xf32, #tpu.memory_space<vmem>>, %arg5: memref<1x256x128xf32, #tpu.memory_space<vmem>>, %arg6: memref<1x256x128xf32, #tpu.memory_space<vmem>>, %arg7: memref<1x128x128xf32, #tpu.memory_space<vmem>>, %arg8: memref<128x1xf32, #tpu.memory_space<vmem>>, %arg9: memref<128x1xf32, #tpu.memory_space<vmem>>, %arg10: memref<128x128xf32, #tpu.memory_space<vmem>>) attributes {dimension_semantics = [#tpu.dimension_semantics<parallel>, #tpu.dimension_semantics<parallel>, #tpu.dimension_semantics<parallel>, #tpu.dimension_semantics<arbitrary>], iteration_bounds = array<i64: 2, 2, 4, 2>, scalar_prefetch = 0 : i64, scratch_operands = 3 : i64, tpu.core_type = #tpu.core_type<tc>, window_params = [{transform_indices = @transform_0, window_bounds = array<i64: 1, 128, 128>}, {transform_indices = @transform_1, window_bounds = array<i64: 1, 256, 128>}, {transform_indices = @transform_2, window_bounds = array<i64: 1, 256, 128>}, {transform_indices = @transform_3, window_bounds = array<i64: 1, 128, 128>}]} {
    %c0_i32 = arith.constant 0 : i32
    %0 = arith.cmpi eq, %arg3, %c0_i32 : i32
    %1 = arith.extui %0 : i1 to i32
    %c0_i32_0 = arith.constant 0 : i32
    %2 = arith.cmpi ne, %1, %c0_i32_0 : i32
    scf.if %2 {
      %cst_25 = arith.constant 0xFF800000 : f32
      %35 = vector.broadcast %cst_25 : f32 to vector<128x1xf32>
      %c0_26 = arith.constant 0 : index
      %c0_27 = arith.constant 0 : index
      %36 = vector.load %arg8[%c0_26, %c0_27] : memref<128x1xf32, #tpu.memory_space<vmem>>, vector<128x1xf32>
      tpu.vector_store %arg8[%c0_26, %c0_27], %35 {strides = array<i32>} : memref<128x1xf32, #tpu.memory_space<vmem>>, vector<128x1xf32>,
      %cst_28 = arith.constant 0.000000e+00 : f32
      %37 = vector.broadcast %cst_28 : f32 to vector<128x1xf32>
      %c0_29 = arith.constant 0 : index
      %c0_30 = arith.constant 0 : index
      %38 = vector.load %arg9[%c0_29, %c0_30] : memref<128x1xf32, #tpu.memory_space<vmem>>, vector<128x1xf32>
      tpu.vector_store %arg9[%c0_29, %c0_30], %37 {strides = array<i32>} : memref<128x1xf32, #tpu.memory_space<vmem>>, vector<128x1xf32>,
      %cst_31 = arith.constant 0.000000e+00 : f32
      %39 = vector.broadcast %cst_31 : f32 to vector<128x128xf32>
      %c0_32 = arith.constant 0 : index
      %c0_33 = arith.constant 0 : index
      %40 = vector.load %arg10[%c0_32, %c0_33] : memref<128x128xf32, #tpu.memory_space<vmem>>, vector<128x128xf32>
      tpu.vector_store %arg10[%c0_32, %c0_33], %39 {strides = array<i32>} : memref<128x128xf32, #tpu.memory_space<vmem>>, vector<128x128xf32>,
    } else {
    }
    %c0 = arith.constant 0 : index
    %c0_1 = arith.constant 0 : index
    %c0_2 = arith.constant 0 : index
    %3 = vector.load %arg4[%c0, %c0_1, %c0_2] : memref<1x128x128xf32, #tpu.memory_space<vmem>>, vector<1x128x128xf32>
    %4 = vector.shape_cast %3 : vector<1x128x128xf32> to vector<128x128xf32>
    %c0_3 = arith.constant 0 : index
    %c0_4 = arith.constant 0 : index
    %c0_5 = arith.constant 0 : index
    %5 = vector.load %arg5[%c0_3, %c0_4, %c0_5] : memref<1x256x128xf32, #tpu.memory_space<vmem>>, vector<1x256x128xf32>
    %6 = vector.shape_cast %5 : vector<1x256x128xf32> to vector<256x128xf32>
    %c0_6 = arith.constant 0 : index
    %c0_7 = arith.constant 0 : index
    %c0_8 = arith.constant 0 : index
    %7 = vector.load %arg6[%c0_6, %c0_7, %c0_8] : memref<1x256x128xf32, #tpu.memory_space<vmem>>, vector<1x256x128xf32>
    %8 = vector.shape_cast %7 : vector<1x256x128xf32> to vector<256x128xf32>
    %cst = arith.constant dense<0.000000e+00> : vector<128x256xf32>
    %9 = tpu.matmul %4, %6, %cst {dimension_numbers = #tpu.dot_dimension_numbers<[1], [1], [0], [0], [0, 0, 1, 0], [], []>} : vector<128x128xf32>, vector<256x128xf32>, vector<128x256xf32> -> vector<128x256xf32>
    %c0_9 = arith.constant 0 : index
    %c0_10 = arith.constant 0 : index
    %10 = vector.load %arg8[%c0_9, %c0_10] : memref<128x1xf32, #tpu.memory_space<vmem>>, vector<128x1xf32>
    %cst_11 = arith.constant dense<0xFF800000> : vector<128xf32>
    %11 = vector.multi_reduction <maximumf>, %9, %cst_11 [1] : vector<128x256xf32> to vector<128xf32>
    %12 = vector.shape_cast %11 : vector<128xf32> to vector<128x1xf32>
    %13 = arith.maximumf %10, %12 : vector<128x1xf32>
    %14 = arith.subf %10, %13 : vector<128x1xf32>
    %15 = math.exp %14 : vector<128x1xf32>
    %16 = vector.broadcast %13 : vector<128x1xf32> to vector<128x256xf32>
    %17 = arith.subf %9, %16 : vector<128x256xf32>
    %18 = math.exp %17 : vector<128x256xf32>
    %c0_12 = arith.constant 0 : index
    %c0_13 = arith.constant 0 : index
    %19 = vector.load %arg9[%c0_12, %c0_13] : memref<128x1xf32, #tpu.memory_space<vmem>>, vector<128x1xf32>
    %20 = arith.mulf %15, %19 : vector<128x1xf32>
    %cst_14 = arith.constant dense<0.000000e+00> : vector<128xf32>
    %21 = vector.multi_reduction <add>, %18, %cst_14 [1] : vector<128x256xf32> to vector<128xf32>
    %22 = vector.shape_cast %21 : vector<128xf32> to vector<128x1xf32>
    %23 = arith.addf %20, %22 : vector<128x1xf32>
    %c0_15 = arith.constant 0 : index
    %c0_16 = arith.constant 0 : index
    %24 = vector.load %arg9[%c0_15, %c0_16] : memref<128x1xf32, #tpu.memory_space<vmem>>, vector<128x1xf32>
    tpu.vector_store %arg9[%c0_15, %c0_16], %23 {strides = array<i32>} : memref<128x1xf32, #tpu.memory_space<vmem>>, vector<128x1xf32>,
    %c0_17 = arith.constant 0 : index
    %c0_18 = arith.constant 0 : index
    %25 = vector.load %arg10[%c0_17, %c0_18] : memref<128x128xf32, #tpu.memory_space<vmem>>, vector<128x128xf32>
    %26 = vector.broadcast %15 : vector<128x1xf32> to vector<128x128xf32>
    %27 = arith.mulf %26, %25 : vector<128x128xf32>
    %cst_19 = arith.constant dense<0.000000e+00> : vector<128x128xf32>
    %28 = tpu.matmul %18, %8, %cst_19 {dimension_numbers = #tpu.dot_dimension_numbers<[1], [0], [0], [1], [0, 0, 1, 1], [], []>} : vector<128x256xf32>, vector<256x128xf32>, vector<128x128xf32> -> vector<128x128xf32>
    %29 = arith.addf %27, %28 : vector<128x128xf32>
    %c0_20 = arith.constant 0 : index
    %c0_21 = arith.constant 0 : index
    %30 = vector.load %arg10[%c0_20, %c0_21] : memref<128x128xf32, #tpu.memory_space<vmem>>, vector<128x128xf32>
    tpu.vector_store %arg10[%c0_20, %c0_21], %29 {strides = array<i32>} : memref<128x128xf32, #tpu.memory_space<vmem>>, vector<128x128xf32>,
    %c0_22 = arith.constant 0 : index
    %c0_23 = arith.constant 0 : index
    %31 = vector.load %arg8[%c0_22, %c0_23] : memref<128x1xf32, #tpu.memory_space<vmem>>, vector<128x1xf32>
    tpu.vector_store %arg8[%c0_22, %c0_23], %13 {strides = array<i32>} : memref<128x1xf32, #tpu.memory_space<vmem>>, vector<128x1xf32>,
    %c1_i32 = arith.constant 1 : i32
    %32 = arith.cmpi eq, %arg3, %c1_i32 : i32
    %33 = arith.extui %32 : i1 to i32
    %c0_i32_24 = arith.constant 0 : i32
    %34 = arith.cmpi ne, %33, %c0_i32_24 : i32
    scf.if %34 {
      %c0_25 = arith.constant 0 : index
      %c0_26 = arith.constant 0 : index
      %35 = vector.load %arg9[%c0_25, %c0_26] : memref<128x1xf32, #tpu.memory_space<vmem>>, vector<128x1xf32>
      %36 = tpu.reciprocal %35 {approx = true} : vector<128x1xf32> -> vector<128x1xf32>
      %c0_27 = arith.constant 0 : index
      %c0_28 = arith.constant 0 : index
      %37 = vector.load %arg10[%c0_27, %c0_28] : memref<128x128xf32, #tpu.memory_space<vmem>>, vector<128x128xf32>
      %38 = vector.broadcast %36 : vector<128x1xf32> to vector<128x128xf32>
      %39 = arith.mulf %37, %38 : vector<128x128xf32>
      %c0_29 = arith.constant 0 : index
      %c0_30 = arith.constant 0 : index
      %c0_31 = arith.constant 0 : index
      %40 = vector.load %arg7[%c0_29, %c0_30, %c0_31] : memref<1x128x128xf32, #tpu.memory_space<vmem>>, vector<1x128x128xf32>
      %41 = vector.shape_cast %40 : vector<1x128x128xf32> to vector<128x128xf32>
      %42 = vector.shape_cast %39 : vector<128x128xf32> to vector<1x128x128xf32>
      tpu.vector_store %arg7[%c0_29, %c0_30, %c0_31], %42 {strides = array<i32>} : memref<1x128x128xf32, #tpu.memory_space<vmem>>, vector<1x128x128xf32>,
    } else {
    }
    return
  }
  func.func @transform_0(%arg0: i32, %arg1: i32, %arg2: i32, %arg3: i32) -> (i32, i32, i32) {
    %c0_i32 = arith.constant 0 : i32
    %0 = arith.addi %arg1, %c0_i32 : i32
    %c0_i32_0 = arith.constant 0 : i32
    return %arg0, %arg2, %0 : i32, i32, i32
  }
  func.func @transform_1(%arg0: i32, %arg1: i32, %arg2: i32, %arg3: i32) -> (i32, i32, i32) {
    %c2_i32 = arith.constant 2 : i32
    %0 = arith.addi %arg1, %c2_i32 : i32
    %c0_i32 = arith.constant 0 : i32
    return %arg0, %arg3, %0 : i32, i32, i32
  }
  func.func @transform_2(%arg0: i32, %arg1: i32, %arg2: i32, %arg3: i32) -> (i32, i32, i32) {
    %c4_i32 = arith.constant 4 : i32
    %0 = arith.addi %arg1, %c4_i32 : i32
    %c0_i32 = arith.constant 0 : i32
    return %arg0, %arg3, %0 : i32, i32, i32
  }
  func.func @transform_3(%arg0: i32, %arg1: i32, %arg2: i32, %arg3: i32) -> (i32, i32, i32) {
    %c0_i32 = arith.constant 0 : i32
    return %arg0, %arg2, %arg1 : i32, i32, i32
  }
}

module attributes {stable_mosaic.version = 11 : i64} {
  func.func @kernel(%arg0: i32, %arg1: i32, %arg2: i32, %arg3: memref<1x512x256xf32, #tpu.memory_space<vmem>>, %arg4: memref<256x256xf32, #tpu.memory_space<vmem>>, %arg5: memref<1x256xf32, #tpu.memory_space<vmem>>, %arg6: memref<1x512x256xf32, #tpu.memory_space<vmem>>) attributes {dimension_semantics = [#tpu.dimension_semantics<parallel>, #tpu.dimension_semantics<parallel>, #tpu.dimension_semantics<parallel>], iteration_bounds = array<i64: 2, 1, 1>, scalar_prefetch = 0 : i64, scratch_operands = 0 : i64, tpu.core_type = #tpu.core_type<tc>, window_params = [{transform_indices = @transform_0, window_bounds = array<i64: 1, 512, 256>}, {transform_indices = @transform_1, window_bounds = array<i64: 256, 256>}, {transform_indices = @transform_2, window_bounds = array<i64: 1, 256>}, {transform_indices = @transform_3, window_bounds = array<i64: 1, 512, 256>}]} {
    %c0 = arith.constant 0 : index
    %c0_0 = arith.constant 0 : index
    %c0_1 = arith.constant 0 : index
    %0 = vector.load %arg3[%c0, %c0_0, %c0_1] : memref<1x512x256xf32, #tpu.memory_space<vmem>>, vector<1x512x256xf32>
    %1 = vector.shape_cast %0 : vector<1x512x256xf32> to vector<512x256xf32>
    %c0_2 = arith.constant 0 : index
    %c0_3 = arith.constant 0 : index
    %2 = vector.load %arg4[%c0_2, %c0_3] : memref<256x256xf32, #tpu.memory_space<vmem>>, vector<256x256xf32>
    %cst = arith.constant dense<0.000000e+00> : vector<512x256xf32>
    %3 = tpu.matmul %1, %2, %cst {dimension_numbers = #tpu.dot_dimension_numbers<[1], [0], [0], [1], [0, 0, 1, 1], [], []>} : vector<512x256xf32>, vector<256x256xf32>, vector<512x256xf32> -> vector<512x256xf32>
    %c0_4 = arith.constant 0 : index
    %c0_5 = arith.constant 0 : index
    %4 = vector.load %arg5[%c0_4, %c0_5] : memref<1x256xf32, #tpu.memory_space<vmem>>, vector<1x256xf32>
    %5 = vector.broadcast %4 : vector<1x256xf32> to vector<512x256xf32>
    %6 = arith.addf %3, %5 : vector<512x256xf32>
    %c0_6 = arith.constant 0 : index
    %c0_7 = arith.constant 0 : index
    %c0_8 = arith.constant 0 : index
    %7 = vector.load %arg6[%c0_6, %c0_7, %c0_8] : memref<1x512x256xf32, #tpu.memory_space<vmem>>, vector<1x512x256xf32>
    %8 = vector.shape_cast %7 : vector<1x512x256xf32> to vector<512x256xf32>
    %9 = vector.shape_cast %6 : vector<512x256xf32> to vector<1x512x256xf32>
    tpu.vector_store %arg6[%c0_6, %c0_7, %c0_8], %9 {strides = array<i32>} : memref<1x512x256xf32, #tpu.memory_space<vmem>>, vector<1x512x256xf32>,
    return
  }
  func.func @transform_0(%arg0: i32, %arg1: i32, %arg2: i32) -> (i32, i32, i32) {
    %c0_i32 = arith.constant 0 : i32
    %c0_i32_0 = arith.constant 0 : i32
    return %arg0, %arg1, %c0_i32 : i32, i32, i32
  }
  func.func @transform_1(%arg0: i32, %arg1: i32, %arg2: i32) -> (i32, i32) {
    %c0_i32 = arith.constant 0 : i32
    %c0_i32_0 = arith.constant 0 : i32
    return %c0_i32, %arg2 : i32, i32
  }
  func.func @transform_2(%arg0: i32, %arg1: i32, %arg2: i32) -> (i32, i32) {
    %c0_i32 = arith.constant 0 : i32
    %c0_i32_0 = arith.constant 0 : i32
    return %c0_i32, %arg2 : i32, i32
  }
  func.func @transform_3(%arg0: i32, %arg1: i32, %arg2: i32) -> (i32, i32, i32) {
    %c0_i32 = arith.constant 0 : i32
    return %arg0, %arg1, %arg2 : i32, i32, i32
  }
}

</mosaic_0001>

<bundles_post_ra>
// kernel: multihead_attention.4
= control target key start
LH: loop header
LB: loop body
LE: loop exit
PB: predicated region body
PF: predicated region fallthrough
CT: control target
= control target key end

     0   :  { %s3765_s0 = inlined_call_operand.vmem [shape: f32[2,512,768], index: 0, kind: input, shape index: {}, may-alias: {0,1,2}]   ;;  %s3766_s1 = inlined_call_operand.vmem [shape: f32[2,512,768], index: 1, kind: input, shape index: {}, may-alias: {0,1,2}]   ;;  %s3767_s2 = inlined_call_operand.vmem [shape: f32[2,512,768], index: 2, kind: input, shape index: {}, may-alias: {0,1,2}]   ;;  %s3768_s3 = inlined_call_operand.vmem [shape: f32[2,512,256], index: 3, kind: output, shape index: {}]  }
   0x1   :  { %3774 = sst [smem:[#allocation18_spill]] %s3766_s1 }
   0x2   :  { %3775 = sst [smem:[#allocation19_spill]] %s3767_s2 }
   0x3   :  { %3776 = sst [smem:[#allocation20_spill]] %s3768_s3 }
   0x4   :  { %s2805_s12 = smov 0   ;;  %s2807_s13 = smov 0  }
   0x5   :  { %s2809_s14 = smov 0   ;;  %s2811_s15 = smov 0  }
   0x6   :  { %s2813_s16 = smov 0   ;;  %s2815_s17 = smov 0  }
   0x7   :  { %s2817_s18 = smov 0   ;;  %s2819_s19 = smov 0  }
   0x8   :  { %s2821_s20 = smov 0   ;;  %s2823_s21 = smov 0  }
   0x9   :  { %s2825_s22 = smov 0   ;;  %s2827_s23 = smov 0  }
   0xa   :  { %s2829_s24 = smov 0   ;;  %s2831_s25 = smov 0  }
   0xb   :  { %s2833_s26 = smov 0  }
   0xc LB: > { %3777 = sst [smem:[#allocation9_spill]] %s2731_s14  ;;  %s28_s28 = sadd.s32 1, %s2763_s22  ;;  %s2779_s26 = sphi %s2833_s26, %s13_s26   ;;  %s2775_s25 = sphi %s2831_s25, %s3820_s25   ;;  %s2771_s24 = sphi %s2829_s24, %s3819_s24   ;;  %s2767_s23 = sphi %s2827_s23, %s3818_s23   ;;  %s2763_s22 = sphi %s2825_s22, %s3817_s22   ;;  %s2759_s21 = sphi %s2823_s21, %s3816_s21   ;;  %s2755_s20 = sphi %s2821_s20, %s3815_s20   ;;  %s2751_s19 = sphi %s2819_s19, %s3814_s19   ;;  %s2747_s18 = sphi %s2817_s18, %s3813_s18   ;;  %s2743_s17 = sphi %s2815_s17, %s3812_s17   ;;  %s2739_s16 = sphi %s2813_s16, %s3811_s16   ;;  %s2735_s15 = sphi %s2811_s15, %s3810_s15   ;;  %s2731_s14 = sphi %s2809_s14, %s3809_s14   ;;  %s2727_s13 = sphi %s2807_s13, %s3808_s13   ;;  %s2723_s12 = sphi %s2805_s12, %s3807_s12  }
   0xd   : > { %3778 = sst [smem:[#allocation10_spill]] %s2747_s18  ;;  %p29_p0 = scmp.ge.s32.totalorder %s28_s28, 2 }
   0xe   : > { %3779 = sst [smem:[#allocation11_spill]] %s2751_s19  ;;  %s31_s29 = sadd.s32 1, %s2767_s23 }
   0xf   : > { %3780 = sst [smem:[#allocation12_spill]] %s2755_s20  ;;  %s35_s30 = sadd.s32 1, %s2771_s24 }
  0x10   : > { %3781 = sst [smem:[#allocation13_spill]] %s2759_s21  ;;  %s39_s4 = sadd.s32 1, %s2775_s25 }
  0x11   : > { %s3822_s28 = smov (%p29_p0, %s28_s28), 0  ;;  %s3824_s29 = smov (!%p29_p0, %s31_s29), %s2767_s23 }
  0x12   : > { %3782 = sst [smem:[#allocation14_spill]] %s3822_s28  ;;  %p57_p1 = scmp.ne.s32.totalorder %s2743_s17, %s2739_s16 }
  0x13   : > { %p33_p2 = scmp.ge.s32.totalorder %s3824_s29, 4  ;;  %p58_p3 = scmp.eq.s32.totalorder %s2779_s26, 0 }
  0x14   : > { %s73_s6 = sadd.s32 2, %s2771_s24  ;;  %s76_s7 = ssub.s32 %s2763_s22, %s3822_s28 }
  0x15   : > { %s3826_s29 = smov (%p33_p2, %s3824_s29), 0  ;;  %s3828_s30 = smov (!%p33_p2, %s35_s30), %s2771_s24 }
  0x16   : > { %3783 = sst [smem:[#allocation15_spill]] %s3826_s29  ;;  %s44_s8 = ssub.s32 %s2767_s23, %s3826_s29 }
  0x17   : > { %p2905_p4 = por %p58_p3, %p57_p1  ;;  %p37_p5 = scmp.ge.s32.totalorder %s3828_s30, 2 }
  0x18   : > { %s82_s10 = sadd.s32 1, %s2735_s15  ;;  %p89_p6 = scmp.ne.s32.totalorder %s2735_s15, %s2731_s14 }
  0x19   : > { %s105_s11 = sadd.s32 4, %s2771_s24  ;;  %s3830_s30 = smov (%p37_p5, %s3828_s30), 0 }
  0x1a   : > { %3785 = sst [smem:[#allocation16_spill]] %s3830_s30  ;;  %s3832_s4 = smov (!%p37_p5, %s39_s4), %s2775_s25 }
  0x1b   : > { %s46_s27 = ssub.s32 %s2771_s24, %s3830_s30  ;;  %s74_s5 = sadd.s32 2, %s3830_s30 }
  0x1c   : > { %p41_p7 = scmp.ge.s32.totalorder %s3832_s4, 2  ;;  %s78_s29 = ssub.s32 %s73_s6, %s74_s5 }
  0x1d   : > { %p2921_p8 = por %p89_p6, %p58_p3  ;;  %s106_s3 = sadd.s32 4, %s3830_s30 }
  0x1e   : > { %s3834_s4 = smov (%p41_p7, %s3832_s4), 0  ;;  %s110_s20 = ssub.s32 %s105_s11, %s106_s3 }
  0x1f   : > { %3787 = sst [smem:[#allocation17_spill]] %s3834_s4  ;;  %s114_s21 = sadd.s32 1, %s2727_s13 }
  0x20   : > { %s43_s19 = ssub.s32 %s2775_s25, %s3834_s4  ;;  %p121_p9 = scmp.ne.s32.totalorder %s2727_s13, %s2723_s12 }
  0x21   : > { %s45_s5 = sor.u32 %s44_s8, %s43_s19  ;;  %s77_s6 = sor.u32 %s76_s7, %s43_s19 }
  0x22   : > { %s47_s18 = sor.u32 %s46_s27, %s45_s5  ;;  %s79_s14 = sor.u32 %s78_s29, %s77_s6 }
  0x23   : > { %p48_p10 = scmp.eq.s32.totalorder %s47_s18, 0  ;;  %p80_p11 = scmp.eq.s32.totalorder %s79_s14, 0 }
  0x24   : > { %s111_s2 = sor.u32 %s110_s20, %s77_s6  ;;  %p2935_p12 = por %p121_p9, %p58_p3 }
  0x25   : > { %s3789_s1 = sadd.s32 1, %s2743_s17  ;;  %p112_p13 = scmp.eq.s32.totalorder %s111_s2, 0 }
  0x26   : > { %s2942_s3 = scalar_select %p48_p10, %s2743_s17, %s3789_s1  }
  0x27   : > { %s2945_s11 = scalar_select %p80_p11, %s2735_s15, %s82_s10  }
  0x28   : > { %s3790_s4 = sadd.s32 4294967295, %s2779_s26   ;;  %p2107_p3 = scmp.ge.s32.totalorder %s2779_s26, 32 }
  0x29   : > { %p155_p0 = scmp.eq.s32.totalorder %s3790_s4, 31 }
  0x2a   : > { %s2950_s8 = scalar_select %p112_p13, %s2727_s13, %s114_s21  }
  0x2b   : > { %p2955_p2 = por %p155_p0, %p57_p1  ;;  %177 = sbr.rel (%p2107_p3) target bundleno = 118 (0x76), region = 16 }
  0x32   : > { %180 = sbr.rel (!%p2905_p4) target bundleno = 66 (0x42), region = 20  ;;  %s182_s1 = sand.u32 (%p2905_p4), 1, %s2743_s17  }
  0x33   : > { %s2403_s2 = smul.u32 (%p2905_p4), 96, %s2767_s23  ;;  %s2108_s14 = sshll.u32 (%p2905_p4), %s182_s1, 7 }
  0x34   : > { %s2404_s19 = smul.u32 (%p2905_p4), 384, %s2775_s25  ;;  %s184_s9 = scalar_lea.vmem (%p2905_p4), [#allocation5], %s2108_s14 }
  0x35   : > { %s187_s20 = sadd.s32 (%p2905_p4), %s2771_s24, %s2403_s2 }
  0x36   : > { %s189_s21 = sadd.s32 (%p2905_p4), %s2404_s19, %s187_s20 }
  0x37   : > { %s2111_s27 = sshll.u32 (%p2905_p4), %s189_s21, 3 }
  0x38   : > { %s2969_s7 = scalar_lea.vmem (%p2905_p4), %s3765_s0, %s2111_s27 }
  0x39   : > { %v249_v0 = vld [vmem:[%s2969_s7] sm:$0xff]  ;;  %v251_v1 = vld [vmem:[%s2969_s7 + $0x30] sm:$0xff] }
  0x3a   : > { %v253_v2 = vld [vmem:[%s2969_s7 + $0x60] sm:$0xff]  ;;  %250 = vst [vmem:[%s184_s9] sm:$0xff] %v249_v0  ;;  %252 = vst [vmem:[%s184_s9 + $0x8] sm:$0xff] %v251_v1  ;;  %v255_v3 = vld [vmem:[%s2969_s7 + $0x90] sm:$0xff] }
  0x3b   : > { %254 = vst [vmem:[%s184_s9 + $0x10] sm:$0xff] %v253_v2  ;;  %v257_v4 = vld [vmem:[%s2969_s7 + $0xc0] sm:$0xff]  ;;  %v259_v5 = vld [vmem:[%s2969_s7 + $0xf0] sm:$0xff]  ;;  %256 = vst [vmem:[%s184_s9 + $0x18] sm:$0xff] %v255_v3 }
  0x3c   : > { %258 = vst [vmem:[%s184_s9 + $0x20] sm:$0xff] %v257_v4  ;;  %260 = vst [vmem:[%s184_s9 + $0x28] sm:$0xff] %v259_v5  ;;  %v261_v6 = vld [vmem:[%s2969_s7 + $0x120] sm:$0xff]  ;;  %v263_v7 = vld [vmem:[%s2969_s7 + $0x150] sm:$0xff] }
  0x3d   : > { %v265_v8 = vld [vmem:[%s2969_s7 + $0x180] sm:$0xff]  ;;  %262 = vst [vmem:[%s184_s9 + $0x30] sm:$0xff] %v261_v6  ;;  %264 = vst [vmem:[%s184_s9 + $0x38] sm:$0xff] %v263_v7  ;;  %v267_v9 = vld [vmem:[%s2969_s7 + $0x1b0] sm:$0xff] }
  0x3e   : > { %266 = vst [vmem:[%s184_s9 + $0x40] sm:$0xff] %v265_v8  ;;  %v269_v10 = vld [vmem:[%s2969_s7 + $0x1e0] sm:$0xff]  ;;  %v271_v11 = vld [vmem:[%s2969_s7 + $0x210] sm:$0xff]  ;;  %268 = vst [vmem:[%s184_s9 + $0x48] sm:$0xff] %v267_v9 }
  0x3f   : > { %270 = vst [vmem:[%s184_s9 + $0x50] sm:$0xff] %v269_v10  ;;  %272 = vst [vmem:[%s184_s9 + $0x58] sm:$0xff] %v271_v11  ;;  %v273_v12 = vld [vmem:[%s2969_s7 + $0x240] sm:$0xff]  ;;  %v275_v13 = vld [vmem:[%s2969_s7 + $0x270] sm:$0xff] }
  0x40   : > { %v277_v14 = vld [vmem:[%s2969_s7 + $0x2a0] sm:$0xff]  ;;  %274 = vst [vmem:[%s184_s9 + $0x60] sm:$0xff] %v273_v12  ;;  %276 = vst [vmem:[%s184_s9 + $0x68] sm:$0xff] %v275_v13  ;;  %v279_v15 = vld [vmem:[%s2969_s7 + $0x2d0] sm:$0xff] }
  0x41   : > { %278 = vst [vmem:[%s184_s9 + $0x70] sm:$0xff] %v277_v14  ;;  %280 = vst [vmem:[%s184_s9 + $0x78] sm:$0xff] %v279_v15 }
  0x42 PF: > { %286 = sbr.rel (!%p2921_p8) target bundleno = 92 (0x5c), region = 58  ;;  %s288_s10 = sand.u32 (%p2921_p8), 1, %s2735_s15  }
  0x43   : > { %s1992_s5 = smul.u32 (%p2921_p8), 192, %s2763_s22  ;;  %s2112_s6 = sshll.u32 (%p2921_p8), %s288_s10, 8 }
  0x44   : > { %s1994_s1 = smul.u32 (%p2921_p8), 384, %s2775_s25  ;;  %s3792_s27 = sld [smem:[#allocation18_spill]] (%p2921_p8) }
  0x45   : > { %s1993_s2 = sadd.s32 (%p2921_p8), %s2771_s24, %s1992_s5  ;;  %s3001_s28 = scalar_lea.vmem (%p2921_p8), [#allocation6], %s2112_s6 }
  0x46   : > { %s1995_s14 = sadd.s32 (%p2921_p8), %s1994_s1, %s1993_s2 }
  0x47   : > { %s2113_s19 = sshll.u32 (%p2921_p8), %s1995_s14, 3 }
  0x4a   : > { %s2996_s29 = scalar_lea.vmem %s3792_s27, %s2113_s19 }
  0x4b   : > { %v2114_v16 = vld [vmem:[%s2996_s29 + $0x10] sm:$0xff]  ;;  %v2115_v17 = vld [vmem:[%s2996_s29 + $0x40] sm:$0xff] }
  0x4c   : > { %v2116_v18 = vld [vmem:[%s2996_s29 + $0x70] sm:$0xff]  ;;  %389 = vst [vmem:[%s3001_s28] sm:$0xff] %v2114_v16  ;;  %391 = vst [vmem:[%s3001_s28 + $0x8] sm:$0xff] %v2115_v17  ;;  %v2117_v19 = vld [vmem:[%s2996_s29 + $0xa0] sm:$0xff] }
  0x4d   : > { %393 = vst [vmem:[%s3001_s28 + $0x10] sm:$0xff] %v2116_v18  ;;  %v2118_v20 = vld [vmem:[%s2996_s29 + $0xd0] sm:$0xff]  ;;  %v2119_v21 = vld [vmem:[%s2996_s29 + $0x100] sm:$0xff]  ;;  %395 = vst [vmem:[%s3001_s28 + $0x18] sm:$0xff] %v2117_v19 }
  0x4e   : > { %397 = vst [vmem:[%s3001_s28 + $0x20] sm:$0xff] %v2118_v20  ;;  %399 = vst [vmem:[%s3001_s28 + $0x28] sm:$0xff] %v2119_v21  ;;  %v2120_v22 = vld [vmem:[%s2996_s29 + $0x130] sm:$0xff]  ;;  %v2121_v23 = vld [vmem:[%s2996_s29 + $0x160] sm:$0xff] }
  0x4f   : > { %v2122_v24 = vld [vmem:[%s2996_s29 + $0x190] sm:$0xff]  ;;  %401 = vst [vmem:[%s3001_s28 + $0x30] sm:$0xff] %v2120_v22  ;;  %403 = vst [vmem:[%s3001_s28 + $0x38] sm:$0xff] %v2121_v23  ;;  %v2123_v25 = vld [vmem:[%s2996_s29 + $0x1c0] sm:$0xff] }
  0x50   : > { %405 = vst [vmem:[%s3001_s28 + $0x40] sm:$0xff] %v2122_v24  ;;  %v2124_v26 = vld [vmem:[%s2996_s29 + $0x1f0] sm:$0xff]  ;;  %v2125_v27 = vld [vmem:[%s2996_s29 + $0x220] sm:$0xff]  ;;  %407 = vst [vmem:[%s3001_s28 + $0x48] sm:$0xff] %v2123_v25 }
  0x51   : > { %409 = vst [vmem:[%s3001_s28 + $0x50] sm:$0xff] %v2124_v26  ;;  %411 = vst [vmem:[%s3001_s28 + $0x58] sm:$0xff] %v2125_v27  ;;  %v2126_v28 = vld [vmem:[%s2996_s29 + $0x250] sm:$0xff]  ;;  %v2127_v29 = vld [vmem:[%s2996_s29 + $0x280] sm:$0xff] }
  0x52   : > { %v2128_v30 = vld [vmem:[%s2996_s29 + $0x2b0] sm:$0xff]  ;;  %413 = vst [vmem:[%s3001_s28 + $0x60] sm:$0xff] %v2126_v28  ;;  %415 = vst [vmem:[%s3001_s28 + $0x68] sm:$0xff] %v2127_v29  ;;  %v2129_v31 = vld [vmem:[%s2996_s29 + $0x2e0] sm:$0xff] }
  0x53   : > { %417 = vst [vmem:[%s3001_s28 + $0x70] sm:$0xff] %v2128_v30  ;;  %v2130_v32 = vld [vmem:[%s2996_s29 + $0x310] sm:$0xff]  ;;  %v2131_v33 = vld [vmem:[%s2996_s29 + $0x340] sm:$0xff]  ;;  %419 = vst [vmem:[%s3001_s28 + $0x78] sm:$0xff] %v2129_v31 }
  0x54   : > { %421 = vst [vmem:[%s3001_s28 + $0x80] sm:$0xff] %v2130_v32  ;;  %423 = vst [vmem:[%s3001_s28 + $0x88] sm:$0xff] %v2131_v33  ;;  %v2132_v34 = vld [vmem:[%s2996_s29 + $0x370] sm:$0xff]  ;;  %v2133_v35 = vld [vmem:[%s2996_s29 + $0x3a0] sm:$0xff] }
  0x55   : > { %v2134_v36 = vld [vmem:[%s2996_s29 + $0x3d0] sm:$0xff]  ;;  %425 = vst [vmem:[%s3001_s28 + $0x90] sm:$0xff] %v2132_v34  ;;  %427 = vst [vmem:[%s3001_s28 + $0x98] sm:$0xff] %v2133_v35  ;;  %v2135_v37 = vld [vmem:[%s2996_s29 + $0x400] sm:$0xff] }
  0x56   : > { %429 = vst [vmem:[%s3001_s28 + $0xa0] sm:$0xff] %v2134_v36  ;;  %v2136_v38 = vld [vmem:[%s2996_s29 + $0x430] sm:$0xff]  ;;  %v2137_v39 = vld [vmem:[%s2996_s29 + $0x460] sm:$0xff]  ;;  %431 = vst [vmem:[%s3001_s28 + $0xa8] sm:$0xff] %v2135_v37 }
  0x57   : > { %433 = vst [vmem:[%s3001_s28 + $0xb0] sm:$0xff] %v2136_v38  ;;  %435 = vst [vmem:[%s3001_s28 + $0xb8] sm:$0xff] %v2137_v39  ;;  %v2138_v40 = vld [vmem:[%s2996_s29 + $0x490] sm:$0xff]  ;;  %v2139_v41 = vld [vmem:[%s2996_s29 + $0x4c0] sm:$0xff] }
  0x58   : > { %v2140_v42 = vld [vmem:[%s2996_s29 + $0x4f0] sm:$0xff]  ;;  %437 = vst [vmem:[%s3001_s28 + $0xc0] sm:$0xff] %v2138_v40  ;;  %439 = vst [vmem:[%s3001_s28 + $0xc8] sm:$0xff] %v2139_v41  ;;  %v2141_v43 = vld [vmem:[%s2996_s29 + $0x520] sm:$0xff] }
  0x59   : > { %441 = vst [vmem:[%s3001_s28 + $0xd0] sm:$0xff] %v2140_v42  ;;  %v2142_v44 = vld [vmem:[%s2996_s29 + $0x550] sm:$0xff]  ;;  %v2143_v45 = vld [vmem:[%s2996_s29 + $0x580] sm:$0xff]  ;;  %443 = vst [vmem:[%s3001_s28 + $0xd8] sm:$0xff] %v2141_v43 }
  0x5a   : > { %445 = vst [vmem:[%s3001_s28 + $0xe0] sm:$0xff] %v2142_v44  ;;  %447 = vst [vmem:[%s3001_s28 + $0xe8] sm:$0xff] %v2143_v45  ;;  %v2144_v46 = vld [vmem:[%s2996_s29 + $0x5b0] sm:$0xff]  ;;  %v2145_v47 = vld [vmem:[%s2996_s29 + $0x5e0] sm:$0xff] }
  0x5b   : > { %449 = vst [vmem:[%s3001_s28 + $0xf0] sm:$0xff] %v2144_v46  ;;  %451 = vst [vmem:[%s3001_s28 + $0xf8] sm:$0xff] %v2145_v47 }
  0x5c PF: > { %457 = sbr.rel (!%p2935_p12) target bundleno = 118 (0x76), region = 96  ;;  %s459_s4 = sand.u32 (%p2935_p12), 1, %s2727_s13  }
  0x5d   : > { %s2001_s7 = smul.u32 (%p2935_p12), 192, %s2763_s22  ;;  %s2146_s9 = sshll.u32 (%p2935_p12), %s459_s4, 8 }
  0x5e   : > { %s2003_s10 = smul.u32 (%p2935_p12), 384, %s2775_s25  ;;  %s3793_s19 = sld [smem:[#allocation19_spill]] (%p2935_p12) }
  0x5f   : > { %s2002_s5 = sadd.s32 (%p2935_p12), %s2771_s24, %s2001_s7  ;;  %s3078_s30 = scalar_lea.vmem (%p2935_p12), [#allocation7], %s2146_s9 }
  0x60   : > { %s2004_s6 = sadd.s32 (%p2935_p12), %s2003_s10, %s2002_s5 }
  0x61   : > { %s2147_s1 = sshll.u32 (%p2935_p12), %s2004_s6, 3 }
  0x64   : > { %s3073_s20 = scalar_lea.vmem %s3793_s19, %s2147_s1 }
  0x65   : > { %v2148_v48 = vld [vmem:[%s3073_s20 + $0x20] sm:$0xff]  ;;  %v2149_v49 = vld [vmem:[%s3073_s20 + $0x50] sm:$0xff] }
  0x66   : > { %v2150_v50 = vld [vmem:[%s3073_s20 + $0x80] sm:$0xff]  ;;  %560 = vst [vmem:[%s3078_s30] sm:$0xff] %v2148_v48  ;;  %562 = vst [vmem:[%s3078_s30 + $0x8] sm:$0xff] %v2149_v49  ;;  %v2151_v51 = vld [vmem:[%s3073_s20 + $0xb0] sm:$0xff] }
  0x67   : > { %564 = vst [vmem:[%s3078_s30 + $0x10] sm:$0xff] %v2150_v50  ;;  %v2152_v52 = vld [vmem:[%s3073_s20 + $0xe0] sm:$0xff]  ;;  %v2153_v53 = vld [vmem:[%s3073_s20 + $0x110] sm:$0xff]  ;;  %566 = vst [vmem:[%s3078_s30 + $0x18] sm:$0xff] %v2151_v51 }
  0x68   : > { %568 = vst [vmem:[%s3078_s30 + $0x20] sm:$0xff] %v2152_v52  ;;  %570 = vst [vmem:[%s3078_s30 + $0x28] sm:$0xff] %v2153_v53  ;;  %v2154_v54 = vld [vmem:[%s3073_s20 + $0x140] sm:$0xff]  ;;  %v2155_v55 = vld [vmem:[%s3073_s20 + $0x170] sm:$0xff] }
  0x69   : > { %v2156_v56 = vld [vmem:[%s3073_s20 + $0x1a0] sm:$0xff]  ;;  %572 = vst [vmem:[%s3078_s30 + $0x30] sm:$0xff] %v2154_v54  ;;  %574 = vst [vmem:[%s3078_s30 + $0x38] sm:$0xff] %v2155_v55  ;;  %v2157_v57 = vld [vmem:[%s3073_s20 + $0x1d0] sm:$0xff] }
  0x6a   : > { %576 = vst [vmem:[%s3078_s30 + $0x40] sm:$0xff] %v2156_v56  ;;  %v2158_v58 = vld [vmem:[%s3073_s20 + $0x200] sm:$0xff]  ;;  %v2159_v59 = vld [vmem:[%s3073_s20 + $0x230] sm:$0xff]  ;;  %578 = vst [vmem:[%s3078_s30 + $0x48] sm:$0xff] %v2157_v57 }
  0x6b   : > { %580 = vst [vmem:[%s3078_s30 + $0x50] sm:$0xff] %v2158_v58  ;;  %582 = vst [vmem:[%s3078_s30 + $0x58] sm:$0xff] %v2159_v59  ;;  %v2160_v60 = vld [vmem:[%s3073_s20 + $0x260] sm:$0xff]  ;;  %v2161_v61 = vld [vmem:[%s3073_s20 + $0x290] sm:$0xff] }
  0x6c   : > { %v2162_v62 = vld [vmem:[%s3073_s20 + $0x2c0] sm:$0xff]  ;;  %584 = vst [vmem:[%s3078_s30 + $0x60] sm:$0xff] %v2160_v60  ;;  %586 = vst [vmem:[%s3078_s30 + $0x68] sm:$0xff] %v2161_v61  ;;  %v2163_v63 = vld [vmem:[%s3073_s20 + $0x2f0] sm:$0xff] }
  0x6d   : > { %588 = vst [vmem:[%s3078_s30 + $0x70] sm:$0xff] %v2162_v62  ;;  %v2164_v0 = vld [vmem:[%s3073_s20 + $0x320] sm:$0xff]  ;;  %v2165_v1 = vld [vmem:[%s3073_s20 + $0x350] sm:$0xff]  ;;  %590 = vst [vmem:[%s3078_s30 + $0x78] sm:$0xff] %v2163_v63 }
  0x6e   : > { %592 = vst [vmem:[%s3078_s30 + $0x80] sm:$0xff] %v2164_v0  ;;  %594 = vst [vmem:[%s3078_s30 + $0x88] sm:$0xff] %v2165_v1  ;;  %v2166_v2 = vld [vmem:[%s3073_s20 + $0x380] sm:$0xff]  ;;  %v2167_v3 = vld [vmem:[%s3073_s20 + $0x3b0] sm:$0xff] }
  0x6f   : > { %v2168_v4 = vld [vmem:[%s3073_s20 + $0x3e0] sm:$0xff]  ;;  %596 = vst [vmem:[%s3078_s30 + $0x90] sm:$0xff] %v2166_v2  ;;  %598 = vst [vmem:[%s3078_s30 + $0x98] sm:$0xff] %v2167_v3  ;;  %v2169_v5 = vld [vmem:[%s3073_s20 + $0x410] sm:$0xff] }
  0x70   : > { %600 = vst [vmem:[%s3078_s30 + $0xa0] sm:$0xff] %v2168_v4  ;;  %v2170_v6 = vld [vmem:[%s3073_s20 + $0x440] sm:$0xff]  ;;  %v2171_v7 = vld [vmem:[%s3073_s20 + $0x470] sm:$0xff]  ;;  %602 = vst [vmem:[%s3078_s30 + $0xa8] sm:$0xff] %v2169_v5 }
  0x71   : > { %604 = vst [vmem:[%s3078_s30 + $0xb0] sm:$0xff] %v2170_v6  ;;  %606 = vst [vmem:[%s3078_s30 + $0xb8] sm:$0xff] %v2171_v7  ;;  %v2172_v8 = vld [vmem:[%s3073_s20 + $0x4a0] sm:$0xff]  ;;  %v2173_v9 = vld [vmem:[%s3073_s20 + $0x4d0] sm:$0xff] }
  0x72   : > { %v2174_v10 = vld [vmem:[%s3073_s20 + $0x500] sm:$0xff]  ;;  %608 = vst [vmem:[%s3078_s30 + $0xc0] sm:$0xff] %v2172_v8  ;;  %610 = vst [vmem:[%s3078_s30 + $0xc8] sm:$0xff] %v2173_v9  ;;  %v2175_v11 = vld [vmem:[%s3073_s20 + $0x530] sm:$0xff] }
  0x73   : > { %612 = vst [vmem:[%s3078_s30 + $0xd0] sm:$0xff] %v2174_v10  ;;  %v2176_v12 = vld [vmem:[%s3073_s20 + $0x560] sm:$0xff]  ;;  %v2177_v13 = vld [vmem:[%s3073_s20 + $0x590] sm:$0xff]  ;;  %614 = vst [vmem:[%s3078_s30 + $0xd8] sm:$0xff] %v2175_v11 }
  0x74   : > { %616 = vst [vmem:[%s3078_s30 + $0xe0] sm:$0xff] %v2176_v12  ;;  %618 = vst [vmem:[%s3078_s30 + $0xe8] sm:$0xff] %v2177_v13  ;;  %v2178_v14 = vld [vmem:[%s3073_s20 + $0x5c0] sm:$0xff]  ;;  %v2179_v15 = vld [vmem:[%s3073_s20 + $0x5f0] sm:$0xff] }
  0x75   : > { %620 = vst [vmem:[%s3078_s30 + $0xf0] sm:$0xff] %v2178_v14  ;;  %622 = vst [vmem:[%s3078_s30 + $0xf8] sm:$0xff] %v2179_v15 }
  0x76 PF: > { %p2180_p1 = scmp.ge.s32.totalorder %s2779_s26, 1  ;;  %p627_p4 = scmp.lt.s32.totalorder %s2779_s26, 33 }
  0x78   : > { %p628_p5 = pnand %p2180_p1, %p627_p4 }
  0x79   : > { %s3794_s21 = sld [smem:[#allocation9_spill]] (!%p628_p5)  ;;  %s634_s27 = sand.u32 (!%p628_p5), 1, %s2739_s16  }
  0x7a   : > { %631 = sbr.rel (%p628_p5) target bundleno = 1152 (0x480), region = 134  ;;  %s2181_s28 = sshll.u32 (!%p628_p5), %s634_s27, 7 }
  0x7b   : > { %s648_s7 = sand.u32 (!%p628_p5), 1, %s2723_s12   ;;  %s3146_s10 = scalar_lea.vmem (!%p628_p5), [#allocation5], %s2181_s28 }
  0x7c   : > { %s2183_s9 = sshll.u32 (!%p628_p5), %s648_s7, 8  ;;  %s3152_s1 = scalar_lea.vmem (!%p628_p5), [#allocation8], %s2181_s28 }
  0x7d   : > { %s3150_s6 = scalar_lea.vmem (!%p628_p5), [#allocation7], %s2183_s9  ;;  %s3795_s2 = sld [smem:[#allocation10_spill]] (!%p628_p5) }
  0x7f   : > { %s641_s29 = sand.u32 (!%p628_p5), 1, %s3794_s21  }
  0x80   : > { %s2182_s4 = sshll.u32 (!%p628_p5), %s641_s29, 8 }
  0x81   : > { %s3148_s5 = scalar_lea.vmem [#allocation6], %s2182_s4 }
  0x83   : > { %p2185_p6 = scmp.ne.s32.totalorder %s3795_s2, 0 }
  0x84   : > { %vm688_vm0 = vcmask (!%p2185_p6), 7168   ;;  %v2781_v16 = vmov (!%p2185_p6), -inf   ;;  %v2782_v17 = vmov (!%p2185_p6), 0.0  }
  0x85   : > { %687 = sbr.rel (%p2185_p6) target bundleno = 157 (0x9d), region = 150  ;;  %689 = vst.msk [vmem:[#allocation2] sm:$0xff] (!%p2185_p6), %vm688_vm0, %v2781_v16  ;;  %690 = vst.msk [vmem:[#allocation2 + $0x8] sm:$0xff] (!%p2185_p6), %vm688_vm0, %v2781_v16 }
  0x86   : > { %691 = vst.msk [vmem:[#allocation2 + $0x10] sm:$0xff] (!%p2185_p6), %vm688_vm0, %v2781_v16  ;;  %692 = vst.msk [vmem:[#allocation2 + $0x18] sm:$0xff] (!%p2185_p6), %vm688_vm0, %v2781_v16 }
  0x87   : > { %693 = vst.msk [vmem:[#allocation2 + $0x20] sm:$0xff] (!%p2185_p6), %vm688_vm0, %v2781_v16  ;;  %694 = vst.msk [vmem:[#allocation2 + $0x28] sm:$0xff] (!%p2185_p6), %vm688_vm0, %v2781_v16 }
  0x88   : > { %695 = vst.msk [vmem:[#allocation2 + $0x30] sm:$0xff] (!%p2185_p6), %vm688_vm0, %v2781_v16  ;;  %696 = vst.msk [vmem:[#allocation2 + $0x38] sm:$0xff] (!%p2185_p6), %vm688_vm0, %v2781_v16 }
  0x89   : > { %697 = vst.msk [vmem:[#allocation2 + $0x40] sm:$0xff] (!%p2185_p6), %vm688_vm0, %v2781_v16  ;;  %698 = vst.msk [vmem:[#allocation2 + $0x48] sm:$0xff] (!%p2185_p6), %vm688_vm0, %v2781_v16 }
  0x8a   : > { %699 = vst.msk [vmem:[#allocation2 + $0x50] sm:$0xff] (!%p2185_p6), %vm688_vm0, %v2781_v16  ;;  %700 = vst.msk [vmem:[#allocation2 + $0x58] sm:$0xff] (!%p2185_p6), %vm688_vm0, %v2781_v16 }
  0x8b   : > { %701 = vst.msk [vmem:[#allocation2 + $0x60] sm:$0xff] (!%p2185_p6), %vm688_vm0, %v2781_v16  ;;  %702 = vst.msk [vmem:[#allocation2 + $0x68] sm:$0xff] (!%p2185_p6), %vm688_vm0, %v2781_v16 }
  0x8c   : > { %703 = vst.msk [vmem:[#allocation2 + $0x70] sm:$0xff] %vm688_vm0, %v2781_v16  ;;  %704 = vst.msk [vmem:[#allocation2 + $0x78] sm:$0xff] %vm688_vm0, %v2781_v16 }
  0x8d   : > { %705 = vst.msk [vmem:[#allocation3] sm:$0xff] %vm688_vm0, %v2782_v17  ;;  %706 = vst.msk [vmem:[#allocation3 + $0x8] sm:$0xff] %vm688_vm0, %v2782_v17 }
  0x8e   : > { %707 = vst.msk [vmem:[#allocation3 + $0x10] sm:$0xff] %vm688_vm0, %v2782_v17  ;;  %708 = vst.msk [vmem:[#allocation3 + $0x18] sm:$0xff] %vm688_vm0, %v2782_v17 }
  0x8f   : > { %709 = vst.msk [vmem:[#allocation3 + $0x20] sm:$0xff] %vm688_vm0, %v2782_v17  ;;  %710 = vst.msk [vmem:[#allocation3 + $0x28] sm:$0xff] %vm688_vm0, %v2782_v17 }
  0x90   : > { %711 = vst.msk [vmem:[#allocation3 + $0x30] sm:$0xff] %vm688_vm0, %v2782_v17  ;;  %712 = vst.msk [vmem:[#allocation3 + $0x38] sm:$0xff] %vm688_vm0, %v2782_v17 }
  0x91   : > { %713 = vst.msk [vmem:[#allocation3 + $0x40] sm:$0xff] %vm688_vm0, %v2782_v17  ;;  %714 = vst.msk [vmem:[#allocation3 + $0x48] sm:$0xff] %vm688_vm0, %v2782_v17 }
  0x92   : > { %715 = vst.msk [vmem:[#allocation3 + $0x50] sm:$0xff] %vm688_vm0, %v2782_v17  ;;  %716 = vst.msk [vmem:[#allocation3 + $0x58] sm:$0xff] %vm688_vm0, %v2782_v17 }
  0x93   : > { %717 = vst.msk [vmem:[#allocation3 + $0x60] sm:$0xff] %vm688_vm0, %v2782_v17  ;;  %718 = vst.msk [vmem:[#allocation3 + $0x68] sm:$0xff] %vm688_vm0, %v2782_v17 }
  0x94   : > { %719 = vst.msk [vmem:[#allocation3 + $0x70] sm:$0xff] %vm688_vm0, %v2782_v17  ;;  %720 = vst.msk [vmem:[#allocation3 + $0x78] sm:$0xff] %vm688_vm0, %v2782_v17 }
  0x95   : > { %721 = vst [vmem:[#allocation4] sm:$0xff] %v2782_v17  ;;  %722 = vst [vmem:[#allocation4 + $0x8] sm:$0xff] %v2782_v17 }
  0x96   : > { %723 = vst [vmem:[#allocation4 + $0x10] sm:$0xff] %v2782_v17  ;;  %724 = vst [vmem:[#allocation4 + $0x18] sm:$0xff] %v2782_v17 }
  0x97   : > { %725 = vst [vmem:[#allocation4 + $0x20] sm:$0xff] %v2782_v17  ;;  %726 = vst [vmem:[#allocation4 + $0x28] sm:$0xff] %v2782_v17 }
  0x98   : > { %727 = vst [vmem:[#allocation4 + $0x30] sm:$0xff] %v2782_v17  ;;  %728 = vst [vmem:[#allocation4 + $0x38] sm:$0xff] %v2782_v17 }
  0x99   : > { %729 = vst [vmem:[#allocation4 + $0x40] sm:$0xff] %v2782_v17  ;;  %730 = vst [vmem:[#allocation4 + $0x48] sm:$0xff] %v2782_v17 }
  0x9a   : > { %731 = vst [vmem:[#allocation4 + $0x50] sm:$0xff] %v2782_v17  ;;  %732 = vst [vmem:[#allocation4 + $0x58] sm:$0xff] %v2782_v17 }
  0x9b   : > { %733 = vst [vmem:[#allocation4 + $0x60] sm:$0xff] %v2782_v17  ;;  %734 = vst [vmem:[#allocation4 + $0x68] sm:$0xff] %v2782_v17 }
  0x9c   : > { %735 = vst [vmem:[#allocation4 + $0x70] sm:$0xff] %v2782_v17  ;;  %736 = vst [vmem:[#allocation4 + $0x78] sm:$0xff] %v2782_v17 }
  0x9d PF: > { %v769_v18 = vld [vmem:[%s3148_s5 + $0x80] sm:$0xff]  ;;  %v770_v19 = vld [vmem:[%s3148_s5 + $0x88] sm:$0xff]  ;;  %v771_v23 = vld [vmem:[%s3148_s5 + $0x90] sm:$0xff]  ;;  %vm1378_vm1 = vcmask 7168   ;;  %s3797_s12 = sld [smem:[#allocation10_spill]] }
  0x9e   : > { %v753_v20 = vld [vmem:[%s3148_s5] sm:$0xff]  ;;  %v2339_v21 = vpack.c.bf16 %v770_v19, %v769_v18  ;;  %v754_v22 = vld [vmem:[%s3148_s5 + $0x8] sm:$0xff]  ;;  %v772_v24 = vld [vmem:[%s3148_s5 + $0x98] sm:$0xff] }
  0x9f   : > { %v2341_v25 = vpack.c.bf16 %v754_v22, %v753_v20  ;;  %v2343_v26 = vpack.c.bf16 %v772_v24, %v771_v23  ;;  %v755_v27 = vld [vmem:[%s3148_s5 + $0x10] sm:$0xff]  ;;  %v756_v28 = vld [vmem:[%s3148_s5 + $0x18] sm:$0xff]  ;;  %v773_v29 = vld [vmem:[%s3148_s5 + $0xa0] sm:$0xff] }
  0xa0   : > { %2340 = vmatprep.subr.bf16.mxu0 %v2339_v21  ;;  %v774_v30 = vld [vmem:[%s3148_s5 + $0xa8] sm:$0xff]  ;;  %v2345_v31 = vpack.c.bf16 %v756_v28, %v755_v27  ;;  %v737_v33 = vld [vmem:[%s3146_s10] sm:$0xff]  ;;  %v775_v36 = vld [vmem:[%s3148_s5 + $0xb0] sm:$0xff] }
  0xa1   : > { %2342 = vmatpush3.bf16.xpose.msra.mxu0 %v2341_v25  ;;  %v2347_v32 = vpack.c.bf16 %v774_v30, %v773_v29  ;;  %2227 = vmatprep.mubr.f32.mxu0 %v737_v33  ;;  %v757_v34 = vld [vmem:[%s3148_s5 + $0x20] sm:$0xff]  ;;  %v758_v35 = vld [vmem:[%s3148_s5 + $0x28] sm:$0xff]  ;;  %v776_v37 = vld [vmem:[%s3148_s5 + $0xb8] sm:$0xff] }
  0xa2   : > { %2344 = vmatprep.subr.bf16.mxu0 %v2343_v26  ;;  %v2349_v38 = vpack.c.bf16 %v758_v35, %v757_v34  ;;  %v2351_v39 = vpack.c.bf16 %v776_v37, %v775_v36  ;;  %v759_v40 = vld [vmem:[%s3148_s5 + $0x30] sm:$0xff]  ;;  %v760_v41 = vld [vmem:[%s3148_s5 + $0x38] sm:$0xff]  ;;  %v777_v42 = vld [vmem:[%s3148_s5 + $0xc0] sm:$0xff] }
  0xa3   : > { %v778_v43 = vld [vmem:[%s3148_s5 + $0xc8] sm:$0xff]  ;;  %v2353_v44 = vpack.c.bf16 %v760_v41, %v759_v40  ;;  %v761_v46 = vld [vmem:[%s3148_s5 + $0x40] sm:$0xff]  ;;  %v779_v48 = vld [vmem:[%s3148_s5 + $0xd0] sm:$0xff]  ;;  %p2186_p7 = scmp.ne.s32.totalorder %s3797_s12, 1 }
  0xa4   : > { %v2355_v45 = vpack.c.bf16 %v778_v43, %v777_v42  ;;  %v762_v47 = vld [vmem:[%s3148_s5 + $0x48] sm:$0xff]  ;;  %v780_v49 = vld [vmem:[%s3148_s5 + $0xd8] sm:$0xff]  ;;  %v763_v52 = vld [vmem:[%s3148_s5 + $0x50] sm:$0xff] }
  0xa5   : > { %v2357_v50 = vpack.c.bf16 %v762_v47, %v761_v46  ;;  %v2359_v51 = vpack.c.bf16 %v780_v49, %v779_v48  ;;  %v764_v53 = vld [vmem:[%s3148_s5 + $0x58] sm:$0xff]  ;;  %v781_v54 = vld [vmem:[%s3148_s5 + $0xe0] sm:$0xff]  ;;  %v782_v55 = vld [vmem:[%s3148_s5 + $0xe8] sm:$0xff] }
  0xa6   : > { %v2361_v56 = vpack.c.bf16 %v764_v53, %v763_v52  ;;  %v2363_v57 = vpack.c.bf16 %v782_v55, %v781_v54  ;;  %v765_v58 = vld [vmem:[%s3148_s5 + $0x60] sm:$0xff]  ;;  %v766_v59 = vld [vmem:[%s3148_s5 + $0x68] sm:$0xff]  ;;  %v783_v60 = vld [vmem:[%s3148_s5 + $0xf0] sm:$0xff] }
  0xa7   : > { %v784_v61 = vld [vmem:[%s3148_s5 + $0xf8] sm:$0xff]  ;;  %v2365_v62 = vpack.c.bf16 %v766_v59, %v765_v58  ;;  %v767_v0 = vld [vmem:[%s3148_s5 + $0x70] sm:$0xff]  ;;  %v738_v3 = vld [vmem:[%s3146_s10 + $0x8] sm:$0xff] }
  0xa8   : > { %v2367_v63 = vpack.c.bf16 %v784_v61, %v783_v60  ;;  %v768_v1 = vld [vmem:[%s3148_s5 + $0x78] sm:$0xff]  ;;  %v739_v4 = vld [vmem:[%s3146_s10 + $0x10] sm:$0xff]  ;;  %v741_v6 = vld [vmem:[%s3146_s10 + $0x20] sm:$0xff] }
  0xa9   : > { %2346 = vmatpush3.bf16.xpose.msra.mxu0 %v2345_v31  ;;  %v2369_v2 = vpack.c.bf16 %v768_v1, %v767_v0  ;;  %v740_v5 = vld [vmem:[%s3146_s10 + $0x18] sm:$0xff]  ;;  %v742_v7 = vld [vmem:[%s3146_s10 + $0x28] sm:$0xff]  ;;  %v743_v8 = vld [vmem:[%s3146_s10 + $0x30] sm:$0xff] }
  0xaa   : > { %2348 = vmatprep.subr.bf16.mxu0 %v2347_v32  ;;  %v744_v9 = vld [vmem:[%s3146_s10 + $0x38] sm:$0xff]  ;;  %v745_v10 = vld [vmem:[%s3146_s10 + $0x40] sm:$0xff]  ;;  %v746_v11 = vld [vmem:[%s3146_s10 + $0x48] sm:$0xff] }
  0xab   : > { %v747_v12 = vld [vmem:[%s3146_s10 + $0x50] sm:$0xff]  ;;  %v748_v13 = vld [vmem:[%s3146_s10 + $0x58] sm:$0xff]  ;;  %v749_v14 = vld [vmem:[%s3146_s10 + $0x60] sm:$0xff] }
  0xac   : > { %v750_v15 = vld [vmem:[%s3146_s10 + $0x68] sm:$0xff]  ;;  %v751_v16 = vld [vmem:[%s3146_s10 + $0x70] sm:$0xff]  ;;  %v752_v17 = vld [vmem:[%s3146_s10 + $0x78] sm:$0xff] }
  0xb1   : > { %2350 = vmatpush3.bf16.xpose.msra.mxu0 %v2349_v38 }
  0xb2   : > { %2352 = vmatprep.subr.bf16.mxu0 %v2351_v39 }
  0xb9   : > { %2354 = vmatpush3.bf16.xpose.msra.mxu0 %v2353_v44 }
  0xba   : > { %2356 = vmatprep.subr.bf16.mxu0 %v2355_v45 }
  0xc1   : > { %2358 = vmatpush3.bf16.xpose.msra.mxu0 %v2357_v50 }
  0xc2   : > { %2360 = vmatprep.subr.bf16.mxu0 %v2359_v51 }
  0xc9   : > { %2362 = vmatpush3.bf16.xpose.msra.mxu0 %v2361_v56 }
  0xca   : > { %2364 = vmatprep.subr.bf16.mxu0 %v2363_v57 }
  0xd1   : > { %2366 = vmatpush3.bf16.xpose.msra.mxu0 %v2365_v62 }
  0xd2   : > { %2368 = vmatprep.subr.bf16.mxu0 %v2367_v63 }
  0xd9   : > { %2370 = vmatpush3.bf16.xpose.msra.mxu0 %v2369_v2 }
  0xe0   : > { %2228 = vmatmul.mubr.f32.vlgmr.msra.gmra.mrb[0].mxu0 %v737_v33  ;;  %v2783_v33 = vmov 0  }
  0xe1   : > { %2229 = vmatprep.mubr.f32.mxu0 %v738_v3  ;;  %2529 = vset.pattern.permute.xlu0 %v2783_v33 }
  0xe2   : > { %2530 = vset.pattern.permute.xlu1 %v2783_v33 }
  0xe4   : > { %2230 = vmatmul.mubr.f32.gmra.mrb[2].mxu0 %v738_v3  ;;  %v801_v3 = vld [vmem:[%s3150_s6 + $0x80] sm:$0xff] }
  0xe5   : > { %2231 = vmatprep.mubr.f32.mxu0 %v739_v4 }
  0xe8   : > { %2232 = vmatmul.mubr.f32.gmra.mrb[4].mxu0 %v739_v4  ;;  %v802_v4 = vld [vmem:[%s3150_s6 + $0x88] sm:$0xff] }
  0xe9   : > { %2233 = vmatprep.mubr.f32.mxu0 %v740_v5 }
  0xec   : > { %2234 = vmatmul.mubr.f32.gmra.mrb[6].mxu0 %v740_v5  ;;  %v785_v5 = vld [vmem:[%s3150_s6] sm:$0xff] }
  0xed   : > { %2235 = vmatprep.mubr.f32.mxu0 %v741_v6 }
  0xf0   : > { %2236 = vmatmul.mubr.f32.gmra.mrb[8].mxu0 %v741_v6  ;;  %v2371_v6 = vpack.c.bf16 %v802_v4, %v801_v3  ;;  %v794_v3 = vld [vmem:[%s3150_s6 + $0x48] sm:$0xff] }
  0xf1   : > { %2237 = vmatprep.mubr.f32.mxu0 %v742_v7 }
  0xf2   : > { %2372 = vmatprep.subr.bf16.mxu1 %v2371_v6 }
  0xf4   : > { %2238 = vmatmul.mubr.f32.gmra.mrb[10].mxu0 %v742_v7  ;;  %v786_v7 = vld [vmem:[%s3150_s6 + $0x8] sm:$0xff] }
  0xf5   : > { %2239 = vmatprep.mubr.f32.mxu0 %v743_v8 }
  0xf8   : > { %2240 = vmatmul.mubr.f32.gmra.mrb[12].mxu0 %v743_v8  ;;  %v803_v8 = vld [vmem:[%s3150_s6 + $0x90] sm:$0xff] }
  0xf9   : > { %2241 = vmatprep.mubr.f32.mxu0 %v744_v9 }
  0xfc   : > { %2242 = vmatmul.mubr.f32.gmra.mrb[14].mxu0 %v744_v9  ;;  %v804_v9 = vld [vmem:[%s3150_s6 + $0x98] sm:$0xff] }
  0xfd   : > { %2243 = vmatprep.mubr.f32.mxu0 %v745_v10 }
 0x100   : > { %2244 = vmatmul.mubr.f32.gmra.mrb[16].mxu0 %v745_v10  ;;  %v2373_v10 = vpack.c.bf16 %v786_v7, %v785_v5  ;;  %v811_v7 = vld [vmem:[%s3150_s6 + $0xd0] sm:$0xff] }
 0x101   : > { %2245 = vmatprep.mubr.f32.mxu0 %v746_v11 }
 0x102   : > { %2374 = vmatpush3.bf16.msra.mxu1 %v2373_v10 }
 0x104   : > { %2246 = vmatmul.mubr.f32.gmra.mrb[18].mxu0 %v746_v11  ;;  %v2375_v11 = vpack.c.bf16 %v804_v9, %v803_v8  ;;  %v812_v8 = vld [vmem:[%s3150_s6 + $0xd8] sm:$0xff]  ;;  %v3366_v9 = vld [vmem:[#allocation2 + $0x10] sm:$0xff] }
 0x105   : > { %2247 = vmatprep.mubr.f32.mxu0 %v747_v12  ;;  %v2391_v10 = vpack.c.bf16 %v812_v8, %v811_v7 }
 0x106   : > { %2376 = vmatprep.subr.bf16.mxu1 %v2375_v11  ;;  %v795_v11 = vld [vmem:[%s3150_s6 + $0x50] sm:$0xff] }
 0x108   : > { %2248 = vmatmul.mubr.f32.gmra.mrb[20].mxu0 %v747_v12  ;;  %v787_v12 = vld [vmem:[%s3150_s6 + $0x10] sm:$0xff] }
 0x109   : > { %2249 = vmatprep.mubr.f32.mxu0 %v748_v13 }
 0x10c   : > { %2250 = vmatmul.mubr.f32.gmra.mrb[22].mxu0 %v748_v13  ;;  %v788_v13 = vld [vmem:[%s3150_s6 + $0x18] sm:$0xff] }
 0x10d   : > { %2251 = vmatprep.mubr.f32.mxu0 %v749_v14 }
 0x110   : > { %2252 = vmatmul.mubr.f32.gmra.mrb[24].mxu0 %v749_v14  ;;  %v805_v14 = vld [vmem:[%s3150_s6 + $0xa0] sm:$0xff] }
 0x111   : > { %2253 = vmatprep.mubr.f32.mxu0 %v750_v15 }
 0x114   : > { %2254 = vmatmul.mubr.f32.gmra.mrb[26].mxu0 %v750_v15  ;;  %v806_v15 = vld [vmem:[%s3150_s6 + $0xa8] sm:$0xff] }
 0x115   : > { %2255 = vmatprep.mubr.f32.mxu0 %v751_v16 }
 0x118   : > { %2256 = vmatmul.mubr.f32.gmra.mrb[28].mxu0 %v751_v16  ;;  %v2377_v16 = vpack.c.bf16 %v788_v13, %v787_v12  ;;  %v796_v12 = vld [vmem:[%s3150_s6 + $0x58] sm:$0xff] }
 0x119   : > { %2257 = vmatprep.mubr.f32.mxu0 %v752_v17  ;;  %v2393_v13 = vpack.c.bf16 %v796_v12, %v795_v11 }
 0x11a   : > { %2378 = vmatpush3.bf16.msra.mxu1 %v2377_v16  ;;  %v813_v16 = vld [vmem:[%s3150_s6 + $0xe0] sm:$0xff] }
 0x11c   : > { %2258 = vmatmul.mubr.f32.gmra.mrb[30].mxu0 %v752_v17  ;;  %v2379_v17 = vpack.c.bf16 %v806_v15, %v805_v14 }
 0x11e   : > { %2380 = vmatprep.subr.bf16.mxu1 %v2379_v17  ;;  %v814_v17 = vld [vmem:[%s3150_s6 + $0xe8] sm:$0xff] }
 0x1b3   : > { %v3235_v18 = vpop.f32.mrb[0].mxu0 }
 0x1b4   : > { %v3237_v19 = vpop.f32.mrb[1].mxu0 }
 0x1b5   : > { %v994_v20 = vmax.f32 %v3235_v18, %v3237_v19 }
 0x1b7   : > { %995 = vmax.xlane.f32.xlu0 %v994_v20  ;;  %v3241_v21 = vpop.f32.mrb[2].mxu0  ;;  %v789_v20 = vld [vmem:[%s3150_s6 + $0x20] sm:$0xff] }
 0x1b8   : > { %v3243_v22 = vpop.f32.mrb[3].mxu0 }
 0x1b9   : > { %v997_v23 = vmax.f32 %v3241_v21, %v3243_v22 }
 0x1bb   : > { %998 = vmax.xlane.f32.xlu0 %v997_v23  ;;  %v3247_v24 = vpop.f32.mrb[4].mxu0  ;;  %v790_v23 = vld [vmem:[%s3150_s6 + $0x28] sm:$0xff] }
 0x1bc   : > { %v3249_v25 = vpop.f32.mrb[5].mxu0 }
 0x1bd   : > { %v1000_v26 = vmax.f32 %v3247_v24, %v3249_v25 }
 0x1bf   : > { %1001 = vmax.xlane.f32.xlu1 %v1000_v26  ;;  %v3253_v27 = vpop.f32.mrb[6].mxu0  ;;  %v807_v26 = vld [vmem:[%s3150_s6 + $0xb0] sm:$0xff] }
 0x1c0   : > { %v3255_v28 = vpop.f32.mrb[7].mxu0 }
 0x1c1   : > { %v1003_v29 = vmax.f32 %v3253_v27, %v3255_v28 }
 0x1c3   : > { %1004 = vmax.xlane.f32.xlu1 %v1003_v29  ;;  %v3259_v30 = vpop.f32.mrb[8].mxu0  ;;  %v808_v29 = vld [vmem:[%s3150_s6 + $0xb8] sm:$0xff] }
 0x1c4   : > { %v3261_v31 = vpop.f32.mrb[9].mxu0  ;;  %v2383_v33 = vpack.c.bf16 %v808_v29, %v807_v26  ;;  %v797_v26 = vld [vmem:[%s3150_s6 + $0x60] sm:$0xff]  ;;  %v798_v29 = vld [vmem:[%s3150_s6 + $0x68] sm:$0xff] }
 0x1c5   : > { %v1006_v32 = vmax.f32 %v3259_v30, %v3261_v31 }
 0x1c7   : > { %1007 = vmax.xlane.f32.xlu0 %v1006_v32  ;;  %v3265_v34 = vpop.f32.mrb[10].mxu0  ;;  %v2381_v32 = vpack.c.bf16 %v790_v23, %v789_v20  ;;  %v3378_v20 = vld [vmem:[#allocation2 + $0x18] sm:$0xff]  ;;  %v2395_v23 = vpack.c.bf16 %v814_v17, %v813_v16  ;;  %v3424_v17 = vld [vmem:[#allocation2 + $0x40] sm:$0xff] }
 0x1c8   : > { %v3267_v35 = vpop.f32.mrb[11].mxu0 }
 0x1c9   : > { %v1009_v36 = vmax.f32 %v3265_v34, %v3267_v35  ;;  %2382 = vmatpush3.bf16.msra.mxu1 %v2381_v32  ;;  %v2397_v32 = vpack.c.bf16 %v798_v29, %v797_v26  ;;  %v3432_v29 = vld [vmem:[#allocation2 + $0x48] sm:$0xff] }
 0x1ca   : > { %2384 = vmatprep.subr.bf16.mxu1 %v2383_v33 }
 0x1cb   : > { %1010 = vmax.xlane.f32.xlu1 %v1009_v36  ;;  %v3271_v37 = vpop.f32.mrb[12].mxu0  ;;  %v791_v36 = vld [vmem:[%s3150_s6 + $0x30] sm:$0xff] }
 0x1cc   : > { %v3273_v38 = vpop.f32.mrb[13].mxu0 }
 0x1cd   : > { %v1012_v39 = vmax.f32 %v3271_v37, %v3273_v38 }
 0x1cf   : > { %1013 = vmax.xlane.f32.xlu0 %v1012_v39  ;;  %v3277_v40 = vpop.f32.mrb[14].mxu0  ;;  %v792_v39 = vld [vmem:[%s3150_s6 + $0x38] sm:$0xff] }
 0x1d0   : > { %v3279_v41 = vpop.f32.mrb[15].mxu0 }
 0x1d1   : > { %v1015_v42 = vmax.f32 %v3277_v40, %v3279_v41 }
 0x1d3   : > { %1016 = vmax.xlane.f32.xlu1 %v1015_v42  ;;  %v3283_v43 = vpop.f32.mrb[16].mxu0  ;;  %v2385_v42 = vpack.c.bf16 %v792_v39, %v791_v36  ;;  %v815_v39 = vld [vmem:[%s3150_s6 + $0xf0] sm:$0xff] }
 0x1d4   : > { %v3285_v44 = vpop.f32.mrb[17].mxu0 }
 0x1d5   : > { %v1018_v45 = vmax.f32 %v3283_v43, %v3285_v44  ;;  %2386 = vmatpush3.bf16.msra.mxu1 %v2385_v42  ;;  %v816_v42 = vld [vmem:[%s3150_s6 + $0xf8] sm:$0xff] }
 0x1d7   : > { %1019 = vmax.xlane.f32.xlu0 %v1018_v45  ;;  %v3289_v46 = vpop.f32.mrb[18].mxu0  ;;  %v3347_v45 = vld [vmem:[#allocation2] sm:$0xff] }
 0x1d8   : > { %v3291_v47 = vpop.f32.mrb[19].mxu0 }
 0x1d9   : > { %v1021_v48 = vmax.f32 %v3289_v46, %v3291_v47 }
 0x1db   : > { %1022 = vmax.xlane.f32.xlu1 %v1021_v48  ;;  %v3295_v49 = vpop.f32.mrb[20].mxu0 }
 0x1dc   : > { %v3297_v50 = vpop.f32.mrb[21].mxu0 }
 0x1dd   : > { %v1024_v51 = vmax.f32 %v3295_v49, %v3297_v50 }
 0x1df   : > { %1025 = vmax.xlane.f32.xlu0 %v1024_v51  ;;  %v3301_v52 = vpop.f32.mrb[22].mxu0 }
 0x1e0   : > { %v3303_v53 = vpop.f32.mrb[23].mxu0 }
 0x1e1   : > { %v1027_v54 = vmax.f32 %v3301_v52, %v3303_v53 }
 0x1e3   : > { %1028 = vmax.xlane.f32.xlu1 %v1027_v54  ;;  %v3307_v55 = vpop.f32.mrb[24].mxu0  ;;  %v809_v54 = vld [vmem:[%s3150_s6 + $0xc0] sm:$0xff] }
 0x1e4   : > { %v3309_v56 = vpop.f32.mrb[25].mxu0 }
 0x1e5   : > { %v1030_v57 = vmax.f32 %v3307_v55, %v3309_v56 }
 0x1e7   : > { %1031 = vmax.xlane.f32.xlu0 %v1030_v57  ;;  %v3313_v58 = vpop.f32.mrb[26].mxu0  ;;  %v810_v57 = vld [vmem:[%s3150_s6 + $0xc8] sm:$0xff] }
 0x1e8   : > { %v3315_v59 = vpop.f32.mrb[27].mxu0 }
 0x1e9   : > { %v1033_v60 = vmax.f32 %v3313_v58, %v3315_v59 }
 0x1eb   : > { %1034 = vmax.xlane.f32.xlu1 %v1033_v60  ;;  %v3319_v61 = vpop.f32.mrb[28].mxu0  ;;  %v3354_v60 = vld [vmem:[#allocation2 + $0x8] sm:$0xff] }
 0x1ec   : > { %v3321_v62 = vpop.f32.mrb[29].mxu0 }
 0x1ed   : > { %v1036_v63 = vmax.f32 %v3319_v61, %v3321_v62 }
 0x1ef   : > { %1037 = vmax.xlane.f32.xlu0 %v1036_v63  ;;  %v3325_v0 = vpop.f32.mrb[30].mxu0  ;;  %v2387_v63 = vpack.c.bf16 %v810_v57, %v809_v54  ;;  %v2399_v54 = vpack.c.bf16 %v816_v42, %v815_v39  ;;  %v799_v57 = vld [vmem:[%s3150_s6 + $0x70] sm:$0xff] }
 0x1f0   : > { %v3327_v1 = vpop.f32.mrb[31].mxu0  ;;  %v3440_v39 = vld [vmem:[#allocation2 + $0x50] sm:$0xff] }
 0x1f1   : > { %v1039_v2 = vmax.f32 %v3325_v0, %v3327_v1  ;;  %2388 = vmatprep.subr.bf16.mxu1 %v2387_v63  ;;  %v800_v63 = vld [vmem:[%s3150_s6 + $0x78] sm:$0xff] }
 0x1f3   : > { %1040 = vmax.xlane.f32.xlu1 %v1039_v2  ;;  %v793_v2 = vld [vmem:[%s3150_s6 + $0x40] sm:$0xff] }
 0x1f4   : > { %v2389_v4 = vpack.c.bf16 %v794_v3, %v793_v2  ;;  %v2401_v2 = vpack.c.bf16 %v800_v63, %v799_v57  ;;  %v3448_v57 = vld [vmem:[#allocation2 + $0x58] sm:$0xff] }
 0x1f6   : > { %2390 = vmatpush3.bf16.msra.mxu1 %v2389_v4 }
 0x1f7   : > { %2392 = vmatprep.subr.bf16.mxu1 %v2391_v10  ;;  %v3408_v10 = vld [vmem:[#allocation2 + $0x30] sm:$0xff] }
 0x1fa   : > { %2394 = vmatpush3.bf16.msra.mxu1 %v2393_v13  ;;  %v3416_v13 = vld [vmem:[#allocation2 + $0x38] sm:$0xff] }
 0x1fb   : > { %2396 = vmatprep.subr.bf16.mxu1 %v2395_v23 }
 0x1fe   : > { %2398 = vmatpush3.bf16.msra.mxu1 %v2397_v32 }
 0x1ff   : > { %2400 = vmatprep.subr.bf16.mxu1 %v2399_v54 }
 0x202   : > { %2402 = vmatpush3.bf16.msra.mxu1 %v2401_v2 }
 0x244   : > { %v996_v48 = vpop.xlane.xlu0 %995 }
 0x245   : > { %v3350_v51 = vmax.f32 %v3347_v45, %v996_v48  ;;  %v3390_v48 = vld [vmem:[#allocation2 + $0x20] sm:$0xff] }
 0x247   : > { %1684 = vst.msk [vmem:[#allocation2] sm:$0xff] %vm1378_vm1, %v3350_v51  ;;  %1108 = vperm.xlu0 %2529, %v3350_v51  }
 0x248   : > { %v999_v5 = vpop.xlane.xlu0 %998 }
 0x249   : > { %v3362_v6 = vmax.f32 %v3354_v60, %v999_v5  ;;  %v3400_v5 = vld [vmem:[#allocation2 + $0x28] sm:$0xff] }
 0x24b   : > { %1685 = vst.msk [vmem:[#allocation2 + $0x8] sm:$0xff] %vm1378_vm1, %v3362_v6  ;;  %1113 = vperm.xlu1 %2530, %v3362_v6   ;;  %v1059_v63 = vsub.f32 %v3354_v60, %v3362_v6  ;;  %v3468_v6 = vld [vmem:[#allocation2 + $0x68] sm:$0xff] }
 0x24c   : > { %v1002_v14 = vpop.xlane.xlu1 %1001 }
 0x24d   : > { %v3374_v15 = vmax.f32 %v3366_v9, %v1002_v14 }
 0x24f   : > { %1686 = vst.msk [vmem:[#allocation2 + $0x10] sm:$0xff] %vm1378_vm1, %v3374_v15  ;;  %1118 = vperm.xlu1 %2530, %v3374_v15  }
 0x250   : > { %v1005_v33 = vpop.xlane.xlu1 %1004 }
 0x251   : > { %v3386_v36 = vmax.f32 %v3378_v20, %v1005_v33 }
 0x253   : > { %1687 = vst.msk [vmem:[#allocation2 + $0x18] sm:$0xff] %vm1378_vm1, %v3386_v36  ;;  %1123 = vperm.xlu1 %2530, %v3386_v36  }
 0x254   : > { %v1008_v3 = vpop.xlane.xlu0 %1007 }
 0x255   : > { %v3398_v4 = vmax.f32 %v3390_v48, %v1008_v3 }
 0x257   : > { %1688 = vst.msk [vmem:[#allocation2 + $0x20] sm:$0xff] %vm1378_vm1, %v3398_v4  ;;  %1128 = vperm.xlu1 %2530, %v3398_v4  }
 0x258   : > { %v1011_v7 = vpop.xlane.xlu1 %1010 }
 0x259   : > { %v3406_v8 = vmax.f32 %v3400_v5, %v1011_v7  ;;  %v3458_v7 = vld [vmem:[#allocation2 + $0x60] sm:$0xff] }
 0x25b   : > { %1689 = vst.msk [vmem:[#allocation2 + $0x28] sm:$0xff] %vm1378_vm1, %v3406_v8  ;;  %1133 = vperm.xlu1 %2530, %v3406_v8  }
 0x25c   : > { %v1014_v11 = vpop.xlane.xlu0 %1013 }
 0x25d   : > { %v3414_v12 = vmax.f32 %v3408_v10, %v1014_v11  ;;  %v1058_v11 = vsub.f32 %v3347_v45, %v3350_v51  ;;  %v1062_v51 = vsub.f32 %v3390_v48, %v3398_v4  ;;  %v3486_v4 = vld [vmem:[#allocation2 + $0x78] sm:$0xff] }
 0x25f   : > { %1690 = vst.msk [vmem:[#allocation2 + $0x30] sm:$0xff] %vm1378_vm1, %v3414_v12  ;;  %1138 = vperm.xlu1 %2530, %v3414_v12  }
 0x260   : > { %v1017_v14 = vpop.xlane.xlu1 %1016 }
 0x261   : > { %v3422_v16 = vmax.f32 %v3416_v13, %v1017_v14  ;;  %v1076_v14 = vmul.f32 1.442695, %v1059_v63 }
 0x263   : > { %1691 = vst.msk [vmem:[#allocation2 + $0x38] sm:$0xff] %vm1378_vm1, %v3422_v16  ;;  %1143 = vperm.xlu1 %2530, %v3422_v16   ;;  %2531 = vpow2.f32 %v1076_v14 }
 0x264   : > { %v1020_v23 = vpop.xlane.xlu0 %1019 }
 0x265   : > { %v3430_v26 = vmax.f32 %v3424_v17, %v1020_v23  ;;  %v1060_v23 = vsub.f32 %v3366_v9, %v3374_v15  ;;  %v3476_v15 = vld [vmem:[#allocation2 + $0x70] sm:$0xff] }
 0x267   : > { %1692 = vst.msk [vmem:[#allocation2 + $0x40] sm:$0xff] %vm1378_vm1, %v3430_v26  ;;  %1148 = vperm.xlu1 %2530, %v3430_v26   ;;  %v1078_v45 = vmul.f32 1.442695, %v1060_v23 }
 0x268   : > { %v1023_v32 = vpop.xlane.xlu1 %1022 }
 0x269   : > { %v3438_v33 = vmax.f32 %v3432_v29, %v1023_v32 }
 0x26b   : > { %1693 = vst.msk [vmem:[#allocation2 + $0x48] sm:$0xff] %vm1378_vm1, %v3438_v33  ;;  %1153 = vperm.xlu0 %2529, %v3438_v33  }
 0x26c   : > { %v1026_v42 = vpop.xlane.xlu0 %1025 }
 0x26d   : > { %v3446_v54 = vmax.f32 %v3440_v39, %v1026_v42  ;;  %v1074_v42 = vmul.f32 1.442695, %v1058_v11  ;;  %v1063_v11 = vsub.f32 %v3400_v5, %v3406_v8 }
 0x26f   : > { %1694 = vst.msk [vmem:[#allocation2 + $0x50] sm:$0xff] %vm1378_vm1, %v3446_v54  ;;  %1158 = vperm.xlu1 %2530, %v3446_v54   ;;  %2533 = vpow2.f32 %v1074_v42  ;;  %v1084_v23 = vmul.f32 1.442695, %v1063_v11  ;;  %v1065_v42 = vsub.f32 %v3416_v13, %v3422_v16  ;;  %v1067_v16 = vsub.f32 %v3432_v29, %v3438_v33 }
 0x270   : > { %v1029_v2 = vpop.xlane.xlu1 %1028  ;;  %2535 = vpow2.f32 %v1078_v45  ;;  %v3500_v45 = vpop.eup %2531 }
 0x271   : > { %v3456_v3 = vmax.f32 %v3448_v57, %v1029_v2  ;;  %v1061_v2 = vsub.f32 %v3378_v20, %v3386_v36  ;;  %v1082_v20 = vmul.f32 1.442695, %v1062_v51  ;;  %v1064_v36 = vsub.f32 %v3408_v10, %v3414_v12 }
 0x272   : > { %v1066_v10 = vsub.f32 %v3424_v17, %v3430_v26  ;;  %v1088_v13 = vmul.f32 1.442695, %v1065_v42  ;;  %v1068_v26 = vsub.f32 %v3440_v39, %v3446_v54  ;;  %v1092_v29 = vmul.f32 1.442695, %v1067_v16 }
 0x273   : > { %1695 = vst.msk [vmem:[#allocation2 + $0x58] sm:$0xff] %vm1378_vm1, %v3456_v3  ;;  %1163 = vperm.xlu0 %2529, %v3456_v3   ;;  %v1086_v8 = vmul.f32 1.442695, %v1064_v36  ;;  %v1069_v33 = vsub.f32 %v3448_v57, %v3456_v3 }
 0x274   : > { %v1032_v32 = vpop.xlane.xlu0 %1031  ;;  %v1090_v17 = vmul.f32 1.442695, %v1066_v10  ;;  %v1094_v11 = vmul.f32 1.442695, %v1068_v26 }
 0x275   : > { %v1054_v60 = vmax.f32 %v3458_v7, %v1032_v32  ;;  %v1080_v32 = vmul.f32 1.442695, %v1061_v2  ;;  %v1096_v54 = vmul.f32 1.442695, %v1069_v33 }
 0x277   : > { %1696 = vst.msk [vmem:[#allocation2 + $0x60] sm:$0xff] %vm1378_vm1, %v1054_v60  ;;  %1168 = vperm.xlu1 %2530, %v1054_v60   ;;  %2537 = vpow2.f32 %v1080_v32 }
 0x278   : > { %v1035_v63 = vpop.xlane.xlu1 %1034  ;;  %2539 = vpow2.f32 %v1082_v20  ;;  %v1070_v20 = vsub.f32 %v3458_v7, %v1054_v60 }
 0x279   : > { %v1055_v9 = vmax.f32 %v3468_v6, %v1035_v63  ;;  %2541 = vpow2.f32 %v1084_v23  ;;  %v3512_v63 = vpop.eup %2533 }
 0x27a   : > { %2543 = vpow2.f32 %v1086_v8  ;;  %v3514_v32 = vpop.eup %2535  ;;  %v1098_v57 = vmul.f32 1.442695, %v1070_v20 }
 0x27b   : > { %1697 = vst.msk [vmem:[#allocation2 + $0x68] sm:$0xff] %vm1378_vm1, %v1055_v9  ;;  %1173 = vperm.xlu0 %2529, %v1055_v9   ;;  %2545 = vpow2.f32 %v1088_v13  ;;  %v1071_v3 = vsub.f32 %v3468_v6, %v1055_v9 }
 0x27c   : > { %v1038_v14 = vpop.xlane.xlu0 %1037  ;;  %2547 = vpow2.f32 %v1090_v17 }
 0x27d   : > { %v3484_v48 = vmax.f32 %v3476_v15, %v1038_v14  ;;  %2549 = vpow2.f32 %v1092_v29  ;;  %v1100_v7 = vmul.f32 1.442695, %v1071_v3 }
 0x27e   : > { %2551 = vpow2.f32 %v1094_v11 }
 0x27f   : > { %v1072_v5 = vsub.f32 %v3476_v15, %v3484_v48  ;;  %1698 = vst.msk [vmem:[#allocation2 + $0x70] sm:$0xff] %vm1378_vm1, %v3484_v48  ;;  %1178 = vperm.xlu1 %2530, %v3484_v48   ;;  %2553 = vpow2.f32 %v1096_v54 }
 0x280   : > { %v1041_v12 = vpop.xlane.xlu1 %1040  ;;  %2555 = vpow2.f32 %v1098_v57 }
 0x281   : > { %v3498_v2 = vmax.f32 %v3486_v4, %v1041_v12  ;;  %v3521_v36 = vpop.eup %2537  ;;  %2557 = vpow2.f32 %v1100_v7 }
 0x282   : > { %v3523_v39 = vpop.eup %2539 }
 0x283   : > { %1699 = vst.msk [vmem:[#allocation2 + $0x78] sm:$0xff] %vm1378_vm1, %v3498_v2  ;;  %1418 = vperm.xlu1 %2530, %v3500_v45   ;;  %1183 = vperm.xlu0 %2529, %v3498_v2   ;;  %v3528_v14 = vpop.eup %2541 }
 0x284   : > { %v3530_v23 = vpop.eup %2543 }
 0x285   : > { %v3534_v60 = vpop.eup %2545 }
 0x286   : > { %v3536_v42 = vpop.eup %2547 }
 0x287   : > { %1423 = vperm.xlu1 %2530, %v3514_v32   ;;  %1413 = vperm.xlu0 %2529, %v3512_v63   ;;  %v3540_v6 = vpop.eup %2549 }
 0x288   : > { %v3542_v9 = vpop.eup %2551 }
 0x289   : > { %v3546_v8 = vpop.eup %2553 }
 0x28a   : > { %v3548_v10 = vpop.eup %2555 }
 0x28b   : > { %1433 = vperm.xlu1 %2530, %v3523_v39   ;;  %1428 = vperm.xlu0 %2529, %v3521_v36   ;;  %v3552_v12 = vpop.eup %2557 }
 0x28f   : > { %1443 = vperm.xlu1 %2530, %v3530_v23   ;;  %1438 = vperm.xlu0 %2529, %v3528_v14  }
 0x293   : > { %1453 = vperm.xlu1 %2530, %v3536_v42   ;;  %1448 = vperm.xlu0 %2529, %v3534_v60  }
 0x297   : > { %1463 = vperm.xlu1 %2530, %v3542_v9   ;;  %1458 = vperm.xlu0 %2529, %v3540_v6  }
 0x29b   : > { %1473 = vperm.xlu1 %2530, %v3548_v10   ;;  %1468 = vperm.xlu0 %2529, %v3546_v8  }
 0x29f   : > { %1478 = vperm.xlu0 %2529, %v3552_v12  }
 0x2c6   : > { %v1109_v13 = vpop.permute.xlu0 %1108 }
 0x2c7   : > { %v1186_v16 = vsub.f32 %v3235_v18, %v1109_v13  ;;  %v1187_v17 = vsub.f32 %v3237_v19, %v1109_v13 }
 0x2c9   : > { %v1218_v26 = vmul.f32 1.442695, %v1186_v16  ;;  %v1220_v29 = vmul.f32 1.442695, %v1187_v17 }
 0x2ca   : > { %v1114_v33 = vpop.permute.xlu1 %1113 }
 0x2cb   : > { %2559 = vpow2.f32 %v1218_v26  ;;  %v1188_v11 = vsub.f32 %v3241_v21, %v1114_v33  ;;  %v1189_v20 = vsub.f32 %v3243_v22, %v1114_v33 }
 0x2cc   : > { %2561 = vpow2.f32 %v1220_v29 }
 0x2cd   : > { %v1222_v54 = vmul.f32 1.442695, %v1188_v11  ;;  %v1224_v57 = vmul.f32 1.442695, %v1189_v20 }
 0x2ce   : > { %v1119_v3 = vpop.permute.xlu1 %1118 }
 0x2cf   : > { %2563 = vpow2.f32 %v1222_v54  ;;  %v1190_v7 = vsub.f32 %v3247_v24, %v1119_v3  ;;  %v1191_v51 = vsub.f32 %v3249_v25, %v1119_v3 }
 0x2d0   : > { %2565 = vpow2.f32 %v1224_v57 }
 0x2d1   : > { %v1226_v18 = vmul.f32 1.442695, %v1190_v7  ;;  %v1228_v19 = vmul.f32 1.442695, %v1191_v51 }
 0x2d2   : > { %v1124_v13 = vpop.permute.xlu1 %1123 }
 0x2d3   : > { %2567 = vpow2.f32 %v1226_v18  ;;  %v1192_v16 = vsub.f32 %v3253_v27, %v1124_v13  ;;  %v1193_v21 = vsub.f32 %v3255_v28, %v1124_v13 }
 0x2d4   : > { %2569 = vpow2.f32 %v1228_v19 }
 0x2d5   : > { %v2560_v22 = vpop.eup %2559  ;;  %v1230_v17 = vmul.f32 1.442695, %v1192_v16  ;;  %v1232_v26 = vmul.f32 1.442695, %v1193_v21 }
 0x2d6   : > { %v2562_v29 = vpop.eup %2561  ;;  %v1129_v33 = vpop.permute.xlu1 %1128 }
 0x2d7   : > { %2571 = vpow2.f32 %v1230_v17  ;;  %1571 = vmatprep.mubr.f32.mxu1 %v2562_v29  ;;  %v1194_v24 = vsub.f32 %v3259_v30, %v1129_v33  ;;  %v1195_v25 = vsub.f32 %v3261_v31, %v1129_v33  ;;  %v1314_v11 = vadd.f32 %v2562_v29, %v2560_v22 }
 0x2d8   : > { %2573 = vpow2.f32 %v1232_v26  ;;  %1572 = vmatmul.mubr.f32.vlgmr.msra.gmra.mrb[0].mxu1 %v2560_v22 }
 0x2d9   : > { %v2564_v51 = vpop.eup %2563  ;;  %v1234_v20 = vmul.f32 1.442695, %v1194_v24  ;;  %v1236_v27 = vmul.f32 1.442695, %v1195_v25  ;;  %1315 = vadd.xlane.f32.xlu1 %v1314_v11 }
 0x2da   : > { %v2566_v28 = vpop.eup %2565  ;;  %v1134_v54 = vpop.permute.xlu1 %1133 }
 0x2db   : > { %2575 = vpow2.f32 %v1234_v20  ;;  %1576 = vmatprep.mubr.f32.mxu1 %v2566_v28  ;;  %v1196_v57 = vsub.f32 %v3265_v34, %v1134_v54  ;;  %v1197_v3 = vsub.f32 %v3267_v35, %v1134_v54  ;;  %v1317_v7 = vadd.f32 %v2566_v28, %v2564_v51 }
 0x2dc   : > { %2577 = vpow2.f32 %v1236_v27  ;;  %1577 = vmatmul.mubr.f32.gmra.mrb[2].mxu1 %v2564_v51 }
 0x2dd   : > { %v2568_v30 = vpop.eup %2567  ;;  %v1238_v31 = vmul.f32 1.442695, %v1196_v57  ;;  %v1240_v18 = vmul.f32 1.442695, %v1197_v3  ;;  %1318 = vadd.xlane.f32.xlu0 %v1317_v7 }
 0x2de   : > { %v2570_v19 = vpop.eup %2569  ;;  %v1139_v13 = vpop.permute.xlu1 %1138 }
 0x2df   : > { %2579 = vpow2.f32 %v1238_v31  ;;  %1581 = vmatprep.mubr.f32.mxu1 %v2570_v19  ;;  %v1198_v16 = vsub.f32 %v3271_v37, %v1139_v13  ;;  %v1199_v21 = vsub.f32 %v3273_v38, %v1139_v13  ;;  %v1320_v22 = vadd.f32 %v2570_v19, %v2568_v30 }
 0x2e0   : > { %2581 = vpow2.f32 %v1240_v18  ;;  %1582 = vmatmul.mubr.f32.gmra.mrb[4].mxu1 %v2568_v30 }
 0x2e1   : > { %v2572_v34 = vpop.eup %2571  ;;  %v1242_v35 = vmul.f32 1.442695, %v1198_v16  ;;  %v1244_v17 = vmul.f32 1.442695, %v1199_v21  ;;  %1321 = vadd.xlane.f32.xlu0 %v1320_v22 }
 0x2e2   : > { %v2574_v26 = vpop.eup %2573  ;;  %v1144_v29 = vpop.permute.xlu1 %1143 }
 0x2e3   : > { %2583 = vpow2.f32 %v1242_v35  ;;  %1586 = vmatprep.mubr.f32.mxu1 %v2574_v26  ;;  %v1200_v33 = vsub.f32 %v3277_v40, %v1144_v29  ;;  %v1201_v24 = vsub.f32 %v3279_v41, %v1144_v29  ;;  %v1323_v25 = vadd.f32 %v2574_v26, %v2572_v34 }
 0x2e4   : > { %2585 = vpow2.f32 %v1244_v17  ;;  %1587 = vmatmul.mubr.f32.gmra.mrb[6].mxu1 %v2572_v34 }
 0x2e5   : > { %v2576_v37 = vpop.eup %2575  ;;  %v1246_v38 = vmul.f32 1.442695, %v1200_v33  ;;  %v1248_v11 = vmul.f32 1.442695, %v1201_v24  ;;  %1324 = vadd.xlane.f32.xlu1 %v1323_v25 }
 0x2e6   : > { %v2578_v51 = vpop.eup %2577  ;;  %v1149_v20 = vpop.permute.xlu1 %1148 }
 0x2e7   : > { %2587 = vpow2.f32 %v1246_v38  ;;  %1591 = vmatprep.mubr.f32.mxu1 %v2578_v51  ;;  %v1202_v27 = vsub.f32 %v3283_v43, %v1149_v20  ;;  %v1203_v28 = vsub.f32 %v3285_v44, %v1149_v20  ;;  %v1326_v54 = vadd.f32 %v2578_v51, %v2576_v37 }
 0x2e8   : > { %2589 = vpow2.f32 %v1248_v11  ;;  %1592 = vmatmul.mubr.f32.gmra.mrb[8].mxu1 %v2576_v37 }
 0x2e9   : > { %v2580_v40 = vpop.eup %2579  ;;  %v1250_v41 = vmul.f32 1.442695, %v1202_v27  ;;  %v1252_v57 = vmul.f32 1.442695, %v1203_v28  ;;  %1327 = vadd.xlane.f32.xlu0 %v1326_v54 }
 0x2ea   : > { %v2582_v3 = vpop.eup %2581  ;;  %v1154_v7 = vpop.permute.xlu0 %1153 }
 0x2eb   : > { %2591 = vpow2.f32 %v1250_v41  ;;  %v1204_v30 = vsub.f32 %v3289_v46, %v1154_v7  ;;  %v1205_v31 = vsub.f32 %v3291_v47, %v1154_v7  ;;  %1596 = vmatprep.mubr.f32.mxu1 %v2582_v3  ;;  %v1329_v18 = vadd.f32 %v2582_v3, %v2580_v40 }
 0x2ec   : > { %2593 = vpow2.f32 %v1252_v57  ;;  %1597 = vmatmul.mubr.f32.gmra.mrb[10].mxu1 %v2580_v40 }
 0x2ed   : > { %v2584_v43 = vpop.eup %2583  ;;  %v1254_v44 = vmul.f32 1.442695, %v1204_v30  ;;  %v1256_v19 = vmul.f32 1.442695, %v1205_v31  ;;  %1330 = vadd.xlane.f32.xlu1 %v1329_v18 }
 0x2ee   : > { %v2586_v13 = vpop.eup %2585  ;;  %v1159_v16 = vpop.permute.xlu1 %1158 }
 0x2ef   : > { %2595 = vpow2.f32 %v1254_v44  ;;  %1601 = vmatprep.mubr.f32.mxu1 %v2586_v13  ;;  %v1206_v21 = vsub.f32 %v3295_v49, %v1159_v16  ;;  %v1207_v22 = vsub.f32 %v3297_v50, %v1159_v16  ;;  %v1332_v34 = vadd.f32 %v2586_v13, %v2584_v43 }
 0x2f0   : > { %2597 = vpow2.f32 %v1256_v19  ;;  %1602 = vmatmul.mubr.f32.gmra.mrb[12].mxu1 %v2584_v43 }
 0x2f1   : > { %v2588_v46 = vpop.eup %2587  ;;  %v1258_v47 = vmul.f32 1.442695, %v1206_v21  ;;  %v1260_v35 = vmul.f32 1.442695, %v1207_v22  ;;  %1333 = vadd.xlane.f32.xlu0 %v1332_v34 }
 0x2f2   : > { %v2590_v17 = vpop.eup %2589  ;;  %v1164_v26 = vpop.permute.xlu0 %1163 }
 0x2f3   : > { %2599 = vpow2.f32 %v1258_v47  ;;  %v1208_v29 = vsub.f32 %v3301_v52, %v1164_v26  ;;  %v1209_v33 = vsub.f32 %v3303_v53, %v1164_v26  ;;  %1606 = vmatprep.mubr.f32.mxu1 %v2590_v17  ;;  %v1335_v24 = vadd.f32 %v2590_v17, %v2588_v46 }
 0x2f4   : > { %2601 = vpow2.f32 %v1260_v35  ;;  %1607 = vmatmul.mubr.f32.gmra.mrb[14].mxu1 %v2588_v46 }
 0x2f5   : > { %v2592_v49 = vpop.eup %2591  ;;  %v1262_v50 = vmul.f32 1.442695, %v1208_v29  ;;  %v1264_v25 = vmul.f32 1.442695, %v1209_v33  ;;  %1336 = vadd.xlane.f32.xlu1 %v1335_v24 }
 0x2f6   : > { %v2594_v37 = vpop.eup %2593  ;;  %v1169_v38 = vpop.permute.xlu1 %1168 }
 0x2f7   : > { %2603 = vpow2.f32 %v1262_v50  ;;  %1611 = vmatprep.mubr.f32.mxu1 %v2594_v37  ;;  %v1210_v11 = vsub.f32 %v3307_v55, %v1169_v38  ;;  %v1211_v51 = vsub.f32 %v3309_v56, %v1169_v38  ;;  %v1338_v20 = vadd.f32 %v2594_v37, %v2592_v49 }
 0x2f8   : > { %2605 = vpow2.f32 %v1264_v25  ;;  %1612 = vmatmul.mubr.f32.gmra.mrb[16].mxu1 %v2592_v49  ;;  %v1102_v50 = vmul.f32 1.442695, %v1072_v5  ;;  %v3796_v25 = vsub.f32 %v3486_v4, %v3498_v2 }
 0x2f9   : > { %v2596_v52 = vpop.eup %2595  ;;  %v1266_v53 = vmul.f32 1.442695, %v1210_v11  ;;  %v1268_v27 = vmul.f32 1.442695, %v1211_v51  ;;  %1339 = vadd.xlane.f32.xlu0 %v1338_v20 }
 0x2fa   : > { %v2598_v28 = vpop.eup %2597  ;;  %v1174_v54 = vpop.permute.xlu0 %1173  ;;  %v1104_v37 = vmul.f32 1.442695, %v3796_v25  ;;  %v1292_v25 = vld [vmem:[#allocation3 + $0x50] sm:$0xff] }
 0x2fb   : > { %2607 = vpow2.f32 %v1266_v53  ;;  %v1212_v40 = vsub.f32 %v3313_v58, %v1174_v54  ;;  %v1213_v41 = vsub.f32 %v3315_v59, %v1174_v54  ;;  %1616 = vmatprep.mubr.f32.mxu1 %v2598_v28  ;;  %v1341_v57 = vadd.f32 %v2598_v28, %v2596_v52 }
 0x2fc   : > { %2609 = vpow2.f32 %v1268_v27  ;;  %1617 = vmatmul.mubr.f32.gmra.mrb[18].mxu1 %v2596_v52 }
 0x2fd   : > { %v2600_v55 = vpop.eup %2599  ;;  %v1270_v56 = vmul.f32 1.442695, %v1212_v40  ;;  %v1272_v3 = vmul.f32 1.442695, %v1213_v41  ;;  %1342 = vadd.xlane.f32.xlu1 %v1341_v57  ;;  %v1282_v41 = vld [vmem:[#allocation3] sm:$0xff] }
 0x2fe   : > { %v2602_v7 = vpop.eup %2601  ;;  %v1179_v30 = vpop.permute.xlu1 %1178  ;;  %v1298_v57 = vmul.f32 %v3512_v63, %v1282_v41 }
 0x2ff   : > { %2611 = vpow2.f32 %v1270_v56  ;;  %1621 = vmatprep.mubr.f32.mxu1 %v2602_v7  ;;  %v1214_v31 = vsub.f32 %v3319_v61, %v1179_v30  ;;  %v1215_v18 = vsub.f32 %v3321_v62, %v1179_v30  ;;  %v1344_v43 = vadd.f32 %v2602_v7, %v2600_v55 }
 0x300   : > { %2613 = vpow2.f32 %v1272_v3  ;;  %1622 = vmatmul.mubr.f32.gmra.mrb[20].mxu1 %v2600_v55  ;;  %v1283_v3 = vld [vmem:[#allocation3 + $0x8] sm:$0xff] }
 0x301   : > { %v2604_v58 = vpop.eup %2603  ;;  %v1274_v59 = vmul.f32 1.442695, %v1214_v31  ;;  %v1276_v44 = vmul.f32 1.442695, %v1215_v18  ;;  %1345 = vadd.xlane.f32.xlu0 %v1344_v43  ;;  %v1299_v30 = vmul.f32 %v3500_v45, %v1283_v3  ;;  %v1284_v18 = vld [vmem:[#allocation3 + $0x10] sm:$0xff]  ;;  %v1294_v3 = vld [vmem:[#allocation3 + $0x60] sm:$0xff] }
 0x302   : > { %v2606_v19 = vpop.eup %2605  ;;  %v1184_v13 = vpop.permute.xlu0 %1183 }
 0x303   : > { %2615 = vpow2.f32 %v1274_v59  ;;  %v1216_v16 = vsub.f32 %v3325_v0, %v1184_v13  ;;  %v1217_v21 = vsub.f32 %v3327_v1, %v1184_v13  ;;  %1626 = vmatprep.mubr.f32.mxu1 %v2606_v19  ;;  %v1347_v61 = vadd.f32 %v2606_v19, %v2604_v58  ;;  %v3599_v51 = vpop.permute.xlu1 %1418 }
 0x304   : > { %2617 = vpow2.f32 %v1276_v44  ;;  %1627 = vmatmul.mubr.f32.gmra.mrb[22].mxu1 %v2604_v58  ;;  %v1300_v58 = vmul.f32 %v3514_v32, %v1284_v18  ;;  %v1285_v44 = vld [vmem:[#allocation3 + $0x18] sm:$0xff]  ;;  %v1295_v18 = vld [vmem:[#allocation3 + $0x68] sm:$0xff] }
 0x305   : > { %v2608_v22 = vpop.eup %2607  ;;  %v1278_v62 = vmul.f32 1.442695, %v1216_v16  ;;  %v1280_v34 = vmul.f32 1.442695, %v1217_v21  ;;  %1348 = vadd.xlane.f32.xlu1 %v1347_v61  ;;  %v1301_v63 = vmul.f32 %v3521_v36, %v1285_v44  ;;  %v1286_v16 = vld [vmem:[#allocation3 + $0x20] sm:$0xff] }
 0x306   : > { %v2610_v46 = vpop.eup %2609  ;;  %v3601_v20 = vpop.permute.xlu0 %1413  ;;  %v1302_v45 = vmul.f32 %v3523_v39, %v1286_v16 }
 0x307   : > { %2619 = vpow2.f32 %v1278_v62  ;;  %1631 = vmatprep.mubr.f32.mxu1 %v2610_v46  ;;  %v1350_v47 = vadd.f32 %v2610_v46, %v2608_v22  ;;  %v3603_v15 = vpop.permute.xlu1 %1423  ;;  %v1288_v46 = vld [vmem:[#allocation3 + $0x30] sm:$0xff] }
 0x308   : > { %2621 = vpow2.f32 %v1280_v34  ;;  %1632 = vmatmul.mubr.f32.gmra.mrb[24].mxu1 %v2608_v22  ;;  %v1287_v22 = vld [vmem:[#allocation3 + $0x28] sm:$0xff]  ;;  %v1304_v36 = vmul.f32 %v3530_v23, %v1288_v46 }
 0x309   : > { %v2612_v35 = vpop.eup %2611  ;;  %1351 = vadd.xlane.f32.xlu0 %v1350_v47  ;;  %2623 = vpow2.f32 %v1102_v50  ;;  %v1303_v32 = vmul.f32 %v3528_v14, %v1287_v22 }
 0x30a   : > { %v2614_v17 = vpop.eup %2613  ;;  %2625 = vpow2.f32 %v1104_v37  ;;  %v3605_v48 = vpop.permute.xlu0 %1428 }
 0x30b   : > { %1636 = vmatprep.mubr.f32.mxu1 %v2614_v17  ;;  %v1353_v0 = vadd.f32 %v2614_v17, %v2612_v35  ;;  %v3607_v4 = vpop.permute.xlu1 %1433  ;;  %v1289_v17 = vld [vmem:[#allocation3 + $0x38] sm:$0xff] }
 0x30c   : > { %1637 = vmatmul.mubr.f32.gmra.mrb[26].mxu1 %v2612_v35  ;;  %v1305_v39 = vmul.f32 %v3534_v60, %v1289_v17  ;;  %v1308_v60 = vmul.f32 %v3542_v9, %v1292_v25  ;;  %v1311_v9 = vmul.f32 %v3552_v12, %v1295_v18  ;;  %v1402_v18 = vld [vmem:[#allocation4 + $0x38] sm:$0xff] }
 0x30d   : > { %v2616_v1 = vpop.eup %2615  ;;  %1354 = vadd.xlane.f32.xlu1 %v1353_v0 }
 0x30e   : > { %v2618_v26 = vpop.eup %2617  ;;  %v3609_v5 = vpop.permute.xlu0 %1438 }
 0x30f   : > { %1641 = vmatprep.mubr.f32.mxu1 %v2618_v26  ;;  %v1356_v29 = vadd.f32 %v2618_v26, %v2616_v1  ;;  %v3611_v2 = vpop.permute.xlu1 %1443  ;;  %v1290_v26 = vld [vmem:[#allocation3 + $0x40] sm:$0xff] }
 0x310   : > { %1642 = vmatmul.mubr.f32.gmra.mrb[28].mxu1 %v2616_v1  ;;  %v1306_v14 = vmul.f32 %v3536_v42, %v1290_v26  ;;  %v1398_v26 = vld [vmem:[#allocation4 + $0x18] sm:$0xff] }
 0x311   : > { %v2620_v33 = vpop.eup %2619  ;;  %1357 = vadd.xlane.f32.xlu0 %v1356_v29 }
 0x312   : > { %v2622_v24 = vpop.eup %2621  ;;  %v3613_v52 = vpop.permute.xlu0 %1448 }
 0x313   : > { %1646 = vmatprep.mubr.f32.mxu1 %v2622_v24  ;;  %v1359_v49 = vadd.f32 %v2622_v24, %v2620_v33  ;;  %v3593_v38 = vpop.eup %2623  ;;  %v3615_v53 = vpop.permute.xlu1 %1453  ;;  %v1291_v24 = vld [vmem:[#allocation3 + $0x48] sm:$0xff] }
 0x314   : > { %1647 = vmatmul.mubr.f32.gmra.mrb[30].mxu1 %v2620_v33  ;;  %v3595_v11 = vpop.eup %2625  ;;  %v1307_v23 = vmul.f32 %v3540_v6, %v1291_v24 }
 0x315   : > { %1360 = vadd.xlane.f32.xlu1 %v1359_v49 }
 0x316   : > { %v3617_v27 = vpop.permute.xlu0 %1458 }
 0x317   : > { %v3619_v28 = vpop.permute.xlu1 %1463 }
 0x31a   : > { %v3621_v54 = vpop.permute.xlu0 %1468 }
 0x31b   : > { %v3623_v40 = vpop.permute.xlu1 %1473 }
 0x31e   : > { %v3626_v55 = vpop.permute.xlu0 %1478 }
 0x326   : > { %1483 = vperm.xlu1 %2530, %v3593_v38  }
 0x327   : > { %1488 = vperm.xlu0 %2529, %v3595_v11  }
 0x366   : > { %v1316_v56 = vpop.xlane.xlu1 %1315 }
 0x367   : > { %v1362_v7 = vadd.f32 %v1316_v56, %v1298_v57  ;;  %v1293_v56 = vld [vmem:[#allocation3 + $0x58] sm:$0xff] }
 0x368   : > { %v1309_v42 = vmul.f32 %v3546_v8, %v1293_v56 }
 0x369   : > { %1379 = vst.msk [vmem:[#allocation3] sm:$0xff] %vm1378_vm1, %v1362_v7 }
 0x36a   : > { %v1319_v31 = vpop.xlane.xlu0 %1318 }
 0x36b   : > { %v1363_v43 = vadd.f32 %v1319_v31, %v1299_v30  ;;  %v1310_v31 = vmul.f32 %v3548_v10, %v1294_v3  ;;  %v1401_v3 = vld [vmem:[#allocation4 + $0x30] sm:$0xff] }
 0x36d   : > { %1380 = vst.msk [vmem:[#allocation3 + $0x8] sm:$0xff] %vm1378_vm1, %v1363_v43 }
 0x36e   : > { %v1322_v59 = vpop.xlane.xlu0 %1321 }
 0x36f   : > { %v1364_v19 = vadd.f32 %v1322_v59, %v1300_v58  ;;  %v1296_v59 = vld [vmem:[#allocation3 + $0x70] sm:$0xff] }
 0x370   : > { %v1312_v8 = vmul.f32 %v3593_v38, %v1296_v59 }
 0x371   : > { %1381 = vst.msk [vmem:[#allocation3 + $0x10] sm:$0xff] %vm1378_vm1, %v1364_v19 }
 0x372   : > { %v1325_v13 = vpop.xlane.xlu1 %1324 }
 0x373   : > { %v1365_v21 = vadd.f32 %v1325_v13, %v1301_v63  ;;  %v1297_v63 = vld [vmem:[#allocation3 + $0x78] sm:$0xff] }
 0x374   : > { %v1313_v10 = vmul.f32 %v3595_v11, %v1297_v63 }
 0x375   : > { %1382 = vst.msk [vmem:[#allocation3 + $0x18] sm:$0xff] %vm1378_vm1, %v1365_v21 }
 0x376   : > { %v1328_v61 = vpop.xlane.xlu0 %1327 }
 0x377   : > { %v1366_v62 = vadd.f32 %v1328_v61, %v1302_v45  ;;  %v1395_v45 = vld [vmem:[#allocation4] sm:$0xff] }
 0x378   : > { %v1491_v22 = vmul.f32 %v3601_v20, %v1395_v45 }
 0x379   : > { %1383 = vst.msk [vmem:[#allocation3 + $0x20] sm:$0xff] %vm1378_vm1, %v1366_v62 }
 0x37a   : > { %v1331_v34 = vpop.xlane.xlu1 %1330 }
 0x37b   : > { %v1367_v47 = vadd.f32 %v1331_v34, %v1303_v32  ;;  %v1396_v32 = vld [vmem:[#allocation4 + $0x8] sm:$0xff] }
 0x37d   : > { %1384 = vst.msk [vmem:[#allocation3 + $0x28] sm:$0xff] %vm1378_vm1, %v1367_v47  ;;  %v1492_v47 = vmul.f32 %v3599_v51, %v1396_v32 }
 0x37e   : > { %v1334_v35 = vpop.xlane.xlu0 %1333 }
 0x37f   : > { %v1368_v0 = vadd.f32 %v1334_v35, %v1304_v36  ;;  %v1397_v35 = vld [vmem:[#allocation4 + $0x10] sm:$0xff] }
 0x381   : > { %1385 = vst.msk [vmem:[#allocation3 + $0x30] sm:$0xff] %vm1378_vm1, %v1368_v0 }
 0x382   : > { %v1337_v1 = vpop.xlane.xlu1 %1336 }
 0x383   : > { %v1369_v29 = vadd.f32 %v1337_v1, %v1305_v39  ;;  %v1493_v39 = vmul.f32 %v3603_v15, %v1397_v35 }
 0x385   : > { %1386 = vst.msk [vmem:[#allocation3 + $0x38] sm:$0xff] %vm1378_vm1, %v1369_v29 }
 0x386   : > { %v1340_v33 = vpop.xlane.xlu0 %1339 }
 0x387   : > { %v1370_v49 = vadd.f32 %v1340_v33, %v1306_v14  ;;  %v1494_v33 = vmul.f32 %v3605_v48, %v1398_v26  ;;  %v1408_v26 = vld [vmem:[#allocation4 + $0x68] sm:$0xff] }
 0x389   : > { %1387 = vst.msk [vmem:[#allocation3 + $0x40] sm:$0xff] %vm1378_vm1, %v1370_v49  ;;  %v1399_v49 = vld [vmem:[#allocation4 + $0x20] sm:$0xff] }
 0x38a   : > { %v1343_v50 = vpop.xlane.xlu1 %1342  ;;  %v1495_v25 = vmul.f32 %v3607_v4, %v1399_v49 }
 0x38b   : > { %v1371_v37 = vadd.f32 %v1343_v50, %v1307_v23 }
 0x38d   : > { %1388 = vst.msk [vmem:[#allocation3 + $0x48] sm:$0xff] %vm1378_vm1, %v1371_v37 }
 0x38e   : > { %v1346_v41 = vpop.xlane.xlu0 %1345 }
 0x38f   : > { %v1372_v57 = vadd.f32 %v1346_v41, %v1308_v60  ;;  %v1400_v60 = vld [vmem:[#allocation4 + $0x28] sm:$0xff] }
 0x390   : > { %v1496_v56 = vmul.f32 %v3609_v5, %v1400_v60 }
 0x391   : > { %1389 = vst.msk [vmem:[#allocation3 + $0x50] sm:$0xff] %vm1378_vm1, %v1372_v57 }
 0x392   : > { %v1349_v7 = vpop.xlane.xlu1 %1348 }
 0x393   : > { %v1373_v30 = vadd.f32 %v1349_v7, %v1309_v42 }
 0x395   : > { %1390 = vst.msk [vmem:[#allocation3 + $0x58] sm:$0xff] %vm1378_vm1, %v1373_v30 }
 0x396   : > { %v1352_v6 = vpop.xlane.xlu0 %1351 }
 0x397   : > { %v1374_v43 = vadd.f32 %v1352_v6, %v1310_v31  ;;  %v1497_v31 = vmul.f32 %v3611_v2, %v1401_v3  ;;  %v1704_v3 = vld [vmem:[#allocation3] sm:$0xff] (!%p2186_p7) }
 0x399   : > { %1391 = vst.msk [vmem:[#allocation3 + $0x60] sm:$0xff] %vm1378_vm1, %v1374_v43 }
 0x39a   : > { %v1355_v58 = vpop.xlane.xlu1 %1354 }
 0x39b   : > { %v1375_v44 = vadd.f32 %v1355_v58, %v1311_v9  ;;  %v1498_v58 = vmul.f32 %v3613_v52, %v1402_v18  ;;  %v1711_v18 = vld [vmem:[#allocation3 + $0x38] sm:$0xff] (!%p2186_p7) }
 0x39d   : > { %1392 = vst.msk [vmem:[#allocation3 + $0x68] sm:$0xff] %vm1378_vm1, %v1375_v44  ;;  %v1403_v44 = vld [vmem:[#allocation4 + $0x40] sm:$0xff] }
 0x39e   : > { %v1358_v19 = vpop.xlane.xlu0 %1357  ;;  %v1499_v63 = vmul.f32 %v3615_v53, %v1403_v44  ;;  %v1712_v44 = vld [vmem:[#allocation3 + $0x40] sm:$0xff] (!%p2186_p7) }
 0x39f   : > { %v1376_v13 = vadd.f32 %v1358_v19, %v1312_v8 }
 0x3a1   : > { %1393 = vst.msk [vmem:[#allocation3 + $0x70] sm:$0xff] %vm1378_vm1, %v1376_v13 }
 0x3a2   : > { %v1361_v16 = vpop.xlane.xlu1 %1360 }
 0x3a3   : > { %v1377_v21 = vadd.f32 %v1361_v16, %v1313_v10  ;;  %v1404_v10 = vld [vmem:[#allocation4 + $0x48] sm:$0xff] }
 0x3a4   : > { %v1500_v45 = vmul.f32 %v3617_v27, %v1404_v10  ;;  %v1717_v10 = vld [vmem:[#allocation3 + $0x68] sm:$0xff] (!%p2186_p7) }
 0x3a5   : > { %1394 = vst.msk [vmem:[#allocation3 + $0x78] sm:$0xff] %vm1378_vm1, %v1377_v21 }
 0x3ab   : > { %v2291_v12 = vpop.f32.mrb[0].mxu1 }
 0x3ac   : > { %v2292_v61 = vpop.f32.mrb[1].mxu1 }
 0x3ad   : > { %v2293_v62 = vadd.f32 %v2292_v61, %v2291_v12  ;;  %v1405_v61 = vld [vmem:[#allocation4 + $0x50] sm:$0xff] }
 0x3ae   : > { %v1501_v32 = vmul.f32 %v3619_v28, %v1405_v61  ;;  %v1718_v61 = vld [vmem:[#allocation3 + $0x70] sm:$0xff] (!%p2186_p7) }
 0x3af   : > { %v1652_v34 = vadd.f32 %v2293_v62, %v1491_v22  ;;  %v2294_v38 = vpop.f32.mrb[2].mxu1 }
 0x3b0   : > { %v2295_v46 = vpop.f32.mrb[3].mxu1 }
 0x3b1   : > { %1668 = vst [vmem:[#allocation4] sm:$0xff] %v1652_v34  ;;  %v2296_v36 = vadd.f32 %v2295_v46, %v2294_v38  ;;  %v1406_v38 = vld [vmem:[#allocation4 + $0x58] sm:$0xff] }
 0x3b3   : > { %v1653_v11 = vadd.f32 %v2296_v36, %v1492_v47  ;;  %v2297_v17 = vpop.f32.mrb[4].mxu1  ;;  %v1502_v36 = vmul.f32 %v3621_v54, %v1406_v38  ;;  %v1484_v54 = vpop.permute.xlu1 %1483 }
 0x3b4   : > { %v2298_v0 = vpop.f32.mrb[5].mxu1 }
 0x3b5   : > { %1669 = vst [vmem:[#allocation4 + $0x8] sm:$0xff] %v1653_v11  ;;  %v2299_v1 = vadd.f32 %v2298_v0, %v2297_v17  ;;  %v1407_v11 = vld [vmem:[#allocation4 + $0x60] sm:$0xff] }
 0x3b7   : > { %v1654_v29 = vadd.f32 %v2299_v1, %v1493_v39  ;;  %v2300_v20 = vpop.f32.mrb[6].mxu1  ;;  %v1503_v39 = vmul.f32 %v3623_v40, %v1407_v11  ;;  %v1489_v40 = vpop.permute.xlu0 %1488 }
 0x3b8   : > { %v2301_v14 = vpop.f32.mrb[7].mxu1 }
 0x3b9   : > { %1670 = vst [vmem:[#allocation4 + $0x10] sm:$0xff] %v1654_v29  ;;  %v2302_v24 = vadd.f32 %v2301_v14, %v2300_v20  ;;  %v1504_v14 = vmul.f32 %v3626_v55, %v1408_v26  ;;  %v1706_v55 = vld [vmem:[#allocation3 + $0x10] sm:$0xff] (!%p2186_p7) }
 0x3ba   : > { %2629 = vrcp.f32 (!%p2186_p7), %v1706_v55 }
 0x3bb   : > { %v1655_v51 = vadd.f32 %v2302_v24, %v1494_v33  ;;  %v2303_v23 = vpop.f32.mrb[8].mxu1  ;;  %v1409_v24 = vld [vmem:[#allocation4 + $0x70] sm:$0xff]  ;;  %2631 = vrcp.f32 (!%p2186_p7), %v1704_v3 }
 0x3bc   : > { %v2304_v50 = vpop.f32.mrb[9].mxu1 }
 0x3bd   : > { %1671 = vst [vmem:[#allocation4 + $0x18] sm:$0xff] %v1655_v51  ;;  %v2305_v37 = vadd.f32 %v2304_v50, %v2303_v23  ;;  %v1505_v50 = vmul.f32 %v1484_v54, %v1409_v24 }
 0x3bf   : > { %v1656_v15 = vadd.f32 %v2305_v37, %v1495_v25  ;;  %v2306_v41 = vpop.f32.mrb[10].mxu1  ;;  %v1410_v37 = vld [vmem:[#allocation4 + $0x78] sm:$0xff] }
 0x3c0   : > { %v2307_v57 = vpop.f32.mrb[11].mxu1 }
 0x3c1   : > { %1672 = vst [vmem:[#allocation4 + $0x20] sm:$0xff] %v1656_v15  ;;  %v2308_v42 = vadd.f32 %v2307_v57, %v2306_v41  ;;  %v1506_v57 = vmul.f32 %v1489_v40, %v1410_v37 }
 0x3c3   : > { %v1657_v48 = vadd.f32 %v2308_v42, %v1496_v56  ;;  %v2309_v7 = vpop.f32.mrb[12].mxu1 }
 0x3c4   : > { %v2310_v30 = vpop.f32.mrb[13].mxu1 }
 0x3c5   : > { %1673 = vst [vmem:[#allocation4 + $0x28] sm:$0xff] %v1657_v48  ;;  %v2311_v6 = vadd.f32 %v2310_v30, %v2309_v7  ;;  %v1707_v48 = vld [vmem:[#allocation3 + $0x18] sm:$0xff] (!%p2186_p7)  ;;  %v2784_v7 = vmov (!%p2186_p7), 0   ;;  %v1705_v30 = vld [vmem:[#allocation3 + $0x8] sm:$0xff] (!%p2186_p7) }
 0x3c6   : > { %2628 = vset.pattern.permute.xlu1 (!%p2186_p7), %v2784_v7  ;;  %2627 = vset.pattern.permute.xlu0 (!%p2186_p7), %v2784_v7  ;;  %2633 = vrcp.f32 (!%p2186_p7), %v1707_v48 }
 0x3c7   : > { %v1658_v4 = vadd.f32 %v2311_v6, %v1497_v31  ;;  %v2312_v43 = vpop.f32.mrb[14].mxu1  ;;  %2635 = vrcp.f32 (!%p2186_p7), %v1705_v30  ;;  %v1709_v31 = vld [vmem:[#allocation3 + $0x28] sm:$0xff] (!%p2186_p7)  ;;  %v1708_v6 = vld [vmem:[#allocation3 + $0x20] sm:$0xff] (!%p2186_p7) }
 0x3c8   : > { %v2313_v9 = vpop.f32.mrb[15].mxu1  ;;  %2637 = vrcp.f32 (!%p2186_p7), %v1709_v31 }
 0x3c9   : > { %1674 = vst [vmem:[#allocation4 + $0x30] sm:$0xff] %v1658_v4  ;;  %v2314_v59 = vadd.f32 %v2313_v9, %v2312_v43  ;;  %2639 = vrcp.f32 (!%p2186_p7), %v1708_v6  ;;  %v1710_v4 = vld [vmem:[#allocation3 + $0x30] sm:$0xff] (!%p2186_p7)  ;;  %v2630_v43 = vpop.eup (!%p2186_p7), %2629 }
 0x3ca   : > { %2641 = vrcp.f32 (!%p2186_p7), %v1711_v18  ;;  %v2632_v9 = vpop.eup (!%p2186_p7), %2631  ;;  %1764 = vperm.xlu1 (!%p2186_p7), %2628, %v2630_v43  }
 0x3cb   : > { %v1659_v5 = vadd.f32 %v2314_v59, %v1498_v58  ;;  %v2315_v8 = vpop.f32.mrb[16].mxu1  ;;  %2643 = vrcp.f32 (!%p2186_p7), %v1710_v4  ;;  %v1713_v58 = vld [vmem:[#allocation3 + $0x48] sm:$0xff] (!%p2186_p7)  ;;  %1754 = vperm.xlu0 (!%p2186_p7), %2627, %v2632_v9  }
 0x3cc   : > { %v2316_v19 = vpop.f32.mrb[17].mxu1  ;;  %2645 = vrcp.f32 (!%p2186_p7), %v1713_v58 }
 0x3cd   : > { %1675 = vst [vmem:[#allocation4 + $0x38] sm:$0xff] %v1659_v5  ;;  %v2317_v13 = vadd.f32 %v2316_v19, %v2315_v8  ;;  %2647 = vrcp.f32 (!%p2186_p7), %v1712_v44  ;;  %v1715_v8 = vld [vmem:[#allocation3 + $0x58] sm:$0xff] (!%p2186_p7) }
 0x3ce   : > { %2649 = vrcp.f32 (!%p2186_p7), %v1715_v8 }
 0x3cf   : > { %v1660_v2 = vadd.f32 %v2317_v13, %v1499_v63  ;;  %v2318_v16 = vpop.f32.mrb[18].mxu1  ;;  %v1714_v63 = vld [vmem:[#allocation3 + $0x50] sm:$0xff] (!%p2186_p7) }
 0x3d0   : > { %v2319_v21 = vpop.f32.mrb[19].mxu1  ;;  %v2634_v59 = vpop.eup (!%p2186_p7), %2633  ;;  %2651 = vrcp.f32 (!%p2186_p7), %v1714_v63 }
 0x3d1   : > { %1676 = vst [vmem:[#allocation4 + $0x40] sm:$0xff] %v1660_v2  ;;  %v2320_v12 = vadd.f32 %v2319_v21, %v2318_v16  ;;  %v2636_v5 = vpop.eup (!%p2186_p7), %2635  ;;  %1769 = vperm.xlu1 (!%p2186_p7), %2628, %v2634_v59   ;;  %v1716_v16 = vld [vmem:[#allocation3 + $0x60] sm:$0xff] (!%p2186_p7)  ;;  %2653 = vrcp.f32 (!%p2186_p7), %v1717_v10 }
 0x3d2   : > { %v2638_v19 = vpop.eup (!%p2186_p7), %2637  ;;  %1759 = vperm.xlu0 (!%p2186_p7), %2627, %v2636_v5   ;;  %2655 = vrcp.f32 (!%p2186_p7), %v1716_v16 }
 0x3d3   : > { %v1661_v52 = vadd.f32 %v2320_v12, %v1500_v45  ;;  %v2321_v22 = vpop.f32.mrb[20].mxu1  ;;  %v2640_v13 = vpop.eup (!%p2186_p7), %2639  ;;  %v1719_v45 = vld [vmem:[#allocation3 + $0x78] sm:$0xff] (!%p2186_p7) }
 0x3d4   : > { %v2322_v62 = vpop.f32.mrb[21].mxu1  ;;  %v2642_v2 = vpop.eup (!%p2186_p7), %2641  ;;  %2657 = vrcp.f32 (!%p2186_p7), %v1719_v45 }
 0x3d5   : > { %1677 = vst [vmem:[#allocation4 + $0x48] sm:$0xff] %v1661_v52  ;;  %v2323_v34 = vadd.f32 %v2322_v62, %v2321_v22  ;;  %1779 = vperm.xlu1 (!%p2186_p7), %2628, %v2638_v19   ;;  %v2644_v21 = vpop.eup (!%p2186_p7), %2643  ;;  %2659 = vrcp.f32 (!%p2186_p7), %v1718_v61 }
 0x3d6   : > { %1774 = vperm.xlu0 (!%p2186_p7), %2627, %v2640_v13   ;;  %v2646_v12 = vpop.eup (!%p2186_p7), %2645 }
 0x3d7   : > { %v1662_v53 = vadd.f32 %v2323_v34, %v1501_v32  ;;  %v2324_v46 = vpop.f32.mrb[22].mxu1  ;;  %v2648_v52 = vpop.eup (!%p2186_p7), %2647 }
 0x3d8   : > { %v2325_v47 = vpop.f32.mrb[23].mxu1  ;;  %v2650_v22 = vpop.eup (!%p2186_p7), %2649 }
 0x3d9   : > { %1678 = vst [vmem:[#allocation4 + $0x50] sm:$0xff] %v1662_v53  ;;  %v2326_v35 = vadd.f32 %v2325_v47, %v2324_v46  ;;  %1789 = vperm.xlu1 (!%p2186_p7), %2628, %v2642_v2   ;;  %v1738_v46 = vld [vmem:[#allocation4 + $0x10] sm:$0xff] (!%p2186_p7)  ;;  %v1736_v47 = vld [vmem:[#allocation4] sm:$0xff] (!%p2186_p7) }
 0x3da   : > { %1784 = vperm.xlu0 (!%p2186_p7), %2627, %v2644_v21   ;;  %v2652_v62 = vpop.eup (!%p2186_p7), %2651 }
 0x3db   : > { %v1663_v27 = vadd.f32 %v2326_v35, %v1502_v36  ;;  %v2327_v17 = vpop.f32.mrb[24].mxu1  ;;  %v2654_v32 = vpop.eup (!%p2186_p7), %2653 }
 0x3dc   : > { %v2328_v0 = vpop.f32.mrb[25].mxu1  ;;  %v2656_v34 = vpop.eup (!%p2186_p7), %2655  ;;  %v1745_v40 = vld [vmem:[#allocation4 + $0x48] sm:$0xff] (!%p2186_p7) }
 0x3dd   : > { %1679 = vst [vmem:[#allocation4 + $0x58] sm:$0xff] %v1663_v27  ;;  %v2329_v1 = vadd.f32 %v2328_v0, %v2327_v17  ;;  %1799 = vperm.xlu1 (!%p2186_p7), %2628, %v2646_v12   ;;  %v1739_v17 = vld [vmem:[#allocation4 + $0x18] sm:$0xff] (!%p2186_p7)  ;;  %v1737_v0 = vld [vmem:[#allocation4 + $0x8] sm:$0xff] (!%p2186_p7) }
 0x3de   : > { %1794 = vperm.xlu0 (!%p2186_p7), %2627, %v2648_v52   ;;  %v2658_v38 = vpop.eup (!%p2186_p7), %2657 }
 0x3df   : > { %v1664_v28 = vadd.f32 %v2329_v1, %v1503_v39  ;;  %v2330_v29 = vpop.f32.mrb[26].mxu1  ;;  %v2660_v53 = vpop.eup (!%p2186_p7), %2659 }
 0x3e0   : > { %v2331_v20 = vpop.f32.mrb[27].mxu1  ;;  %v1746_v55 = vld [vmem:[#allocation4 + $0x50] sm:$0xff] (!%p2186_p7) }
 0x3e1   : > { %1680 = vst [vmem:[#allocation4 + $0x60] sm:$0xff] %v1664_v28  ;;  %v2332_v33 = vadd.f32 %v2331_v20, %v2330_v29  ;;  %1809 = vperm.xlu1 (!%p2186_p7), %2628, %v2650_v22   ;;  %v1741_v29 = vld [vmem:[#allocation4 + $0x28] sm:$0xff] (!%p2186_p7)  ;;  %v1740_v20 = vld [vmem:[#allocation4 + $0x20] sm:$0xff] (!%p2186_p7) }
 0x3e2   : > { %1804 = vperm.xlu0 (!%p2186_p7), %2627, %v2652_v62  }
 0x3e3   : > { %v1665_v49 = vadd.f32 %v2332_v33, %v1504_v14  ;;  %v2333_v51 = vpop.f32.mrb[28].mxu1 }
 0x3e4   : > { %v2334_v23 = vpop.f32.mrb[29].mxu1 }
 0x3e5   : > { %1681 = vst [vmem:[#allocation4 + $0x68] sm:$0xff] %v1665_v49  ;;  %v2335_v25 = vadd.f32 %v2334_v23, %v2333_v51  ;;  %1819 = vperm.xlu1 (!%p2186_p7), %2628, %v2654_v32   ;;  %v1743_v49 = vld [vmem:[#allocation4 + $0x38] sm:$0xff] (!%p2186_p7)  ;;  %v1742_v51 = vld [vmem:[#allocation4 + $0x30] sm:$0xff] (!%p2186_p7) }
 0x3e6   : > { %1814 = vperm.xlu0 (!%p2186_p7), %2627, %v2656_v34  }
 0x3e7   : > { %v1666_v60 = vadd.f32 %v2335_v25, %v1505_v50  ;;  %v2336_v15 = vpop.f32.mrb[30].mxu1  ;;  %1703 = sbr.rel (%p2186_p7) target bundleno = 1133 (0x46d), region = 154 }
 0x3e8   : > { %v2337_v41 = vpop.f32.mrb[31].mxu1  ;;  %v1748_v6 = vld [vmem:[#allocation4 + $0x60] sm:$0xff] (!%p2186_p7) }
 0x3e9   : > { %1682 = vst [vmem:[#allocation4 + $0x70] sm:$0xff] %v1666_v60  ;;  %v2338_v56 = vadd.f32 %v2337_v41, %v2336_v15  ;;  %1829 = vperm.xlu1 (!%p2186_p7), %2628, %v2658_v38   ;;  %v1744_v60 = vld [vmem:[#allocation4 + $0x40] sm:$0xff] (!%p2186_p7) }
 0x3ea   : > { %1824 = vperm.xlu0 (!%p2186_p7), %2627, %v2660_v53  }
 0x3eb   : > { %v1667_v42 = vadd.f32 %v2338_v56, %v1506_v57 }
 0x3ec   : > { %v1749_v31 = vld [vmem:[#allocation4 + $0x68] sm:$0xff] (!%p2186_p7) }
 0x3ed   : > { %1683 = vst [vmem:[#allocation4 + $0x78] sm:$0xff] %v1667_v42  ;;  %v1747_v42 = vld [vmem:[#allocation4 + $0x58] sm:$0xff] (!%p2186_p7) }
 0x3f0   : > { %v1750_v59 = vld [vmem:[#allocation4 + $0x70] sm:$0xff] }
 0x3f4   : > { %v1751_v58 = vld [vmem:[#allocation4 + $0x78] sm:$0xff] }
 0x449   : > { %v1765_v36 = vpop.permute.xlu1 %1764 }
 0x44a   : > { %v1834_v35 = vmul.f32 %v1765_v36, %v1738_v46  ;;  %v1755_v11 = vpop.permute.xlu0 %1754 }
 0x44b   : > { %v1832_v27 = vmul.f32 %v1755_v11, %v1736_v47 }
 0x44c   : > { %1850 = vst [vmem:[%s3152_s1 + $0x10] sm:$0xff] %v1834_v35 }
 0x44d   : > { %1848 = vst [vmem:[%s3152_s1] sm:$0xff] %v1832_v27 }
 0x450   : > { %v1770_v39 = vpop.permute.xlu1 %1769 }
 0x451   : > { %v1835_v1 = vmul.f32 %v1770_v39, %v1739_v17  ;;  %v1760_v26 = vpop.permute.xlu0 %1759 }
 0x452   : > { %v1833_v28 = vmul.f32 %v1760_v26, %v1737_v0 }
 0x453   : > { %1851 = vst [vmem:[%s3152_s1 + $0x18] sm:$0xff] %v1835_v1 }
 0x454   : > { %1849 = vst [vmem:[%s3152_s1 + $0x8] sm:$0xff] %v1833_v28  ;;  %v1780_v14 = vpop.permute.xlu1 %1779 }
 0x455   : > { %v1837_v33 = vmul.f32 %v1780_v14, %v1741_v29  ;;  %v1775_v24 = vpop.permute.xlu0 %1774 }
 0x456   : > { %v1836_v54 = vmul.f32 %v1775_v24, %v1740_v20 }
 0x457   : > { %1853 = vst [vmem:[%s3152_s1 + $0x28] sm:$0xff] %v1837_v33 }
 0x458   : > { %1852 = vst [vmem:[%s3152_s1 + $0x20] sm:$0xff] %v1836_v54  ;;  %v1790_v23 = vpop.permute.xlu1 %1789 }
 0x459   : > { %v1839_v50 = vmul.f32 %v1790_v23, %v1743_v49  ;;  %v1785_v25 = vpop.permute.xlu0 %1784 }
 0x45a   : > { %v1838_v37 = vmul.f32 %v1785_v25, %v1742_v51 }
 0x45b   : > { %1855 = vst [vmem:[%s3152_s1 + $0x38] sm:$0xff] %v1839_v50 }
 0x45c   : > { %1854 = vst [vmem:[%s3152_s1 + $0x30] sm:$0xff] %v1838_v37  ;;  %v1800_v15 = vpop.permute.xlu1 %1799 }
 0x45d   : > { %v1841_v41 = vmul.f32 %v1800_v15, %v1745_v40  ;;  %v1795_v57 = vpop.permute.xlu0 %1794 }
 0x45e   : > { %v1840_v56 = vmul.f32 %v1795_v57, %v1744_v60 }
 0x45f   : > { %1857 = vst [vmem:[%s3152_s1 + $0x48] sm:$0xff] %v1841_v41 }
 0x460   : > { %1856 = vst [vmem:[%s3152_s1 + $0x40] sm:$0xff] %v1840_v56  ;;  %v1810_v3 = vpop.permute.xlu1 %1809 }
 0x461   : > { %v1843_v48 = vmul.f32 %v1810_v3, %v1747_v42  ;;  %v1805_v7 = vpop.permute.xlu0 %1804 }
 0x462   : > { %v1842_v30 = vmul.f32 %v1805_v7, %v1746_v55 }
 0x463   : > { %1859 = vst [vmem:[%s3152_s1 + $0x58] sm:$0xff] %v1843_v48 }
 0x464   : > { %1858 = vst [vmem:[%s3152_s1 + $0x50] sm:$0xff] %v1842_v30  ;;  %v1820_v18 = vpop.permute.xlu1 %1819 }
 0x465   : > { %v1845_v4 = vmul.f32 %v1820_v18, %v1749_v31  ;;  %v1815_v43 = vpop.permute.xlu0 %1814 }
 0x466   : > { %v1844_v9 = vmul.f32 %v1815_v43, %v1748_v6 }
 0x467   : > { %1861 = vst [vmem:[%s3152_s1 + $0x68] sm:$0xff] %v1845_v4 }
 0x468   : > { %1860 = vst [vmem:[%s3152_s1 + $0x60] sm:$0xff] %v1844_v9  ;;  %v1830_v44 = vpop.permute.xlu1 %1829 }
 0x469   : > { %v1847_v5 = vmul.f32 %v1830_v44, %v1751_v58  ;;  %v1825_v8 = vpop.permute.xlu0 %1824 }
 0x46a   : > { %v1846_v19 = vmul.f32 %v1825_v8, %v1750_v59 }
 0x46b   : > { %1863 = vst [vmem:[%s3152_s1 + $0x78] sm:$0xff] %v1847_v5 }
 0x46c   : > { %1862 = vst [vmem:[%s3152_s1 + $0x70] sm:$0xff] %v1846_v19 }
 0x46d PF: > { %1870 = sbr.rel (!%p2955_p2) target bundleno = 1152 (0x480), region = 158  ;;  %s3798_s16 = sld [smem:[#allocation11_spill]] (%p2955_p2)  ;;  %v1935_v63 = vld [vmem:[%s3152_s1] sm:$0xff] (%p2955_p2)  ;;  %v1937_v13 = vld [vmem:[%s3152_s1 + $0x8] sm:$0xff] (%p2955_p2)  ;;  %v1939_v10 = vld [vmem:[%s3152_s1 + $0x10] sm:$0xff] (%p2955_p2) }
 0x46e   : > { %s3799_s14 = sld [smem:[#allocation13_spill]] (%p2955_p2)  ;;  %s3800_s19 = sld [smem:[#allocation12_spill]] (%p2955_p2)  ;;  %v1941_v2 = vld [vmem:[%s3152_s1 + $0x18] sm:$0xff] (%p2955_p2)  ;;  %v1943_v16 = vld [vmem:[%s3152_s1 + $0x20] sm:$0xff] (%p2955_p2)  ;;  %v1945_v21 = vld [vmem:[%s3152_s1 + $0x28] sm:$0xff] (%p2955_p2) }
 0x46f   : > { %v1947_v45 = vld [vmem:[%s3152_s1 + $0x30] sm:$0xff] (%p2955_p2)  ;;  %v1949_v12 = vld [vmem:[%s3152_s1 + $0x38] sm:$0xff] (%p2955_p2)  ;;  %v1951_v61 = vld [vmem:[%s3152_s1 + $0x40] sm:$0xff] (%p2955_p2)  ;;  %s3801_s4 = sld [smem:[#allocation20_spill]] (%p2955_p2) }
 0x470   : > { %v1953_v52 = vld [vmem:[%s3152_s1 + $0x48] sm:$0xff] (%p2955_p2)  ;;  %v1955_v22 = vld [vmem:[%s3152_s1 + $0x50] sm:$0xff] (%p2955_p2)  ;;  %v1957_v62 = vld [vmem:[%s3152_s1 + $0x58] sm:$0xff] (%p2955_p2) }
 0x471   : > { %v1959_v32 = vld [vmem:[%s3152_s1 + $0x60] sm:$0xff] (%p2955_p2)  ;;  %v1961_v34 = vld [vmem:[%s3152_s1 + $0x68] sm:$0xff] (%p2955_p2) }
 0x472   : > { %v1965_v53 = vld [vmem:[%s3152_s1 + $0x78] sm:$0xff] (%p2955_p2) }
 0x473   : > { %s2194_s20 = sshll.u32 (%p2955_p2), %s3798_s16, 5  ;;  %v1963_v38 = vld [vmem:[%s3152_s1 + $0x70] sm:$0xff] (%p2955_p2) }
 0x474   : > { %s2190_s30 = sshll.u32 %s3799_s14, 7  ;;  %s1873_s18 = sadd.s32 %s3800_s19, %s2194_s20 }
 0x475   : > { %s1875_s21 = sadd.s32 %s2190_s30, %s1873_s18 }
 0x476   : > { %s2191_s27 = sshll.u32 %s1875_s21, 3 }
 0x477   : > { %s1877_s7 = scalar_lea.vmem %s3801_s4, %s2191_s27 }
 0x478   : > { %1936 = vst [vmem:[%s1877_s7] sm:$0xff] %v1935_v63  ;;  %1938 = vst [vmem:[%s1877_s7 + $0x10] sm:$0xff] %v1937_v13 }
 0x479   : > { %1940 = vst [vmem:[%s1877_s7 + $0x20] sm:$0xff] %v1939_v10  ;;  %1942 = vst [vmem:[%s1877_s7 + $0x30] sm:$0xff] %v1941_v2 }
 0x47a   : > { %1944 = vst [vmem:[%s1877_s7 + $0x40] sm:$0xff] %v1943_v16  ;;  %1946 = vst [vmem:[%s1877_s7 + $0x50] sm:$0xff] %v1945_v21 }
 0x47b   : > { %1948 = vst [vmem:[%s1877_s7 + $0x60] sm:$0xff] %v1947_v45  ;;  %1950 = vst [vmem:[%s1877_s7 + $0x70] sm:$0xff] %v1949_v12 }
 0x47c   : > { %1952 = vst [vmem:[%s1877_s7 + $0x80] sm:$0xff] %v1951_v61  ;;  %1954 = vst [vmem:[%s1877_s7 + $0x90] sm:$0xff] %v1953_v52 }
 0x47d   : > { %1956 = vst [vmem:[%s1877_s7 + $0xa0] sm:$0xff] %v1955_v22  ;;  %1958 = vst [vmem:[%s1877_s7 + $0xb0] sm:$0xff] %v1957_v62 }
 0x47e   : > { %1960 = vst [vmem:[%s1877_s7 + $0xc0] sm:$0xff] %v1959_v32  ;;  %1962 = vst [vmem:[%s1877_s7 + $0xd0] sm:$0xff] %v1961_v34 }
 0x47f   : > { %1964 = vst [vmem:[%s1877_s7 + $0xe0] sm:$0xff] %v1963_v38  ;;  %1966 = vst [vmem:[%s1877_s7 + $0xf0] sm:$0xff] %v1965_v53 }
 0x480 PF: > { %s13_s26 = sadd.s32 1, %s2779_s26   ;;  %s3803_s10 = sld [smem:[#allocation14_spill]] }
 0x481   : > { %p3715_p8 = scmp.ge.s32.totalorder %s13_s26, 34   ;;  %s3804_s5 = sld [smem:[#allocation15_spill]] }
 0x482   : > { %s3805_s6 = sld [smem:[#allocation16_spill]]  ;;  %s3806_s1 = sld [smem:[#allocation17_spill]] }
 0x483   : > { %s3807_s12 = smov %s2727_s13  ;;  %s3808_s13 = smov %s2950_s8 }
 0x484   : > { %s3809_s14 = smov %s2735_s15  ;;  %s3810_s15 = smov %s2945_s11 }
 0x485   : > { %s3811_s16 = smov %s2743_s17  ;;  %s3812_s17 = smov %s2942_s3 }
 0x486   : > { %s3813_s18 = smov %s2763_s22  ;;  %s3814_s19 = smov %s2767_s23 }
 0x487   : > { %s3815_s20 = smov %s2771_s24  ;;  %s3816_s21 = smov %s2775_s25 }
 0x488   : > { %s3817_s22 = smov %s3803_s10  ;;  %s3818_s23 = smov %s3804_s5 }
 0x489   : > { %s3819_s24 = smov %s3805_s6  ;;  %s3820_s25 = smov %s3806_s1 }
 0x48a   :  { %12 = sbr.rel (!%p3715_p8) target bundleno = 12 (0xc), region = 243 }

// kernel: multihead_attention.3
= control target key start
LH: loop header
LB: loop body
LE: loop exit
PB: predicated region body
PF: predicated region fallthrough
CT: control target
= control target key end

     0   :  { %s1849_s12 = smov 0   ;;  %s1851_s13 = smov 0   ;;  %s2828_s0 = inlined_call_operand.vmem [shape: f32[2,512,256], index: 0, kind: input, shape index: {}]   ;;  %s2829_s1 = inlined_call_operand.vmem [shape: f32[256,768], index: 1, kind: input, shape index: {}]   ;;  %s2830_s2 = inlined_call_operand.vmem [shape: f32[1,768], index: 2, kind: input, shape index: {}]   ;;  %s2831_s3 = inlined_call_operand.vmem [shape: f32[2,512,768], index: 3, kind: output, shape index: {}]  }
   0x1   :  { %s1853_s14 = smov 0   ;;  %s1855_s15 = smov 0  }
   0x2   :  { %s1857_s16 = smov 0   ;;  %s1859_s17 = smov 0  }
   0x3   :  { %s1861_s18 = smov 0   ;;  %s1863_s19 = smov 0  }
   0x4   :  { %s1865_s20 = smov 0  }
   0x5 LB: > { %s1568_s21 = sadd.s32 4294967295, %s1827_s20   ;;  %s25_s22 = sadd.s32 1, %s1819_s18  ;;  %s1827_s20 = sphi %s1865_s20, %s13_s20   ;;  %s1823_s19 = sphi %s1863_s19, %s2840_s19   ;;  %s1819_s18 = sphi %s1861_s18, %s2839_s18   ;;  %s1815_s17 = sphi %s1859_s17, %s2838_s17   ;;  %s1811_s16 = sphi %s1857_s16, %s2837_s16   ;;  %s1807_s15 = sphi %s1855_s15, %s2836_s15   ;;  %s1803_s14 = sphi %s1853_s14, %s2835_s14   ;;  %s1799_s13 = sphi %s1851_s13, %s2834_s13   ;;  %s1795_s12 = sphi %s1849_s12, %s2833_s12  }
   0x6   : > { %p26_p0 = scmp.ge.s32.totalorder %s25_s22, 3  ;;  %s32_s23 = sadd.s32 1, %s1823_s19 }
   0x7   : > { %s67_s24 = sadd.s32 1, %s1807_s15  ;;  %p74_p1 = scmp.ne.s32.totalorder %s1807_s15, %s1803_s14 }
   0x8   : > { %s2842_s22 = smov (%p26_p0, %s25_s22), 0  ;;  %s2844_s23 = smov (!%p26_p0, %s32_s23), %s1823_s19 }
   0x9   : > { %s64_s25 = ssub.s32 %s1819_s18, %s2842_s22  ;;  %p75_p2 = scmp.eq.s32.totalorder %s1827_s20, 0 }
   0xa   : > { %p34_p3 = scmp.ge.s32.totalorder %s2844_s23, 2  ;;  %p65_p4 = scmp.eq.s32.totalorder %s64_s25, 0 }
   0xb   : > { %p76_p5 = por %p75_p2, %p74_p1  ;;  %s123_s26 = sadd.s32 1, %s1799_s13 }
   0xc   : > { %s2846_s23 = smov (%p34_p3, %s2844_s23), 0  ;;  %p133_p6 = scmp.ne.s32.totalorder %s1799_s13, %s1795_s12 }
   0xd   : > { %s1910_s27 = scalar_select %p65_p4, %s1807_s15, %s67_s24  }
   0xe   : > { %s116_s28 = ssub.s32 %s1823_s19, %s2846_s23  ;;  %p134_p7 = scmp.eq.s32.totalorder %s1568_s21, 5 }
   0xf   : > { %s120_s29 = sor.u32 %s116_s28, %s64_s25  ;;  %p1571_p10 = scmp.ge.s32.totalorder %s1827_s20, 6 }
  0x10   : > { %p121_p8 = scmp.eq.s32.totalorder %s120_s29, 0  ;;  %p1916_p9 = por %p134_p7, %p133_p6 }
  0x11   : > { %156 = sbr.rel (%p1571_p10) target bundleno = 60 (0x3c), region = 16 }
  0x12   : > { %s1921_s4 = scalar_select %p121_p8, %s1799_s13, %s123_s26  }
  0x18   : > { %173 = sbr.rel (!%p76_p5) target bundleno = 60 (0x3c), region = 24  ;;  %s175_s5 = sand.u32 (%p76_p5), 1, %s1807_s15  }
  0x19   : > { %s1586_s6 = sshll.u32 (%p76_p5), %s1819_s18, 4  ;;  %s1572_s7 = sshll.u32 (%p76_p5), %s175_s5, 9 }
  0x1a   : > { %s1929_s10 = scalar_lea.vmem (%p76_p5), %s2829_s1, %s1586_s6  ;;  %s1934_s11 = scalar_lea.vmem (%p76_p5), [#allocation2], %s1572_s7 }
  0x1b   : > { %v193_v0 = vld [vmem:[%s1929_s10] sm:$0xff] (%p76_p5)  ;;  %v195_v1 = vld [vmem:[%s1929_s10 + $0x8] sm:$0xff] (%p76_p5)  ;;  %v197_v2 = vld [vmem:[%s1929_s10 + $0x30] sm:$0xff] (%p76_p5) }
  0x1c   : > { %194 = vst [vmem:[%s1934_s11] sm:$0xff] (%p76_p5), %v193_v0  ;;  %196 = vst [vmem:[%s1934_s11 + $0x8] sm:$0xff] (%p76_p5), %v195_v1  ;;  %v199_v3 = vld [vmem:[%s1929_s10 + $0x38] sm:$0xff] (%p76_p5)  ;;  %v201_v4 = vld [vmem:[%s1929_s10 + $0x60] sm:$0xff] (%p76_p5) }
  0x1d   : > { %198 = vst [vmem:[%s1934_s11 + $0x10] sm:$0xff] (%p76_p5), %v197_v2  ;;  %v203_v5 = vld [vmem:[%s1929_s10 + $0x68] sm:$0xff] (%p76_p5)  ;;  %200 = vst [vmem:[%s1934_s11 + $0x18] sm:$0xff] (%p76_p5), %v199_v3  ;;  %v205_v6 = vld [vmem:[%s1929_s10 + $0x90] sm:$0xff] (%p76_p5) }
  0x1e   : > { %202 = vst [vmem:[%s1934_s11 + $0x20] sm:$0xff] (%p76_p5), %v201_v4  ;;  %204 = vst [vmem:[%s1934_s11 + $0x28] sm:$0xff] (%p76_p5), %v203_v5  ;;  %v207_v7 = vld [vmem:[%s1929_s10 + $0x98] sm:$0xff] (%p76_p5)  ;;  %v209_v8 = vld [vmem:[%s1929_s10 + $0xc0] sm:$0xff] (%p76_p5) }
  0x1f   : > { %206 = vst [vmem:[%s1934_s11 + $0x30] sm:$0xff] %v205_v6  ;;  %208 = vst [vmem:[%s1934_s11 + $0x38] sm:$0xff] %v207_v7  ;;  %v211_v9 = vld [vmem:[%s1929_s10 + $0xc8] sm:$0xff]  ;;  %v213_v10 = vld [vmem:[%s1929_s10 + $0xf0] sm:$0xff] }
  0x20   : > { %210 = vst [vmem:[%s1934_s11 + $0x40] sm:$0xff] %v209_v8  ;;  %v215_v11 = vld [vmem:[%s1929_s10 + $0xf8] sm:$0xff]  ;;  %212 = vst [vmem:[%s1934_s11 + $0x48] sm:$0xff] %v211_v9  ;;  %v217_v12 = vld [vmem:[%s1929_s10 + $0x120] sm:$0xff] }
  0x21   : > { %214 = vst [vmem:[%s1934_s11 + $0x50] sm:$0xff] %v213_v10  ;;  %216 = vst [vmem:[%s1934_s11 + $0x58] sm:$0xff] %v215_v11  ;;  %v219_v13 = vld [vmem:[%s1929_s10 + $0x128] sm:$0xff]  ;;  %v221_v14 = vld [vmem:[%s1929_s10 + $0x150] sm:$0xff] }
  0x22   : > { %218 = vst [vmem:[%s1934_s11 + $0x60] sm:$0xff] %v217_v12  ;;  %220 = vst [vmem:[%s1934_s11 + $0x68] sm:$0xff] %v219_v13  ;;  %v223_v15 = vld [vmem:[%s1929_s10 + $0x158] sm:$0xff]  ;;  %v225_v16 = vld [vmem:[%s1929_s10 + $0x180] sm:$0xff] }
  0x23   : > { %222 = vst [vmem:[%s1934_s11 + $0x70] sm:$0xff] %v221_v14  ;;  %v227_v17 = vld [vmem:[%s1929_s10 + $0x188] sm:$0xff]  ;;  %224 = vst [vmem:[%s1934_s11 + $0x78] sm:$0xff] %v223_v15  ;;  %v229_v18 = vld [vmem:[%s1929_s10 + $0x1b0] sm:$0xff] }
  0x24   : > { %226 = vst [vmem:[%s1934_s11 + $0x80] sm:$0xff] %v225_v16  ;;  %228 = vst [vmem:[%s1934_s11 + $0x88] sm:$0xff] %v227_v17  ;;  %v231_v19 = vld [vmem:[%s1929_s10 + $0x1b8] sm:$0xff]  ;;  %v233_v20 = vld [vmem:[%s1929_s10 + $0x1e0] sm:$0xff] }
  0x25   : > { %230 = vst [vmem:[%s1934_s11 + $0x90] sm:$0xff] %v229_v18  ;;  %232 = vst [vmem:[%s1934_s11 + $0x98] sm:$0xff] %v231_v19  ;;  %v235_v21 = vld [vmem:[%s1929_s10 + $0x1e8] sm:$0xff]  ;;  %v237_v22 = vld [vmem:[%s1929_s10 + $0x210] sm:$0xff] }
  0x26   : > { %234 = vst [vmem:[%s1934_s11 + $0xa0] sm:$0xff] %v233_v20  ;;  %v239_v23 = vld [vmem:[%s1929_s10 + $0x218] sm:$0xff]  ;;  %236 = vst [vmem:[%s1934_s11 + $0xa8] sm:$0xff] %v235_v21  ;;  %v241_v24 = vld [vmem:[%s1929_s10 + $0x240] sm:$0xff] }
  0x27   : > { %238 = vst [vmem:[%s1934_s11 + $0xb0] sm:$0xff] %v237_v22  ;;  %240 = vst [vmem:[%s1934_s11 + $0xb8] sm:$0xff] %v239_v23  ;;  %v243_v25 = vld [vmem:[%s1929_s10 + $0x248] sm:$0xff]  ;;  %v245_v26 = vld [vmem:[%s1929_s10 + $0x270] sm:$0xff] }
  0x28   : > { %242 = vst [vmem:[%s1934_s11 + $0xc0] sm:$0xff] %v241_v24  ;;  %244 = vst [vmem:[%s1934_s11 + $0xc8] sm:$0xff] %v243_v25  ;;  %v247_v27 = vld [vmem:[%s1929_s10 + $0x278] sm:$0xff]  ;;  %v249_v28 = vld [vmem:[%s1929_s10 + $0x2a0] sm:$0xff] }
  0x29   : > { %246 = vst [vmem:[%s1934_s11 + $0xd0] sm:$0xff] %v245_v26  ;;  %v251_v29 = vld [vmem:[%s1929_s10 + $0x2a8] sm:$0xff]  ;;  %248 = vst [vmem:[%s1934_s11 + $0xd8] sm:$0xff] %v247_v27  ;;  %v253_v30 = vld [vmem:[%s1929_s10 + $0x2d0] sm:$0xff] }
  0x2a   : > { %250 = vst [vmem:[%s1934_s11 + $0xe0] sm:$0xff] %v249_v28  ;;  %252 = vst [vmem:[%s1934_s11 + $0xe8] sm:$0xff] %v251_v29  ;;  %v255_v31 = vld [vmem:[%s1929_s10 + $0x2d8] sm:$0xff]  ;;  %v257_v32 = vld [vmem:[%s1929_s10 + $0x300] sm:$0xff] }
  0x2b   : > { %254 = vst [vmem:[%s1934_s11 + $0xf0] sm:$0xff] %v253_v30  ;;  %256 = vst [vmem:[%s1934_s11 + $0xf8] sm:$0xff] %v255_v31  ;;  %v259_v33 = vld [vmem:[%s1929_s10 + $0x308] sm:$0xff]  ;;  %v261_v34 = vld [vmem:[%s1929_s10 + $0x330] sm:$0xff] }
  0x2c   : > { %258 = vst [vmem:[%s1934_s11 + $0x100] sm:$0xff] %v257_v32  ;;  %v263_v35 = vld [vmem:[%s1929_s10 + $0x338] sm:$0xff]  ;;  %260 = vst [vmem:[%s1934_s11 + $0x108] sm:$0xff] %v259_v33  ;;  %v265_v36 = vld [vmem:[%s1929_s10 + $0x360] sm:$0xff] }
  0x2d   : > { %262 = vst [vmem:[%s1934_s11 + $0x110] sm:$0xff] %v261_v34  ;;  %264 = vst [vmem:[%s1934_s11 + $0x118] sm:$0xff] %v263_v35  ;;  %v267_v37 = vld [vmem:[%s1929_s10 + $0x368] sm:$0xff]  ;;  %v269_v38 = vld [vmem:[%s1929_s10 + $0x390] sm:$0xff] }
  0x2e   : > { %266 = vst [vmem:[%s1934_s11 + $0x120] sm:$0xff] %v265_v36  ;;  %268 = vst [vmem:[%s1934_s11 + $0x128] sm:$0xff] %v267_v37  ;;  %v271_v39 = vld [vmem:[%s1929_s10 + $0x398] sm:$0xff]  ;;  %v273_v40 = vld [vmem:[%s1929_s10 + $0x3c0] sm:$0xff] }
  0x2f   : > { %270 = vst [vmem:[%s1934_s11 + $0x130] sm:$0xff] %v269_v38  ;;  %v275_v41 = vld [vmem:[%s1929_s10 + $0x3c8] sm:$0xff]  ;;  %272 = vst [vmem:[%s1934_s11 + $0x138] sm:$0xff] %v271_v39  ;;  %v277_v42 = vld [vmem:[%s1929_s10 + $0x3f0] sm:$0xff] }
  0x30   : > { %274 = vst [vmem:[%s1934_s11 + $0x140] sm:$0xff] %v273_v40  ;;  %276 = vst [vmem:[%s1934_s11 + $0x148] sm:$0xff] %v275_v41  ;;  %v279_v43 = vld [vmem:[%s1929_s10 + $0x3f8] sm:$0xff]  ;;  %v281_v44 = vld [vmem:[%s1929_s10 + $0x420] sm:$0xff] }
  0x31   : > { %278 = vst [vmem:[%s1934_s11 + $0x150] sm:$0xff] %v277_v42  ;;  %280 = vst [vmem:[%s1934_s11 + $0x158] sm:$0xff] %v279_v43  ;;  %v283_v45 = vld [vmem:[%s1929_s10 + $0x428] sm:$0xff]  ;;  %v285_v46 = vld [vmem:[%s1929_s10 + $0x450] sm:$0xff] }
  0x32   : > { %282 = vst [vmem:[%s1934_s11 + $0x160] sm:$0xff] %v281_v44  ;;  %v287_v47 = vld [vmem:[%s1929_s10 + $0x458] sm:$0xff]  ;;  %284 = vst [vmem:[%s1934_s11 + $0x168] sm:$0xff] %v283_v45  ;;  %v289_v48 = vld [vmem:[%s1929_s10 + $0x480] sm:$0xff] }
  0x33   : > { %286 = vst [vmem:[%s1934_s11 + $0x170] sm:$0xff] %v285_v46  ;;  %288 = vst [vmem:[%s1934_s11 + $0x178] sm:$0xff] %v287_v47  ;;  %v291_v49 = vld [vmem:[%s1929_s10 + $0x488] sm:$0xff]  ;;  %v293_v50 = vld [vmem:[%s1929_s10 + $0x4b0] sm:$0xff] }
  0x34   : > { %290 = vst [vmem:[%s1934_s11 + $0x180] sm:$0xff] %v289_v48  ;;  %292 = vst [vmem:[%s1934_s11 + $0x188] sm:$0xff] %v291_v49  ;;  %v295_v51 = vld [vmem:[%s1929_s10 + $0x4b8] sm:$0xff]  ;;  %v297_v52 = vld [vmem:[%s1929_s10 + $0x4e0] sm:$0xff] }
  0x35   : > { %294 = vst [vmem:[%s1934_s11 + $0x190] sm:$0xff] %v293_v50  ;;  %v299_v53 = vld [vmem:[%s1929_s10 + $0x4e8] sm:$0xff]  ;;  %296 = vst [vmem:[%s1934_s11 + $0x198] sm:$0xff] %v295_v51  ;;  %v301_v54 = vld [vmem:[%s1929_s10 + $0x510] sm:$0xff] }
  0x36   : > { %298 = vst [vmem:[%s1934_s11 + $0x1a0] sm:$0xff] %v297_v52  ;;  %300 = vst [vmem:[%s1934_s11 + $0x1a8] sm:$0xff] %v299_v53  ;;  %v303_v55 = vld [vmem:[%s1929_s10 + $0x518] sm:$0xff]  ;;  %v305_v56 = vld [vmem:[%s1929_s10 + $0x540] sm:$0xff] }
  0x37   : > { %302 = vst [vmem:[%s1934_s11 + $0x1b0] sm:$0xff] %v301_v54  ;;  %304 = vst [vmem:[%s1934_s11 + $0x1b8] sm:$0xff] %v303_v55  ;;  %v307_v57 = vld [vmem:[%s1929_s10 + $0x548] sm:$0xff]  ;;  %v309_v58 = vld [vmem:[%s1929_s10 + $0x570] sm:$0xff] }
  0x38   : > { %306 = vst [vmem:[%s1934_s11 + $0x1c0] sm:$0xff] %v305_v56  ;;  %v311_v59 = vld [vmem:[%s1929_s10 + $0x578] sm:$0xff]  ;;  %308 = vst [vmem:[%s1934_s11 + $0x1c8] sm:$0xff] %v307_v57  ;;  %v313_v60 = vld [vmem:[%s1929_s10 + $0x5a0] sm:$0xff] }
  0x39   : > { %310 = vst [vmem:[%s1934_s11 + $0x1d0] sm:$0xff] %v309_v58  ;;  %312 = vst [vmem:[%s1934_s11 + $0x1d8] sm:$0xff] %v311_v59  ;;  %v315_v61 = vld [vmem:[%s1929_s10 + $0x5a8] sm:$0xff]  ;;  %v317_v62 = vld [vmem:[%s1929_s10 + $0x5d0] sm:$0xff] }
  0x3a   : > { %314 = vst [vmem:[%s1934_s11 + $0x1e0] sm:$0xff] %v313_v60  ;;  %316 = vst [vmem:[%s1934_s11 + $0x1e8] sm:$0xff] %v315_v61  ;;  %v319_v63 = vld [vmem:[%s1929_s10 + $0x5d8] sm:$0xff] }
  0x3b   : > { %318 = vst [vmem:[%s1934_s11 + $0x1f0] sm:$0xff] %v317_v62  ;;  %320 = vst [vmem:[%s1934_s11 + $0x1f8] sm:$0xff] %v319_v63 }
  0x3c PF: > { %p1575_p11 = scmp.ge.s32.totalorder %s1827_s20, 1  ;;  %p333_p12 = scmp.lt.s32.totalorder %s1827_s20, 7 }
  0x3e   : > { %p334_p13 = pnand %p1575_p11, %p333_p12 }
  0x3f   : > { %s340_s21 = sand.u32 (!%p334_p13), 1, %s1803_s14   ;;  %p377_p0 = scmp.lt.s32.totalorder (!%p334_p13), %s1815_s17, 1 }
  0x40   : > { %337 = sbr.rel (%p334_p13) target bundleno = 523 (0x20b), region = 51  ;;  %s1576_s24 = sshll.u32 (!%p334_p13), %s340_s21, 9 }
  0x41   : > { %s2064_s25 = scalar_lea.vmem (!%p334_p13), [#allocation2], %s1576_s24  ;;  %s2266_s6 = sshll.u32 (!%p334_p13), %s1811_s16, 1 }
  0x42   : > { %v524_v0 = vld [vmem:[%s2064_s25 + $0x8] sm:$0xff] (!%p334_p13)  ;;  %v526_v1 = vld [vmem:[%s2064_s25 + $0x18] sm:$0xff] (!%p334_p13)  ;;  %v523_v2 = vld [vmem:[%s2064_s25] sm:$0xff] (!%p334_p13)  ;;  %p389_p1 = scmp.lt.s32.totalorder (!%p334_p13), %s2266_s6, 5  ;;  %s373_s11 = sand.u32 (!%p334_p13), 1, %s1795_s12  }
  0x43   : > { %v1588_v3 = vpack.c.bf16 (!%p334_p13), %v526_v1, %v524_v0  ;;  %v525_v4 = vld [vmem:[%s2064_s25 + $0x10] sm:$0xff] (!%p334_p13)  ;;  %v528_v5 = vld [vmem:[%s2064_s25 + $0x28] sm:$0xff] (!%p334_p13)  ;;  %v530_v6 = vld [vmem:[%s2064_s25 + $0x38] sm:$0xff] (!%p334_p13)  ;;  %s1577_s21 = sshll.u32 (!%p334_p13), %s373_s11, 10 }
  0x44   : > { %v1590_v7 = vpack.c.bf16 (!%p334_p13), %v525_v4, %v523_v2  ;;  %v1592_v8 = vpack.c.bf16 (!%p334_p13), %v530_v6, %v528_v5  ;;  %v527_v9 = vld [vmem:[%s2064_s25 + $0x20] sm:$0xff] (!%p334_p13)  ;;  %v529_v10 = vld [vmem:[%s2064_s25 + $0x30] sm:$0xff] (!%p334_p13)  ;;  %v532_v11 = vld [vmem:[%s2064_s25 + $0x48] sm:$0xff] (!%p334_p13)  ;;  %s2282_s12 = scalar_lea.vmem (!%p334_p13), [#allocation3], %s1577_s21 }
  0x45   : > { %1589 = vmatprep.subr.bf16.mxu0 (!%p334_p13), %v1588_v3  ;;  %1652 = vmatprep.subr.bf16.mxu1 (!%p334_p13), %v1588_v3  ;;  %v534_v12 = vld [vmem:[%s2064_s25 + $0x58] sm:$0xff] (!%p334_p13)  ;;  %v1594_v13 = vpack.c.bf16 (!%p334_p13), %v529_v10, %v527_v9  ;;  %v531_v15 = vld [vmem:[%s2064_s25 + $0x40] sm:$0xff] (!%p334_p13)  ;;  %v533_v16 = vld [vmem:[%s2064_s25 + $0x50] sm:$0xff] (!%p334_p13) }
  0x46   : > { %1591 = vmatpush1.bf16.msra.mxu0 (!%p334_p13), %v1590_v7  ;;  %1668 = vmatpush1.bf16.msra.mxu1 (!%p334_p13), %v1590_v7  ;;  %v1596_v14 = vpack.c.bf16 (!%p334_p13), %v534_v12, %v532_v11  ;;  %v536_v17 = vld [vmem:[%s2064_s25 + $0x68] sm:$0xff] (!%p334_p13)  ;;  %v538_v18 = vld [vmem:[%s2064_s25 + $0x78] sm:$0xff] (!%p334_p13)  ;;  %v1598_v19 = vpack.c.bf16 (!%p334_p13), %v533_v16, %v531_v15  ;;  %v535_v21 = vld [vmem:[%s2064_s25 + $0x60] sm:$0xff] (!%p334_p13) }
  0x47   : > { %1593 = vmatprep.subr.bf16.mxu0 %v1592_v8  ;;  %1653 = vmatprep.subr.bf16.mxu1 %v1592_v8  ;;  %v1600_v20 = vpack.c.bf16 %v538_v18, %v536_v17  ;;  %v537_v22 = vld [vmem:[%s2064_s25 + $0x70] sm:$0xff]  ;;  %v540_v23 = vld [vmem:[%s2064_s25 + $0x88] sm:$0xff]  ;;  %v542_v24 = vld [vmem:[%s2064_s25 + $0x98] sm:$0xff]  ;;  %s378_s14 = scalar_select %p377_p0, %s1815_s17, 1 }
  0x48   : > { %v1602_v25 = vpack.c.bf16 %v537_v22, %v535_v21  ;;  %v1604_v26 = vpack.c.bf16 %v542_v24, %v540_v23  ;;  %v539_v27 = vld [vmem:[%s2064_s25 + $0x80] sm:$0xff]  ;;  %v541_v28 = vld [vmem:[%s2064_s25 + $0x90] sm:$0xff]  ;;  %v544_v29 = vld [vmem:[%s2064_s25 + $0xa8] sm:$0xff]  ;;  %s390_s7 = scalar_select %p389_p1, %s2266_s6, 5 }
  0x49   : > { %v546_v30 = vld [vmem:[%s2064_s25 + $0xb8] sm:$0xff]  ;;  %s1587_s26 = sshll.u32 %s378_s14, 10  ;;  %v1606_v31 = vpack.c.bf16 %v541_v28, %v539_v27  ;;  %v543_v33 = vld [vmem:[%s2064_s25 + $0xa0] sm:$0xff]  ;;  %v545_v34 = vld [vmem:[%s2064_s25 + $0xb0] sm:$0xff]  ;;  %s1684_s16 = smul.u32 (%p1916_p9), 384, %s1815_s17 }
  0x4a   : > { %1595 = vmatpush1.bf16.msra.mxu0 %v1594_v13  ;;  %1669 = vmatpush1.bf16.msra.mxu1 %v1594_v13  ;;  %v1608_v32 = vpack.c.bf16 %v546_v30, %v544_v29  ;;  %v548_v35 = vld [vmem:[%s2064_s25 + $0xc8] sm:$0xff]  ;;  %v550_v36 = vld [vmem:[%s2064_s25 + $0xd8] sm:$0xff]  ;;  %s2097_s5 = scalar_lea.vmem %s2828_s0, %s1587_s26  ;;  %v1610_v37 = vpack.c.bf16 %v545_v34, %v543_v33  ;;  %v547_v38 = vld [vmem:[%s2064_s25 + $0xc0] sm:$0xff]  ;;  %s391_s10 = scalar_lea.vmem %s2830_s2, %s390_s7 }
  0x4b   : > { %1597 = vmatprep.subr.bf16.mxu0 %v1596_v14  ;;  %1654 = vmatprep.subr.bf16.mxu1 %v1596_v14  ;;  %v1612_v39 = vpack.c.bf16 %v550_v36, %v548_v35  ;;  %v549_v40 = vld [vmem:[%s2064_s25 + $0xd0] sm:$0xff]  ;;  %v396_v41 = vld [vmem:[%s2097_s5 + $0x8] sm:$0xff]  ;;  %v554_v44 = vld [vmem:[%s2064_s25 + $0xf8] sm:$0xff]  ;;  %s1188_s30 = sadd.s32 (%p1916_p9), %s1684_s16, %s2266_s6 }
  0x4c   : > { %v460_v42 = vld [vmem:[%s2097_s5 + $0x208] sm:$0xff]  ;;  %663 = vmatprep.mubr.f32.mxu0 %v396_v41  ;;  %v1614_v45 = vpack.c.bf16 %v549_v40, %v547_v38  ;;  %v551_v47 = vld [vmem:[%s2064_s25 + $0xe0] sm:$0xff]  ;;  %v553_v48 = vld [vmem:[%s2064_s25 + $0xf0] sm:$0xff]  ;;  %s1583_s24 = sshll.u32 (%p1916_p9), %s1188_s30, 3 }
  0x4d   : > { %v552_v43 = vld [vmem:[%s2064_s25 + $0xe8] sm:$0xff]  ;;  %855 = vmatprep.mubr.f32.mxu1 %v460_v42  ;;  %v558_v50 = vld [vmem:[%s2064_s25 + $0x118] sm:$0xff]  ;;  %v1618_v51 = vpack.c.bf16 %v553_v48, %v551_v47  ;;  %v555_v53 = vld [vmem:[%s2064_s25 + $0x100] sm:$0xff]  ;;  %s2555_s17 = scalar_lea.vmem (%p1916_p9), %s2831_s3, %s1583_s24 }
  0x4e   : > { %1599 = vmatpush1.bf16.msra.mxu0 %v1598_v19  ;;  %1670 = vmatpush1.bf16.msra.mxu1 %v1598_v19  ;;  %v1616_v46 = vpack.c.bf16 %v554_v44, %v552_v43  ;;  %v556_v49 = vld [vmem:[%s2064_s25 + $0x108] sm:$0xff]  ;;  %v557_v54 = vld [vmem:[%s2064_s25 + $0x110] sm:$0xff]  ;;  %v562_v56 = vld [vmem:[%s2064_s25 + $0x138] sm:$0xff] }
  0x4f   : > { %1601 = vmatprep.subr.bf16.mxu0 %v1600_v20  ;;  %1655 = vmatprep.subr.bf16.mxu1 %v1600_v20  ;;  %v1620_v52 = vpack.c.bf16 %v558_v50, %v556_v49  ;;  %v560_v55 = vld [vmem:[%s2064_s25 + $0x128] sm:$0xff]  ;;  %v1622_v57 = vpack.c.bf16 %v557_v54, %v555_v53  ;;  %v559_v59 = vld [vmem:[%s2064_s25 + $0x120] sm:$0xff]  ;;  %v561_v60 = vld [vmem:[%s2064_s25 + $0x130] sm:$0xff] }
  0x50   : > { %v1624_v58 = vpack.c.bf16 %v562_v56, %v560_v55  ;;  %v564_v61 = vld [vmem:[%s2064_s25 + $0x148] sm:$0xff]  ;;  %v566_v62 = vld [vmem:[%s2064_s25 + $0x158] sm:$0xff]  ;;  %v1626_v63 = vpack.c.bf16 %v561_v60, %v559_v59  ;;  %v563_v1 = vld [vmem:[%s2064_s25 + $0x140] sm:$0xff] }
  0x51   : > { %v1628_v0 = vpack.c.bf16 %v566_v62, %v564_v61  ;;  %v565_v2 = vld [vmem:[%s2064_s25 + $0x150] sm:$0xff]  ;;  %v568_v3 = vld [vmem:[%s2064_s25 + $0x168] sm:$0xff]  ;;  %v570_v4 = vld [vmem:[%s2064_s25 + $0x178] sm:$0xff] }
  0x52   : > { %1603 = vmatpush1.bf16.msra.mxu0 %v1602_v25  ;;  %1671 = vmatpush1.bf16.msra.mxu1 %v1602_v25  ;;  %v1630_v5 = vpack.c.bf16 %v565_v2, %v563_v1  ;;  %v1632_v6 = vpack.c.bf16 %v570_v4, %v568_v3  ;;  %v567_v7 = vld [vmem:[%s2064_s25 + $0x160] sm:$0xff]  ;;  %v569_v8 = vld [vmem:[%s2064_s25 + $0x170] sm:$0xff]  ;;  %v572_v9 = vld [vmem:[%s2064_s25 + $0x188] sm:$0xff] }
  0x53   : > { %1605 = vmatprep.subr.bf16.mxu0 %v1604_v26  ;;  %1656 = vmatprep.subr.bf16.mxu1 %v1604_v26  ;;  %v574_v10 = vld [vmem:[%s2064_s25 + $0x198] sm:$0xff]  ;;  %v1634_v11 = vpack.c.bf16 %v569_v8, %v567_v7  ;;  %v571_v13 = vld [vmem:[%s2064_s25 + $0x180] sm:$0xff]  ;;  %v573_v14 = vld [vmem:[%s2064_s25 + $0x190] sm:$0xff] }
  0x54   : > { %v1636_v12 = vpack.c.bf16 %v574_v10, %v572_v9  ;;  %v576_v15 = vld [vmem:[%s2064_s25 + $0x1a8] sm:$0xff]  ;;  %v578_v16 = vld [vmem:[%s2064_s25 + $0x1b8] sm:$0xff]  ;;  %v1638_v17 = vpack.c.bf16 %v573_v14, %v571_v13  ;;  %v575_v19 = vld [vmem:[%s2064_s25 + $0x1a0] sm:$0xff] }
  0x55   : > { %v1640_v18 = vpack.c.bf16 %v578_v16, %v576_v15  ;;  %v577_v20 = vld [vmem:[%s2064_s25 + $0x1b0] sm:$0xff]  ;;  %v580_v21 = vld [vmem:[%s2064_s25 + $0x1c8] sm:$0xff]  ;;  %v582_v22 = vld [vmem:[%s2064_s25 + $0x1d8] sm:$0xff] }
  0x56   : > { %1607 = vmatpush1.bf16.msra.mxu0 %v1606_v31  ;;  %1672 = vmatpush1.bf16.msra.mxu1 %v1606_v31  ;;  %v1642_v23 = vpack.c.bf16 %v577_v20, %v575_v19  ;;  %v1644_v24 = vpack.c.bf16 %v582_v22, %v580_v21  ;;  %v579_v25 = vld [vmem:[%s2064_s25 + $0x1c0] sm:$0xff]  ;;  %v581_v26 = vld [vmem:[%s2064_s25 + $0x1d0] sm:$0xff]  ;;  %v584_v27 = vld [vmem:[%s2064_s25 + $0x1e8] sm:$0xff] }
  0x57   : > { %1609 = vmatprep.subr.bf16.mxu0 %v1608_v32  ;;  %1657 = vmatprep.subr.bf16.mxu1 %v1608_v32  ;;  %v586_v28 = vld [vmem:[%s2064_s25 + $0x1f8] sm:$0xff]  ;;  %v1646_v29 = vpack.c.bf16 %v581_v26, %v579_v25  ;;  %v583_v31 = vld [vmem:[%s2064_s25 + $0x1e0] sm:$0xff]  ;;  %v585_v32 = vld [vmem:[%s2064_s25 + $0x1f0] sm:$0xff] }
  0x58   : > { %v1648_v30 = vpack.c.bf16 %v586_v28, %v584_v27  ;;  %v1650_v33 = vpack.c.bf16 %v585_v32, %v583_v31  ;;  %v395_v34 = vld [vmem:[%s2097_s5] sm:$0xff]  ;;  %v398_v36 = vld [vmem:[%s2097_s5 + $0x18] sm:$0xff]  ;;  %v397_v38 = vld [vmem:[%s2097_s5 + $0x10] sm:$0xff] }
  0x59   : > { %v459_v35 = vld [vmem:[%s2097_s5 + $0x200] sm:$0xff]  ;;  %v400_v40 = vld [vmem:[%s2097_s5 + $0x28] sm:$0xff]  ;;  %v402_v44 = vld [vmem:[%s2097_s5 + $0x38] sm:$0xff] }
  0x5a   : > { %1611 = vmatpush1.bf16.msra.mxu0 %v1610_v37  ;;  %1673 = vmatpush1.bf16.msra.mxu1 %v1610_v37  ;;  %v462_v37 = vld [vmem:[%s2097_s5 + $0x218] sm:$0xff]  ;;  %v464_v41 = vld [vmem:[%s2097_s5 + $0x228] sm:$0xff]  ;;  %v399_v42 = vld [vmem:[%s2097_s5 + $0x20] sm:$0xff] }
  0x5b   : > { %1613 = vmatprep.subr.bf16.mxu0 %v1612_v39  ;;  %1658 = vmatprep.subr.bf16.mxu1 %v1612_v39  ;;  %v461_v39 = vld [vmem:[%s2097_s5 + $0x210] sm:$0xff]  ;;  %v463_v43 = vld [vmem:[%s2097_s5 + $0x220] sm:$0xff]  ;;  %v404_v48 = vld [vmem:[%s2097_s5 + $0x48] sm:$0xff] }
  0x5c   : > { %v465_v47 = vld [vmem:[%s2097_s5 + $0x230] sm:$0xff]  ;;  %v468_v49 = vld [vmem:[%s2097_s5 + $0x248] sm:$0xff]  ;;  %v403_v50 = vld [vmem:[%s2097_s5 + $0x40] sm:$0xff] }
  0x5d   : > { %v470_v53 = vld [vmem:[%s2097_s5 + $0x258] sm:$0xff]  ;;  %v405_v54 = vld [vmem:[%s2097_s5 + $0x50] sm:$0xff]  ;;  %v408_v56 = vld [vmem:[%s2097_s5 + $0x68] sm:$0xff] }
  0x5e   : > { %1615 = vmatpush1.bf16.msra.mxu0 %v1614_v45  ;;  %1674 = vmatpush1.bf16.msra.mxu1 %v1614_v45  ;;  %v466_v45 = vld [vmem:[%s2097_s5 + $0x238] sm:$0xff]  ;;  %v469_v55 = vld [vmem:[%s2097_s5 + $0x250] sm:$0xff]  ;;  %v471_v59 = vld [vmem:[%s2097_s5 + $0x260] sm:$0xff] }
  0x5f   : > { %1617 = vmatprep.subr.bf16.mxu0 %v1616_v46  ;;  %1659 = vmatprep.subr.bf16.mxu1 %v1616_v46  ;;  %v401_v46 = vld [vmem:[%s2097_s5 + $0x30] sm:$0xff]  ;;  %v410_v60 = vld [vmem:[%s2097_s5 + $0x78] sm:$0xff]  ;;  %v476_v1 = vld [vmem:[%s2097_s5 + $0x288] sm:$0xff] }
  0x60   : > { %v474_v61 = vld [vmem:[%s2097_s5 + $0x278] sm:$0xff]  ;;  %v409_v62 = vld [vmem:[%s2097_s5 + $0x70] sm:$0xff]  ;;  %v411_v2 = vld [vmem:[%s2097_s5 + $0x80] sm:$0xff] }
  0x61   : > { %v475_v3 = vld [vmem:[%s2097_s5 + $0x280] sm:$0xff]  ;;  %v414_v4 = vld [vmem:[%s2097_s5 + $0x98] sm:$0xff]  ;;  %v477_v7 = vld [vmem:[%s2097_s5 + $0x290] sm:$0xff] }
  0x62   : > { %1619 = vmatpush1.bf16.msra.mxu0 %v1618_v51  ;;  %1675 = vmatpush1.bf16.msra.mxu1 %v1618_v51  ;;  %v467_v51 = vld [vmem:[%s2097_s5 + $0x240] sm:$0xff]  ;;  %v416_v8 = vld [vmem:[%s2097_s5 + $0xa8] sm:$0xff]  ;;  %v482_v13 = vld [vmem:[%s2097_s5 + $0x2b8] sm:$0xff] }
  0x63   : > { %1621 = vmatprep.subr.bf16.mxu0 %v1620_v52  ;;  %1660 = vmatprep.subr.bf16.mxu1 %v1620_v52  ;;  %v406_v52 = vld [vmem:[%s2097_s5 + $0x58] sm:$0xff]  ;;  %v480_v9 = vld [vmem:[%s2097_s5 + $0x2a8] sm:$0xff]  ;;  %v415_v10 = vld [vmem:[%s2097_s5 + $0xa0] sm:$0xff] }
  0x64   : > { %v417_v14 = vld [vmem:[%s2097_s5 + $0xb0] sm:$0xff]  ;;  %v420_v16 = vld [vmem:[%s2097_s5 + $0xc8] sm:$0xff]  ;;  %v483_v19 = vld [vmem:[%s2097_s5 + $0x2c0] sm:$0xff] }
  0x65   : > { %v481_v15 = vld [vmem:[%s2097_s5 + $0x2b0] sm:$0xff]  ;;  %v422_v20 = vld [vmem:[%s2097_s5 + $0xd8] sm:$0xff]  ;;  %v488_v25 = vld [vmem:[%s2097_s5 + $0x2e8] sm:$0xff] }
  0x66   : > { %1623 = vmatpush1.bf16.msra.mxu0 %v1622_v57  ;;  %1676 = vmatpush1.bf16.msra.mxu1 %v1622_v57  ;;  %v472_v57 = vld [vmem:[%s2097_s5 + $0x268] sm:$0xff]  ;;  %v486_v21 = vld [vmem:[%s2097_s5 + $0x2d8] sm:$0xff]  ;;  %v421_v22 = vld [vmem:[%s2097_s5 + $0xd0] sm:$0xff] }
  0x67   : > { %1625 = vmatprep.subr.bf16.mxu0 %v1624_v58  ;;  %1661 = vmatprep.subr.bf16.mxu1 %v1624_v58  ;;  %v407_v58 = vld [vmem:[%s2097_s5 + $0x60] sm:$0xff]  ;;  %v426_v28 = vld [vmem:[%s2097_s5 + $0xf8] sm:$0xff]  ;;  %v489_v31 = vld [vmem:[%s2097_s5 + $0x2f0] sm:$0xff] }
  0x68   : > { %v423_v26 = vld [vmem:[%s2097_s5 + $0xe0] sm:$0xff]  ;;  %v428_v32 = vld [vmem:[%s2097_s5 + $0x108] sm:$0xff] }
  0x69   : > { %v487_v27 = vld [vmem:[%s2097_s5 + $0x2e0] sm:$0xff] }
  0x6a   : > { %1627 = vmatpush1.bf16.msra.mxu0 %v1626_v63  ;;  %1677 = vmatpush1.bf16.msra.mxu1 %v1626_v63  ;;  %v473_v63 = vld [vmem:[%s2097_s5 + $0x270] sm:$0xff] }
  0x6b   : > { %1629 = vmatprep.subr.bf16.mxu0 %v1628_v0  ;;  %1662 = vmatprep.subr.bf16.mxu1 %v1628_v0  ;;  %v412_v0 = vld [vmem:[%s2097_s5 + $0x88] sm:$0xff] }
  0x6e   : > { %1631 = vmatpush1.bf16.msra.mxu0 %v1630_v5  ;;  %1678 = vmatpush1.bf16.msra.mxu1 %v1630_v5  ;;  %v478_v5 = vld [vmem:[%s2097_s5 + $0x298] sm:$0xff] }
  0x6f   : > { %1633 = vmatprep.subr.bf16.mxu0 %v1632_v6  ;;  %1663 = vmatprep.subr.bf16.mxu1 %v1632_v6  ;;  %v413_v6 = vld [vmem:[%s2097_s5 + $0x90] sm:$0xff] }
  0x72   : > { %1635 = vmatpush1.bf16.msra.mxu0 %v1634_v11  ;;  %1679 = vmatpush1.bf16.msra.mxu1 %v1634_v11  ;;  %v479_v11 = vld [vmem:[%s2097_s5 + $0x2a0] sm:$0xff] }
  0x73   : > { %1637 = vmatprep.subr.bf16.mxu0 %v1636_v12  ;;  %1664 = vmatprep.subr.bf16.mxu1 %v1636_v12  ;;  %v418_v12 = vld [vmem:[%s2097_s5 + $0xb8] sm:$0xff] }
  0x76   : > { %1639 = vmatpush1.bf16.msra.mxu0 %v1638_v17  ;;  %1680 = vmatpush1.bf16.msra.mxu1 %v1638_v17  ;;  %v484_v17 = vld [vmem:[%s2097_s5 + $0x2c8] sm:$0xff] }
  0x77   : > { %1641 = vmatprep.subr.bf16.mxu0 %v1640_v18  ;;  %1665 = vmatprep.subr.bf16.mxu1 %v1640_v18  ;;  %v419_v18 = vld [vmem:[%s2097_s5 + $0xc0] sm:$0xff] }
  0x7a   : > { %1643 = vmatpush1.bf16.msra.mxu0 %v1642_v23  ;;  %1681 = vmatpush1.bf16.msra.mxu1 %v1642_v23  ;;  %v485_v23 = vld [vmem:[%s2097_s5 + $0x2d0] sm:$0xff] }
  0x7b   : > { %1645 = vmatprep.subr.bf16.mxu0 %v1644_v24  ;;  %1666 = vmatprep.subr.bf16.mxu1 %v1644_v24  ;;  %v424_v24 = vld [vmem:[%s2097_s5 + $0xe8] sm:$0xff] }
  0x7e   : > { %1647 = vmatpush1.bf16.msra.mxu0 %v1646_v29  ;;  %1682 = vmatpush1.bf16.msra.mxu1 %v1646_v29  ;;  %v490_v29 = vld [vmem:[%s2097_s5 + $0x2f8] sm:$0xff] }
  0x7f   : > { %1649 = vmatprep.subr.bf16.mxu0 %v1648_v30  ;;  %1667 = vmatprep.subr.bf16.mxu1 %v1648_v30  ;;  %v425_v30 = vld [vmem:[%s2097_s5 + $0xf0] sm:$0xff] }
  0x82   : > { %1651 = vmatpush1.bf16.msra.mxu0 %v1650_v33  ;;  %1683 = vmatpush1.bf16.msra.mxu1 %v1650_v33  ;;  %v492_v33 = vld [vmem:[%s2097_s5 + $0x308] sm:$0xff] }
  0x85   : > { %664 = vmatmul.mubr.f32.vlgmr.msra.gmra.mrb[0].mxu0 %v395_v34  ;;  %856 = vmatmul.mubr.f32.vlgmr.msra.gmra.mrb[0].mxu1 %v459_v35  ;;  %v427_v34 = vld [vmem:[%s2097_s5 + $0x100] sm:$0xff] }
  0x86   : > { %669 = vmatprep.mubr.f32.mxu0 %v398_v36  ;;  %861 = vmatprep.mubr.f32.mxu1 %v462_v37  ;;  %v491_v35 = vld [vmem:[%s2097_s5 + $0x300] sm:$0xff]  ;;  %v430_v36 = vld [vmem:[%s2097_s5 + $0x118] sm:$0xff] }
  0x87   : > { %v494_v37 = vld [vmem:[%s2097_s5 + $0x318] sm:$0xff] }
  0x89   : > { %670 = vmatmul.mubr.f32.gmra.mrb[2].mxu0 %v397_v38  ;;  %862 = vmatmul.mubr.f32.gmra.mrb[2].mxu1 %v461_v39  ;;  %v429_v38 = vld [vmem:[%s2097_s5 + $0x110] sm:$0xff] }
  0x8a   : > { %675 = vmatprep.mubr.f32.mxu0 %v400_v40  ;;  %867 = vmatprep.mubr.f32.mxu1 %v464_v41  ;;  %v493_v39 = vld [vmem:[%s2097_s5 + $0x310] sm:$0xff]  ;;  %v432_v40 = vld [vmem:[%s2097_s5 + $0x128] sm:$0xff] }
  0x8b   : > { %v496_v41 = vld [vmem:[%s2097_s5 + $0x328] sm:$0xff] }
  0x8d   : > { %676 = vmatmul.mubr.f32.gmra.mrb[4].mxu0 %v399_v42  ;;  %868 = vmatmul.mubr.f32.gmra.mrb[4].mxu1 %v463_v43  ;;  %v431_v42 = vld [vmem:[%s2097_s5 + $0x120] sm:$0xff] }
  0x8e   : > { %681 = vmatprep.mubr.f32.mxu0 %v402_v44  ;;  %873 = vmatprep.mubr.f32.mxu1 %v466_v45  ;;  %v495_v43 = vld [vmem:[%s2097_s5 + $0x320] sm:$0xff]  ;;  %v434_v44 = vld [vmem:[%s2097_s5 + $0x138] sm:$0xff] }
  0x8f   : > { %v498_v45 = vld [vmem:[%s2097_s5 + $0x338] sm:$0xff] }
  0x91   : > { %682 = vmatmul.mubr.f32.gmra.mrb[6].mxu0 %v401_v46  ;;  %874 = vmatmul.mubr.f32.gmra.mrb[6].mxu1 %v465_v47  ;;  %v433_v46 = vld [vmem:[%s2097_s5 + $0x130] sm:$0xff] }
  0x92   : > { %687 = vmatprep.mubr.f32.mxu0 %v404_v48  ;;  %879 = vmatprep.mubr.f32.mxu1 %v468_v49  ;;  %v497_v47 = vld [vmem:[%s2097_s5 + $0x330] sm:$0xff]  ;;  %v436_v48 = vld [vmem:[%s2097_s5 + $0x148] sm:$0xff] }
  0x93   : > { %v500_v49 = vld [vmem:[%s2097_s5 + $0x348] sm:$0xff] }
  0x95   : > { %688 = vmatmul.mubr.f32.gmra.mrb[8].mxu0 %v403_v50  ;;  %880 = vmatmul.mubr.f32.gmra.mrb[8].mxu1 %v467_v51  ;;  %v435_v50 = vld [vmem:[%s2097_s5 + $0x140] sm:$0xff] }
  0x96   : > { %693 = vmatprep.mubr.f32.mxu0 %v406_v52  ;;  %885 = vmatprep.mubr.f32.mxu1 %v470_v53  ;;  %v499_v51 = vld [vmem:[%s2097_s5 + $0x340] sm:$0xff]  ;;  %v438_v52 = vld [vmem:[%s2097_s5 + $0x158] sm:$0xff] }
  0x97   : > { %v502_v53 = vld [vmem:[%s2097_s5 + $0x358] sm:$0xff] }
  0x99   : > { %694 = vmatmul.mubr.f32.gmra.mrb[10].mxu0 %v405_v54  ;;  %886 = vmatmul.mubr.f32.gmra.mrb[10].mxu1 %v469_v55  ;;  %v437_v54 = vld [vmem:[%s2097_s5 + $0x150] sm:$0xff] }
  0x9a   : > { %699 = vmatprep.mubr.f32.mxu0 %v408_v56  ;;  %891 = vmatprep.mubr.f32.mxu1 %v472_v57  ;;  %v501_v55 = vld [vmem:[%s2097_s5 + $0x350] sm:$0xff]  ;;  %v440_v56 = vld [vmem:[%s2097_s5 + $0x168] sm:$0xff] }
  0x9b   : > { %v504_v57 = vld [vmem:[%s2097_s5 + $0x368] sm:$0xff] }
  0x9d   : > { %700 = vmatmul.mubr.f32.gmra.mrb[12].mxu0 %v407_v58  ;;  %892 = vmatmul.mubr.f32.gmra.mrb[12].mxu1 %v471_v59  ;;  %v439_v58 = vld [vmem:[%s2097_s5 + $0x160] sm:$0xff] }
  0x9e   : > { %705 = vmatprep.mubr.f32.mxu0 %v410_v60  ;;  %897 = vmatprep.mubr.f32.mxu1 %v474_v61  ;;  %v503_v59 = vld [vmem:[%s2097_s5 + $0x360] sm:$0xff]  ;;  %v442_v60 = vld [vmem:[%s2097_s5 + $0x178] sm:$0xff] }
  0x9f   : > { %v506_v61 = vld [vmem:[%s2097_s5 + $0x378] sm:$0xff] }
  0xa1   : > { %706 = vmatmul.mubr.f32.gmra.mrb[14].mxu0 %v409_v62  ;;  %898 = vmatmul.mubr.f32.gmra.mrb[14].mxu1 %v473_v63  ;;  %v441_v62 = vld [vmem:[%s2097_s5 + $0x170] sm:$0xff] }
  0xa2   : > { %711 = vmatprep.mubr.f32.mxu0 %v412_v0  ;;  %903 = vmatprep.mubr.f32.mxu1 %v476_v1  ;;  %v505_v63 = vld [vmem:[%s2097_s5 + $0x370] sm:$0xff]  ;;  %v444_v0 = vld [vmem:[%s2097_s5 + $0x188] sm:$0xff] }
  0xa3   : > { %v508_v1 = vld [vmem:[%s2097_s5 + $0x388] sm:$0xff] }
  0xa5   : > { %712 = vmatmul.mubr.f32.gmra.mrb[16].mxu0 %v411_v2  ;;  %904 = vmatmul.mubr.f32.gmra.mrb[16].mxu1 %v475_v3  ;;  %v443_v2 = vld [vmem:[%s2097_s5 + $0x180] sm:$0xff] }
  0xa6   : > { %717 = vmatprep.mubr.f32.mxu0 %v414_v4  ;;  %909 = vmatprep.mubr.f32.mxu1 %v478_v5  ;;  %v507_v3 = vld [vmem:[%s2097_s5 + $0x380] sm:$0xff]  ;;  %v446_v4 = vld [vmem:[%s2097_s5 + $0x198] sm:$0xff] }
  0xa7   : > { %v510_v5 = vld [vmem:[%s2097_s5 + $0x398] sm:$0xff] }
  0xa9   : > { %718 = vmatmul.mubr.f32.gmra.mrb[18].mxu0 %v413_v6  ;;  %910 = vmatmul.mubr.f32.gmra.mrb[18].mxu1 %v477_v7  ;;  %v445_v6 = vld [vmem:[%s2097_s5 + $0x190] sm:$0xff] }
  0xaa   : > { %723 = vmatprep.mubr.f32.mxu0 %v416_v8  ;;  %915 = vmatprep.mubr.f32.mxu1 %v480_v9  ;;  %v509_v7 = vld [vmem:[%s2097_s5 + $0x390] sm:$0xff]  ;;  %v448_v8 = vld [vmem:[%s2097_s5 + $0x1a8] sm:$0xff] }
  0xab   : > { %v512_v9 = vld [vmem:[%s2097_s5 + $0x3a8] sm:$0xff] }
  0xad   : > { %724 = vmatmul.mubr.f32.gmra.mrb[20].mxu0 %v415_v10  ;;  %916 = vmatmul.mubr.f32.gmra.mrb[20].mxu1 %v479_v11  ;;  %v447_v10 = vld [vmem:[%s2097_s5 + $0x1a0] sm:$0xff] }
  0xae   : > { %729 = vmatprep.mubr.f32.mxu0 %v418_v12  ;;  %921 = vmatprep.mubr.f32.mxu1 %v482_v13  ;;  %v511_v11 = vld [vmem:[%s2097_s5 + $0x3a0] sm:$0xff]  ;;  %v450_v12 = vld [vmem:[%s2097_s5 + $0x1b8] sm:$0xff] }
  0xaf   : > { %v514_v13 = vld [vmem:[%s2097_s5 + $0x3b8] sm:$0xff] }
  0xb1   : > { %730 = vmatmul.mubr.f32.gmra.mrb[22].mxu0 %v417_v14  ;;  %922 = vmatmul.mubr.f32.gmra.mrb[22].mxu1 %v481_v15  ;;  %v449_v14 = vld [vmem:[%s2097_s5 + $0x1b0] sm:$0xff] }
  0xb2   : > { %735 = vmatprep.mubr.f32.mxu0 %v420_v16  ;;  %927 = vmatprep.mubr.f32.mxu1 %v484_v17  ;;  %v513_v15 = vld [vmem:[%s2097_s5 + $0x3b0] sm:$0xff]  ;;  %v452_v16 = vld [vmem:[%s2097_s5 + $0x1c8] sm:$0xff] }
  0xb3   : > { %v516_v17 = vld [vmem:[%s2097_s5 + $0x3c8] sm:$0xff] }
  0xb5   : > { %736 = vmatmul.mubr.f32.gmra.mrb[24].mxu0 %v419_v18  ;;  %928 = vmatmul.mubr.f32.gmra.mrb[24].mxu1 %v483_v19  ;;  %v451_v18 = vld [vmem:[%s2097_s5 + $0x1c0] sm:$0xff] }
  0xb6   : > { %741 = vmatprep.mubr.f32.mxu0 %v422_v20  ;;  %933 = vmatprep.mubr.f32.mxu1 %v486_v21  ;;  %v515_v19 = vld [vmem:[%s2097_s5 + $0x3c0] sm:$0xff]  ;;  %v454_v20 = vld [vmem:[%s2097_s5 + $0x1d8] sm:$0xff] }
  0xb7   : > { %v518_v21 = vld [vmem:[%s2097_s5 + $0x3d8] sm:$0xff] }
  0xb9   : > { %742 = vmatmul.mubr.f32.gmra.mrb[26].mxu0 %v421_v22  ;;  %934 = vmatmul.mubr.f32.gmra.mrb[26].mxu1 %v485_v23  ;;  %v453_v22 = vld [vmem:[%s2097_s5 + $0x1d0] sm:$0xff] }
  0xba   : > { %747 = vmatprep.mubr.f32.mxu0 %v424_v24  ;;  %939 = vmatprep.mubr.f32.mxu1 %v488_v25  ;;  %v517_v23 = vld [vmem:[%s2097_s5 + $0x3d0] sm:$0xff]  ;;  %v456_v24 = vld [vmem:[%s2097_s5 + $0x1e8] sm:$0xff] }
  0xbb   : > { %v520_v25 = vld [vmem:[%s2097_s5 + $0x3e8] sm:$0xff] }
  0xbd   : > { %748 = vmatmul.mubr.f32.gmra.mrb[28].mxu0 %v423_v26  ;;  %940 = vmatmul.mubr.f32.gmra.mrb[28].mxu1 %v487_v27  ;;  %v455_v26 = vld [vmem:[%s2097_s5 + $0x1e0] sm:$0xff] }
  0xbe   : > { %753 = vmatprep.mubr.f32.mxu0 %v426_v28  ;;  %945 = vmatprep.mubr.f32.mxu1 %v490_v29  ;;  %v519_v27 = vld [vmem:[%s2097_s5 + $0x3e0] sm:$0xff]  ;;  %v458_v28 = vld [vmem:[%s2097_s5 + $0x1f8] sm:$0xff] }
  0xbf   : > { %v522_v29 = vld [vmem:[%s2097_s5 + $0x3f8] sm:$0xff] }
  0xc1   : > { %754 = vmatmul.mubr.f32.gmra.mrb[30].mxu0 %v425_v30  ;;  %946 = vmatmul.mubr.f32.gmra.mrb[30].mxu1 %v489_v31  ;;  %v457_v30 = vld [vmem:[%s2097_s5 + $0x1f0] sm:$0xff] }
  0xc2   : > { %759 = vmatprep.mubr.f32.mxu0 %v428_v32  ;;  %951 = vmatprep.mubr.f32.mxu1 %v492_v33  ;;  %v521_v31 = vld [vmem:[%s2097_s5 + $0x3f0] sm:$0xff]  ;;  %v589_v32 = vlaneseq }
  0xc4   : > { %v590_v33 = vshrl.u32 %v589_v32, 7 }
  0xc5   : > { %760 = vmatmul.mubr.f32.gmra.mrb[32].mxu0 %v427_v34  ;;  %952 = vmatmul.mubr.f32.gmra.mrb[32].mxu1 %v491_v35  ;;  %v587_v35 = vld [vmem:[%s391_s10] sm:$0x3] }
  0xc6   : > { %765 = vmatprep.mubr.f32.mxu0 %v430_v36  ;;  %957 = vmatprep.mubr.f32.mxu1 %v494_v37  ;;  %v591_v34 = vsub.s32 0, %v590_v33  ;;  %v595_v36 = vsub.s32 1, %v590_v33 }
  0xc8   : > { %v2274_v37 = vrot.slane %v587_v35, %v591_v34 }
  0xc9   : > { %766 = vmatmul.mubr.f32.gmra.mrb[34].mxu0 %v429_v38  ;;  %958 = vmatmul.mubr.f32.gmra.mrb[34].mxu1 %v493_v39  ;;  %v2276_v38 = vrot.slane %v587_v35, %v595_v36 }
  0xca   : > { %771 = vmatprep.mubr.f32.mxu0 %v432_v40  ;;  %963 = vmatprep.mubr.f32.mxu1 %v496_v41 }
  0xcd   : > { %772 = vmatmul.mubr.f32.gmra.mrb[36].mxu0 %v431_v42  ;;  %964 = vmatmul.mubr.f32.gmra.mrb[36].mxu1 %v495_v43 }
  0xce   : > { %777 = vmatprep.mubr.f32.mxu0 %v434_v44  ;;  %969 = vmatprep.mubr.f32.mxu1 %v498_v45 }
  0xd1   : > { %778 = vmatmul.mubr.f32.gmra.mrb[38].mxu0 %v433_v46  ;;  %970 = vmatmul.mubr.f32.gmra.mrb[38].mxu1 %v497_v47 }
  0xd2   : > { %783 = vmatprep.mubr.f32.mxu0 %v436_v48  ;;  %975 = vmatprep.mubr.f32.mxu1 %v500_v49 }
  0xd5   : > { %784 = vmatmul.mubr.f32.gmra.mrb[40].mxu0 %v435_v50  ;;  %976 = vmatmul.mubr.f32.gmra.mrb[40].mxu1 %v499_v51 }
  0xd6   : > { %789 = vmatprep.mubr.f32.mxu0 %v438_v52  ;;  %981 = vmatprep.mubr.f32.mxu1 %v502_v53 }
  0xd9   : > { %790 = vmatmul.mubr.f32.gmra.mrb[42].mxu0 %v437_v54  ;;  %982 = vmatmul.mubr.f32.gmra.mrb[42].mxu1 %v501_v55 }
  0xda   : > { %795 = vmatprep.mubr.f32.mxu0 %v440_v56  ;;  %987 = vmatprep.mubr.f32.mxu1 %v504_v57 }
  0xdd   : > { %796 = vmatmul.mubr.f32.gmra.mrb[44].mxu0 %v439_v58  ;;  %988 = vmatmul.mubr.f32.gmra.mrb[44].mxu1 %v503_v59 }
  0xde   : > { %801 = vmatprep.mubr.f32.mxu0 %v442_v60  ;;  %993 = vmatprep.mubr.f32.mxu1 %v506_v61 }
  0xe1   : > { %802 = vmatmul.mubr.f32.gmra.mrb[46].mxu0 %v441_v62  ;;  %994 = vmatmul.mubr.f32.gmra.mrb[46].mxu1 %v505_v63 }
  0xe2   : > { %807 = vmatprep.mubr.f32.mxu0 %v444_v0  ;;  %999 = vmatprep.mubr.f32.mxu1 %v508_v1 }
  0xe5   : > { %808 = vmatmul.mubr.f32.gmra.mrb[48].mxu0 %v443_v2  ;;  %1000 = vmatmul.mubr.f32.gmra.mrb[48].mxu1 %v507_v3 }
  0xe6   : > { %813 = vmatprep.mubr.f32.mxu0 %v446_v4  ;;  %1005 = vmatprep.mubr.f32.mxu1 %v510_v5 }
  0xe9   : > { %814 = vmatmul.mubr.f32.gmra.mrb[50].mxu0 %v445_v6  ;;  %1006 = vmatmul.mubr.f32.gmra.mrb[50].mxu1 %v509_v7 }
  0xea   : > { %819 = vmatprep.mubr.f32.mxu0 %v448_v8  ;;  %1011 = vmatprep.mubr.f32.mxu1 %v512_v9 }
  0xed   : > { %820 = vmatmul.mubr.f32.gmra.mrb[52].mxu0 %v447_v10  ;;  %1012 = vmatmul.mubr.f32.gmra.mrb[52].mxu1 %v511_v11 }
  0xee   : > { %825 = vmatprep.mubr.f32.mxu0 %v450_v12  ;;  %1017 = vmatprep.mubr.f32.mxu1 %v514_v13 }
  0xf1   : > { %826 = vmatmul.mubr.f32.gmra.mrb[54].mxu0 %v449_v14  ;;  %1018 = vmatmul.mubr.f32.gmra.mrb[54].mxu1 %v513_v15 }
  0xf2   : > { %831 = vmatprep.mubr.f32.mxu0 %v452_v16  ;;  %1023 = vmatprep.mubr.f32.mxu1 %v516_v17 }
  0xf5   : > { %832 = vmatmul.mubr.f32.gmra.mrb[56].mxu0 %v451_v18  ;;  %1024 = vmatmul.mubr.f32.gmra.mrb[56].mxu1 %v515_v19 }
  0xf6   : > { %837 = vmatprep.mubr.f32.mxu0 %v454_v20  ;;  %1029 = vmatprep.mubr.f32.mxu1 %v518_v21 }
  0xf9   : > { %838 = vmatmul.mubr.f32.gmra.mrb[58].mxu0 %v453_v22  ;;  %1030 = vmatmul.mubr.f32.gmra.mrb[58].mxu1 %v517_v23 }
  0xfa   : > { %843 = vmatprep.mubr.f32.mxu0 %v456_v24  ;;  %1035 = vmatprep.mubr.f32.mxu1 %v520_v25 }
  0xfd   : > { %844 = vmatmul.mubr.f32.gmra.mrb[60].mxu0 %v455_v26  ;;  %1036 = vmatmul.mubr.f32.gmra.mrb[60].mxu1 %v519_v27 }
  0xfe   : > { %849 = vmatprep.mubr.f32.mxu0 %v458_v28  ;;  %1041 = vmatprep.mubr.f32.mxu1 %v522_v29 }
 0x101   : > { %850 = vmatmul.mubr.f32.gmra.mrb[62].mxu0 %v457_v30  ;;  %1042 = vmatmul.mubr.f32.gmra.mrb[62].mxu1 %v521_v31 }
 0x158   : > { %v665_v39 = vpop.f32.mrb[0].mxu0  ;;  %v857_v40 = vpop.f32.mrb[0].mxu1 }
 0x159   : > { %v666_v41 = vadd.f32 %v665_v39, %v2274_v37  ;;  %v858_v42 = vadd.f32 %v857_v40, %v2274_v37  ;;  %v667_v43 = vpop.f32.mrb[1].mxu0  ;;  %v859_v44 = vpop.f32.mrb[1].mxu1 }
 0x15a   : > { %v668_v45 = vadd.f32 %v667_v43, %v2276_v38  ;;  %v860_v46 = vadd.f32 %v859_v44, %v2276_v38 }
 0x15b   : > { %1048 = vst [vmem:[%s2282_s12] sm:$0xff] %v666_v41  ;;  %1112 = vst [vmem:[%s2282_s12 + $0x200] sm:$0xff] %v858_v42 }
 0x15c   : > { %1049 = vst [vmem:[%s2282_s12 + $0x8] sm:$0xff] %v668_v45  ;;  %1113 = vst [vmem:[%s2282_s12 + $0x208] sm:$0xff] %v860_v46  ;;  %v671_v47 = vpop.f32.mrb[2].mxu0  ;;  %v863_v48 = vpop.f32.mrb[2].mxu1 }
 0x15d   : > { %v672_v49 = vadd.f32 %v671_v47, %v2274_v37  ;;  %v864_v50 = vadd.f32 %v863_v48, %v2274_v37  ;;  %v673_v51 = vpop.f32.mrb[3].mxu0  ;;  %v865_v52 = vpop.f32.mrb[3].mxu1 }
 0x15e   : > { %v674_v53 = vadd.f32 %v673_v51, %v2276_v38  ;;  %v866_v54 = vadd.f32 %v865_v52, %v2276_v38 }
 0x15f   : > { %1050 = vst [vmem:[%s2282_s12 + $0x10] sm:$0xff] %v672_v49  ;;  %1114 = vst [vmem:[%s2282_s12 + $0x210] sm:$0xff] %v864_v50 }
 0x160   : > { %1051 = vst [vmem:[%s2282_s12 + $0x18] sm:$0xff] %v674_v53  ;;  %1115 = vst [vmem:[%s2282_s12 + $0x218] sm:$0xff] %v866_v54  ;;  %v677_v55 = vpop.f32.mrb[4].mxu0  ;;  %v869_v56 = vpop.f32.mrb[4].mxu1 }
 0x161   : > { %v678_v57 = vadd.f32 %v677_v55, %v2274_v37  ;;  %v870_v58 = vadd.f32 %v869_v56, %v2274_v37  ;;  %v679_v59 = vpop.f32.mrb[5].mxu0  ;;  %v871_v60 = vpop.f32.mrb[5].mxu1 }
 0x162   : > { %v680_v61 = vadd.f32 %v679_v59, %v2276_v38  ;;  %v872_v62 = vadd.f32 %v871_v60, %v2276_v38 }
 0x163   : > { %1052 = vst [vmem:[%s2282_s12 + $0x20] sm:$0xff] %v678_v57  ;;  %1116 = vst [vmem:[%s2282_s12 + $0x220] sm:$0xff] %v870_v58 }
 0x164   : > { %1053 = vst [vmem:[%s2282_s12 + $0x28] sm:$0xff] %v680_v61  ;;  %1117 = vst [vmem:[%s2282_s12 + $0x228] sm:$0xff] %v872_v62  ;;  %v683_v63 = vpop.f32.mrb[6].mxu0  ;;  %v875_v0 = vpop.f32.mrb[6].mxu1 }
 0x165   : > { %v684_v1 = vadd.f32 %v683_v63, %v2274_v37  ;;  %v876_v2 = vadd.f32 %v875_v0, %v2274_v37  ;;  %v685_v3 = vpop.f32.mrb[7].mxu0  ;;  %v877_v4 = vpop.f32.mrb[7].mxu1 }
 0x166   : > { %v686_v5 = vadd.f32 %v685_v3, %v2276_v38  ;;  %v878_v6 = vadd.f32 %v877_v4, %v2276_v38 }
 0x167   : > { %1054 = vst [vmem:[%s2282_s12 + $0x30] sm:$0xff] %v684_v1  ;;  %1118 = vst [vmem:[%s2282_s12 + $0x230] sm:$0xff] %v876_v2 }
 0x168   : > { %1055 = vst [vmem:[%s2282_s12 + $0x38] sm:$0xff] %v686_v5  ;;  %1119 = vst [vmem:[%s2282_s12 + $0x238] sm:$0xff] %v878_v6  ;;  %v689_v7 = vpop.f32.mrb[8].mxu0  ;;  %v881_v8 = vpop.f32.mrb[8].mxu1 }
 0x169   : > { %v690_v9 = vadd.f32 %v689_v7, %v2274_v37  ;;  %v882_v10 = vadd.f32 %v881_v8, %v2274_v37  ;;  %v691_v11 = vpop.f32.mrb[9].mxu0  ;;  %v883_v12 = vpop.f32.mrb[9].mxu1 }
 0x16a   : > { %v692_v13 = vadd.f32 %v691_v11, %v2276_v38  ;;  %v884_v14 = vadd.f32 %v883_v12, %v2276_v38 }
 0x16b   : > { %1056 = vst [vmem:[%s2282_s12 + $0x40] sm:$0xff] %v690_v9  ;;  %1120 = vst [vmem:[%s2282_s12 + $0x240] sm:$0xff] %v882_v10 }
 0x16c   : > { %1057 = vst [vmem:[%s2282_s12 + $0x48] sm:$0xff] %v692_v13  ;;  %1121 = vst [vmem:[%s2282_s12 + $0x248] sm:$0xff] %v884_v14  ;;  %v695_v15 = vpop.f32.mrb[10].mxu0  ;;  %v887_v16 = vpop.f32.mrb[10].mxu1 }
 0x16d   : > { %v696_v17 = vadd.f32 %v695_v15, %v2274_v37  ;;  %v888_v18 = vadd.f32 %v887_v16, %v2274_v37  ;;  %v697_v19 = vpop.f32.mrb[11].mxu0  ;;  %v889_v20 = vpop.f32.mrb[11].mxu1 }
 0x16e   : > { %v698_v21 = vadd.f32 %v697_v19, %v2276_v38  ;;  %v890_v22 = vadd.f32 %v889_v20, %v2276_v38 }
 0x16f   : > { %1058 = vst [vmem:[%s2282_s12 + $0x50] sm:$0xff] %v696_v17  ;;  %1122 = vst [vmem:[%s2282_s12 + $0x250] sm:$0xff] %v888_v18 }
 0x170   : > { %1059 = vst [vmem:[%s2282_s12 + $0x58] sm:$0xff] %v698_v21  ;;  %1123 = vst [vmem:[%s2282_s12 + $0x258] sm:$0xff] %v890_v22  ;;  %v701_v23 = vpop.f32.mrb[12].mxu0  ;;  %v893_v24 = vpop.f32.mrb[12].mxu1 }
 0x171   : > { %v702_v25 = vadd.f32 %v701_v23, %v2274_v37  ;;  %v894_v26 = vadd.f32 %v893_v24, %v2274_v37  ;;  %v703_v27 = vpop.f32.mrb[13].mxu0  ;;  %v895_v28 = vpop.f32.mrb[13].mxu1 }
 0x172   : > { %v704_v29 = vadd.f32 %v703_v27, %v2276_v38  ;;  %v896_v30 = vadd.f32 %v895_v28, %v2276_v38 }
 0x173   : > { %1060 = vst [vmem:[%s2282_s12 + $0x60] sm:$0xff] %v702_v25  ;;  %1124 = vst [vmem:[%s2282_s12 + $0x260] sm:$0xff] %v894_v26 }
 0x174   : > { %1061 = vst [vmem:[%s2282_s12 + $0x68] sm:$0xff] %v704_v29  ;;  %1125 = vst [vmem:[%s2282_s12 + $0x268] sm:$0xff] %v896_v30  ;;  %v707_v31 = vpop.f32.mrb[14].mxu0  ;;  %v899_v32 = vpop.f32.mrb[14].mxu1 }
 0x175   : > { %v708_v33 = vadd.f32 %v707_v31, %v2274_v37  ;;  %v900_v34 = vadd.f32 %v899_v32, %v2274_v37  ;;  %v709_v35 = vpop.f32.mrb[15].mxu0  ;;  %v901_v36 = vpop.f32.mrb[15].mxu1 }
 0x176   : > { %v710_v39 = vadd.f32 %v709_v35, %v2276_v38  ;;  %v902_v40 = vadd.f32 %v901_v36, %v2276_v38 }
 0x177   : > { %1062 = vst [vmem:[%s2282_s12 + $0x70] sm:$0xff] %v708_v33  ;;  %1126 = vst [vmem:[%s2282_s12 + $0x270] sm:$0xff] %v900_v34 }
 0x178   : > { %1063 = vst [vmem:[%s2282_s12 + $0x78] sm:$0xff] %v710_v39  ;;  %1127 = vst [vmem:[%s2282_s12 + $0x278] sm:$0xff] %v902_v40  ;;  %v713_v41 = vpop.f32.mrb[16].mxu0  ;;  %v905_v42 = vpop.f32.mrb[16].mxu1 }
 0x179   : > { %v714_v43 = vadd.f32 %v713_v41, %v2274_v37  ;;  %v906_v44 = vadd.f32 %v905_v42, %v2274_v37  ;;  %v715_v45 = vpop.f32.mrb[17].mxu0  ;;  %v907_v46 = vpop.f32.mrb[17].mxu1 }
 0x17a   : > { %v716_v47 = vadd.f32 %v715_v45, %v2276_v38  ;;  %v908_v48 = vadd.f32 %v907_v46, %v2276_v38 }
 0x17b   : > { %1064 = vst [vmem:[%s2282_s12 + $0x80] sm:$0xff] %v714_v43  ;;  %1128 = vst [vmem:[%s2282_s12 + $0x280] sm:$0xff] %v906_v44 }
 0x17c   : > { %1065 = vst [vmem:[%s2282_s12 + $0x88] sm:$0xff] %v716_v47  ;;  %1129 = vst [vmem:[%s2282_s12 + $0x288] sm:$0xff] %v908_v48  ;;  %v719_v49 = vpop.f32.mrb[18].mxu0  ;;  %v911_v50 = vpop.f32.mrb[18].mxu1 }
 0x17d   : > { %v720_v51 = vadd.f32 %v719_v49, %v2274_v37  ;;  %v912_v52 = vadd.f32 %v911_v50, %v2274_v37  ;;  %v721_v53 = vpop.f32.mrb[19].mxu0  ;;  %v913_v54 = vpop.f32.mrb[19].mxu1 }
 0x17e   : > { %v722_v55 = vadd.f32 %v721_v53, %v2276_v38  ;;  %v914_v56 = vadd.f32 %v913_v54, %v2276_v38 }
 0x17f   : > { %1066 = vst [vmem:[%s2282_s12 + $0x90] sm:$0xff] %v720_v51  ;;  %1130 = vst [vmem:[%s2282_s12 + $0x290] sm:$0xff] %v912_v52 }
 0x180   : > { %1067 = vst [vmem:[%s2282_s12 + $0x98] sm:$0xff] %v722_v55  ;;  %1131 = vst [vmem:[%s2282_s12 + $0x298] sm:$0xff] %v914_v56  ;;  %v725_v57 = vpop.f32.mrb[20].mxu0  ;;  %v917_v58 = vpop.f32.mrb[20].mxu1 }
 0x181   : > { %v726_v59 = vadd.f32 %v725_v57, %v2274_v37  ;;  %v918_v60 = vadd.f32 %v917_v58, %v2274_v37  ;;  %v727_v61 = vpop.f32.mrb[21].mxu0  ;;  %v919_v62 = vpop.f32.mrb[21].mxu1 }
 0x182   : > { %v728_v63 = vadd.f32 %v727_v61, %v2276_v38  ;;  %v920_v0 = vadd.f32 %v919_v62, %v2276_v38 }
 0x183   : > { %1068 = vst [vmem:[%s2282_s12 + $0xa0] sm:$0xff] %v726_v59  ;;  %1132 = vst [vmem:[%s2282_s12 + $0x2a0] sm:$0xff] %v918_v60 }
 0x184   : > { %1069 = vst [vmem:[%s2282_s12 + $0xa8] sm:$0xff] %v728_v63  ;;  %1133 = vst [vmem:[%s2282_s12 + $0x2a8] sm:$0xff] %v920_v0  ;;  %v731_v1 = vpop.f32.mrb[22].mxu0  ;;  %v923_v2 = vpop.f32.mrb[22].mxu1 }
 0x185   : > { %v732_v3 = vadd.f32 %v731_v1, %v2274_v37  ;;  %v924_v4 = vadd.f32 %v923_v2, %v2274_v37  ;;  %v733_v5 = vpop.f32.mrb[23].mxu0  ;;  %v925_v6 = vpop.f32.mrb[23].mxu1 }
 0x186   : > { %v734_v7 = vadd.f32 %v733_v5, %v2276_v38  ;;  %v926_v8 = vadd.f32 %v925_v6, %v2276_v38 }
 0x187   : > { %1070 = vst [vmem:[%s2282_s12 + $0xb0] sm:$0xff] %v732_v3  ;;  %1134 = vst [vmem:[%s2282_s12 + $0x2b0] sm:$0xff] %v924_v4 }
 0x188   : > { %1071 = vst [vmem:[%s2282_s12 + $0xb8] sm:$0xff] %v734_v7  ;;  %1135 = vst [vmem:[%s2282_s12 + $0x2b8] sm:$0xff] %v926_v8  ;;  %v737_v9 = vpop.f32.mrb[24].mxu0  ;;  %v929_v10 = vpop.f32.mrb[24].mxu1 }
 0x189   : > { %v738_v11 = vadd.f32 %v737_v9, %v2274_v37  ;;  %v930_v12 = vadd.f32 %v929_v10, %v2274_v37  ;;  %v739_v13 = vpop.f32.mrb[25].mxu0  ;;  %v931_v14 = vpop.f32.mrb[25].mxu1 }
 0x18a   : > { %v740_v15 = vadd.f32 %v739_v13, %v2276_v38  ;;  %v932_v16 = vadd.f32 %v931_v14, %v2276_v38 }
 0x18b   : > { %1072 = vst [vmem:[%s2282_s12 + $0xc0] sm:$0xff] %v738_v11  ;;  %1136 = vst [vmem:[%s2282_s12 + $0x2c0] sm:$0xff] %v930_v12 }
 0x18c   : > { %1073 = vst [vmem:[%s2282_s12 + $0xc8] sm:$0xff] %v740_v15  ;;  %1137 = vst [vmem:[%s2282_s12 + $0x2c8] sm:$0xff] %v932_v16  ;;  %v743_v17 = vpop.f32.mrb[26].mxu0  ;;  %v935_v18 = vpop.f32.mrb[26].mxu1 }
 0x18d   : > { %v744_v19 = vadd.f32 %v743_v17, %v2274_v37  ;;  %v936_v20 = vadd.f32 %v935_v18, %v2274_v37  ;;  %v745_v21 = vpop.f32.mrb[27].mxu0  ;;  %v937_v22 = vpop.f32.mrb[27].mxu1 }
 0x18e   : > { %v746_v23 = vadd.f32 %v745_v21, %v2276_v38  ;;  %v938_v24 = vadd.f32 %v937_v22, %v2276_v38 }
 0x18f   : > { %1074 = vst [vmem:[%s2282_s12 + $0xd0] sm:$0xff] %v744_v19  ;;  %1138 = vst [vmem:[%s2282_s12 + $0x2d0] sm:$0xff] %v936_v20 }
 0x190   : > { %1075 = vst [vmem:[%s2282_s12 + $0xd8] sm:$0xff] %v746_v23  ;;  %1139 = vst [vmem:[%s2282_s12 + $0x2d8] sm:$0xff] %v938_v24  ;;  %v749_v25 = vpop.f32.mrb[28].mxu0  ;;  %v941_v26 = vpop.f32.mrb[28].mxu1 }
 0x191   : > { %v750_v27 = vadd.f32 %v749_v25, %v2274_v37  ;;  %v942_v28 = vadd.f32 %v941_v26, %v2274_v37  ;;  %v751_v29 = vpop.f32.mrb[29].mxu0  ;;  %v943_v30 = vpop.f32.mrb[29].mxu1 }
 0x192   : > { %v752_v31 = vadd.f32 %v751_v29, %v2276_v38  ;;  %v944_v32 = vadd.f32 %v943_v30, %v2276_v38 }
 0x193   : > { %1076 = vst [vmem:[%s2282_s12 + $0xe0] sm:$0xff] %v750_v27  ;;  %1140 = vst [vmem:[%s2282_s12 + $0x2e0] sm:$0xff] %v942_v28 }
 0x194   : > { %1077 = vst [vmem:[%s2282_s12 + $0xe8] sm:$0xff] %v752_v31  ;;  %1141 = vst [vmem:[%s2282_s12 + $0x2e8] sm:$0xff] %v944_v32  ;;  %v755_v33 = vpop.f32.mrb[30].mxu0  ;;  %v947_v34 = vpop.f32.mrb[30].mxu1 }
 0x195   : > { %v756_v35 = vadd.f32 %v755_v33, %v2274_v37  ;;  %v948_v36 = vadd.f32 %v947_v34, %v2274_v37  ;;  %v757_v39 = vpop.f32.mrb[31].mxu0  ;;  %v949_v40 = vpop.f32.mrb[31].mxu1 }
 0x196   : > { %v758_v41 = vadd.f32 %v757_v39, %v2276_v38  ;;  %v950_v42 = vadd.f32 %v949_v40, %v2276_v38 }
 0x197   : > { %1078 = vst [vmem:[%s2282_s12 + $0xf0] sm:$0xff] %v756_v35  ;;  %1142 = vst [vmem:[%s2282_s12 + $0x2f0] sm:$0xff] %v948_v36 }
 0x198   : > { %1079 = vst [vmem:[%s2282_s12 + $0xf8] sm:$0xff] %v758_v41  ;;  %1143 = vst [vmem:[%s2282_s12 + $0x2f8] sm:$0xff] %v950_v42  ;;  %v761_v43 = vpop.f32.mrb[32].mxu0  ;;  %v953_v44 = vpop.f32.mrb[32].mxu1 }
 0x199   : > { %v762_v45 = vadd.f32 %v761_v43, %v2274_v37  ;;  %v954_v46 = vadd.f32 %v953_v44, %v2274_v37  ;;  %v763_v47 = vpop.f32.mrb[33].mxu0  ;;  %v955_v48 = vpop.f32.mrb[33].mxu1 }
 0x19a   : > { %v764_v49 = vadd.f32 %v763_v47, %v2276_v38  ;;  %v956_v50 = vadd.f32 %v955_v48, %v2276_v38 }
 0x19b   : > { %1080 = vst [vmem:[%s2282_s12 + $0x100] sm:$0xff] %v762_v45  ;;  %1144 = vst [vmem:[%s2282_s12 + $0x300] sm:$0xff] %v954_v46 }
 0x19c   : > { %1081 = vst [vmem:[%s2282_s12 + $0x108] sm:$0xff] %v764_v49  ;;  %1145 = vst [vmem:[%s2282_s12 + $0x308] sm:$0xff] %v956_v50  ;;  %v767_v51 = vpop.f32.mrb[34].mxu0  ;;  %v959_v52 = vpop.f32.mrb[34].mxu1 }
 0x19d   : > { %v768_v53 = vadd.f32 %v767_v51, %v2274_v37  ;;  %v960_v54 = vadd.f32 %v959_v52, %v2274_v37  ;;  %v769_v55 = vpop.f32.mrb[35].mxu0  ;;  %v961_v56 = vpop.f32.mrb[35].mxu1 }
 0x19e   : > { %v770_v57 = vadd.f32 %v769_v55, %v2276_v38  ;;  %v962_v58 = vadd.f32 %v961_v56, %v2276_v38 }
 0x19f   : > { %1082 = vst [vmem:[%s2282_s12 + $0x110] sm:$0xff] %v768_v53  ;;  %1146 = vst [vmem:[%s2282_s12 + $0x310] sm:$0xff] %v960_v54 }
 0x1a0   : > { %1083 = vst [vmem:[%s2282_s12 + $0x118] sm:$0xff] %v770_v57  ;;  %1147 = vst [vmem:[%s2282_s12 + $0x318] sm:$0xff] %v962_v58  ;;  %v773_v59 = vpop.f32.mrb[36].mxu0  ;;  %v965_v60 = vpop.f32.mrb[36].mxu1 }
 0x1a1   : > { %v774_v61 = vadd.f32 %v773_v59, %v2274_v37  ;;  %v966_v62 = vadd.f32 %v965_v60, %v2274_v37  ;;  %v775_v63 = vpop.f32.mrb[37].mxu0  ;;  %v967_v0 = vpop.f32.mrb[37].mxu1 }
 0x1a2   : > { %v776_v1 = vadd.f32 %v775_v63, %v2276_v38  ;;  %v968_v2 = vadd.f32 %v967_v0, %v2276_v38 }
 0x1a3   : > { %1084 = vst [vmem:[%s2282_s12 + $0x120] sm:$0xff] %v774_v61  ;;  %1148 = vst [vmem:[%s2282_s12 + $0x320] sm:$0xff] %v966_v62 }
 0x1a4   : > { %1085 = vst [vmem:[%s2282_s12 + $0x128] sm:$0xff] %v776_v1  ;;  %1149 = vst [vmem:[%s2282_s12 + $0x328] sm:$0xff] %v968_v2  ;;  %v779_v3 = vpop.f32.mrb[38].mxu0  ;;  %v971_v4 = vpop.f32.mrb[38].mxu1 }
 0x1a5   : > { %v780_v5 = vadd.f32 %v779_v3, %v2274_v37  ;;  %v972_v6 = vadd.f32 %v971_v4, %v2274_v37  ;;  %v781_v7 = vpop.f32.mrb[39].mxu0  ;;  %v973_v8 = vpop.f32.mrb[39].mxu1 }
 0x1a6   : > { %v782_v9 = vadd.f32 %v781_v7, %v2276_v38  ;;  %v974_v10 = vadd.f32 %v973_v8, %v2276_v38 }
 0x1a7   : > { %1086 = vst [vmem:[%s2282_s12 + $0x130] sm:$0xff] %v780_v5  ;;  %1150 = vst [vmem:[%s2282_s12 + $0x330] sm:$0xff] %v972_v6 }
 0x1a8   : > { %1087 = vst [vmem:[%s2282_s12 + $0x138] sm:$0xff] %v782_v9  ;;  %1151 = vst [vmem:[%s2282_s12 + $0x338] sm:$0xff] %v974_v10  ;;  %v785_v11 = vpop.f32.mrb[40].mxu0  ;;  %v977_v12 = vpop.f32.mrb[40].mxu1 }
 0x1a9   : > { %v786_v13 = vadd.f32 %v785_v11, %v2274_v37  ;;  %v978_v14 = vadd.f32 %v977_v12, %v2274_v37  ;;  %v787_v15 = vpop.f32.mrb[41].mxu0  ;;  %v979_v16 = vpop.f32.mrb[41].mxu1 }
 0x1aa   : > { %v788_v17 = vadd.f32 %v787_v15, %v2276_v38  ;;  %v980_v18 = vadd.f32 %v979_v16, %v2276_v38 }
 0x1ab   : > { %1088 = vst [vmem:[%s2282_s12 + $0x140] sm:$0xff] %v786_v13  ;;  %1152 = vst [vmem:[%s2282_s12 + $0x340] sm:$0xff] %v978_v14 }
 0x1ac   : > { %1089 = vst [vmem:[%s2282_s12 + $0x148] sm:$0xff] %v788_v17  ;;  %1153 = vst [vmem:[%s2282_s12 + $0x348] sm:$0xff] %v980_v18  ;;  %v791_v19 = vpop.f32.mrb[42].mxu0  ;;  %v983_v20 = vpop.f32.mrb[42].mxu1 }
 0x1ad   : > { %v792_v21 = vadd.f32 %v791_v19, %v2274_v37  ;;  %v984_v22 = vadd.f32 %v983_v20, %v2274_v37  ;;  %v793_v23 = vpop.f32.mrb[43].mxu0  ;;  %v985_v24 = vpop.f32.mrb[43].mxu1 }
 0x1ae   : > { %v794_v25 = vadd.f32 %v793_v23, %v2276_v38  ;;  %v986_v26 = vadd.f32 %v985_v24, %v2276_v38 }
 0x1af   : > { %1090 = vst [vmem:[%s2282_s12 + $0x150] sm:$0xff] %v792_v21  ;;  %1154 = vst [vmem:[%s2282_s12 + $0x350] sm:$0xff] %v984_v22 }
 0x1b0   : > { %1091 = vst [vmem:[%s2282_s12 + $0x158] sm:$0xff] %v794_v25  ;;  %1155 = vst [vmem:[%s2282_s12 + $0x358] sm:$0xff] %v986_v26  ;;  %v797_v27 = vpop.f32.mrb[44].mxu0  ;;  %v989_v28 = vpop.f32.mrb[44].mxu1 }
 0x1b1   : > { %v798_v29 = vadd.f32 %v797_v27, %v2274_v37  ;;  %v990_v30 = vadd.f32 %v989_v28, %v2274_v37  ;;  %v799_v31 = vpop.f32.mrb[45].mxu0  ;;  %v991_v32 = vpop.f32.mrb[45].mxu1 }
 0x1b2   : > { %v800_v33 = vadd.f32 %v799_v31, %v2276_v38  ;;  %v992_v34 = vadd.f32 %v991_v32, %v2276_v38 }
 0x1b3   : > { %1092 = vst [vmem:[%s2282_s12 + $0x160] sm:$0xff] %v798_v29  ;;  %1156 = vst [vmem:[%s2282_s12 + $0x360] sm:$0xff] %v990_v30 }
 0x1b4   : > { %1093 = vst [vmem:[%s2282_s12 + $0x168] sm:$0xff] %v800_v33  ;;  %1157 = vst [vmem:[%s2282_s12 + $0x368] sm:$0xff] %v992_v34  ;;  %v803_v35 = vpop.f32.mrb[46].mxu0  ;;  %v995_v36 = vpop.f32.mrb[46].mxu1 }
 0x1b5   : > { %v804_v39 = vadd.f32 %v803_v35, %v2274_v37  ;;  %v996_v40 = vadd.f32 %v995_v36, %v2274_v37  ;;  %v805_v41 = vpop.f32.mrb[47].mxu0  ;;  %v997_v42 = vpop.f32.mrb[47].mxu1 }
 0x1b6   : > { %v806_v43 = vadd.f32 %v805_v41, %v2276_v38  ;;  %v998_v44 = vadd.f32 %v997_v42, %v2276_v38 }
 0x1b7   : > { %1094 = vst [vmem:[%s2282_s12 + $0x170] sm:$0xff] %v804_v39  ;;  %1158 = vst [vmem:[%s2282_s12 + $0x370] sm:$0xff] %v996_v40 }
 0x1b8   : > { %1095 = vst [vmem:[%s2282_s12 + $0x178] sm:$0xff] %v806_v43  ;;  %1159 = vst [vmem:[%s2282_s12 + $0x378] sm:$0xff] %v998_v44  ;;  %v809_v45 = vpop.f32.mrb[48].mxu0  ;;  %v1001_v46 = vpop.f32.mrb[48].mxu1 }
 0x1b9   : > { %v810_v47 = vadd.f32 %v809_v45, %v2274_v37  ;;  %v1002_v48 = vadd.f32 %v1001_v46, %v2274_v37  ;;  %v811_v49 = vpop.f32.mrb[49].mxu0  ;;  %v1003_v50 = vpop.f32.mrb[49].mxu1 }
 0x1ba   : > { %v812_v51 = vadd.f32 %v811_v49, %v2276_v38  ;;  %v1004_v52 = vadd.f32 %v1003_v50, %v2276_v38  ;;  %v1211_v49 = vld [vmem:[%s2282_s12 + $0x20] sm:$0xff] (%p1916_p9)  ;;  %v1213_v50 = vld [vmem:[%s2282_s12 + $0x28] sm:$0xff] (%p1916_p9) }
 0x1bb   : > { %1096 = vst [vmem:[%s2282_s12 + $0x180] sm:$0xff] %v810_v47  ;;  %1160 = vst [vmem:[%s2282_s12 + $0x380] sm:$0xff] %v1002_v48  ;;  %v1207_v47 = vld [vmem:[%s2282_s12 + $0x10] sm:$0xff] (%p1916_p9)  ;;  %v1209_v48 = vld [vmem:[%s2282_s12 + $0x18] sm:$0xff] (%p1916_p9) }
 0x1bc   : > { %1097 = vst [vmem:[%s2282_s12 + $0x188] sm:$0xff] %v812_v51  ;;  %1161 = vst [vmem:[%s2282_s12 + $0x388] sm:$0xff] %v1004_v52  ;;  %v815_v53 = vpop.f32.mrb[50].mxu0  ;;  %v1007_v54 = vpop.f32.mrb[50].mxu1  ;;  %v1215_v51 = vld [vmem:[%s2282_s12 + $0x30] sm:$0xff] (%p1916_p9)  ;;  %v1217_v52 = vld [vmem:[%s2282_s12 + $0x38] sm:$0xff] (%p1916_p9) }
 0x1bd   : > { %v816_v55 = vadd.f32 %v815_v53, %v2274_v37  ;;  %v1008_v56 = vadd.f32 %v1007_v54, %v2274_v37  ;;  %v817_v57 = vpop.f32.mrb[51].mxu0  ;;  %v1009_v58 = vpop.f32.mrb[51].mxu1  ;;  %v1219_v53 = vld [vmem:[%s2282_s12 + $0x40] sm:$0xff] (%p1916_p9)  ;;  %v1221_v54 = vld [vmem:[%s2282_s12 + $0x48] sm:$0xff] (%p1916_p9)  ;;  %1208 = vst [vmem:[%s2555_s17 + $0x30] sm:$0xff] (%p1916_p9), %v1207_v47  ;;  %1210 = vst [vmem:[%s2555_s17 + $0x38] sm:$0xff] (%p1916_p9), %v1209_v48 }
 0x1be   : > { %v818_v59 = vadd.f32 %v817_v57, %v2276_v38  ;;  %v1010_v60 = vadd.f32 %v1009_v58, %v2276_v38  ;;  %v1227_v57 = vld [vmem:[%s2282_s12 + $0x60] sm:$0xff] (%p1916_p9)  ;;  %v1229_v58 = vld [vmem:[%s2282_s12 + $0x68] sm:$0xff] (%p1916_p9)  ;;  %1212 = vst [vmem:[%s2555_s17 + $0x60] sm:$0xff] (%p1916_p9), %v1211_v49  ;;  %1214 = vst [vmem:[%s2555_s17 + $0x68] sm:$0xff] (%p1916_p9), %v1213_v50 }
 0x1bf   : > { %1098 = vst [vmem:[%s2282_s12 + $0x190] sm:$0xff] %v816_v55  ;;  %1162 = vst [vmem:[%s2282_s12 + $0x390] sm:$0xff] %v1008_v56  ;;  %v1223_v55 = vld [vmem:[%s2282_s12 + $0x50] sm:$0xff] (%p1916_p9)  ;;  %v1225_v56 = vld [vmem:[%s2282_s12 + $0x58] sm:$0xff] (%p1916_p9) }
 0x1c0   : > { %1099 = vst [vmem:[%s2282_s12 + $0x198] sm:$0xff] %v818_v59  ;;  %1163 = vst [vmem:[%s2282_s12 + $0x398] sm:$0xff] %v1010_v60  ;;  %v821_v61 = vpop.f32.mrb[52].mxu0  ;;  %v1013_v62 = vpop.f32.mrb[52].mxu1  ;;  %v1231_v59 = vld [vmem:[%s2282_s12 + $0x70] sm:$0xff] (%p1916_p9)  ;;  %v1233_v60 = vld [vmem:[%s2282_s12 + $0x78] sm:$0xff] (%p1916_p9) }
 0x1c1   : > { %v822_v63 = vadd.f32 %v821_v61, %v2274_v37  ;;  %v1014_v0 = vadd.f32 %v1013_v62, %v2274_v37  ;;  %v823_v1 = vpop.f32.mrb[53].mxu0  ;;  %v1015_v2 = vpop.f32.mrb[53].mxu1  ;;  %1216 = vst [vmem:[%s2555_s17 + $0x90] sm:$0xff] (%p1916_p9), %v1215_v51  ;;  %1218 = vst [vmem:[%s2555_s17 + $0x98] sm:$0xff] (%p1916_p9), %v1217_v52  ;;  %v1235_v61 = vld [vmem:[%s2282_s12 + $0x80] sm:$0xff] (%p1916_p9)  ;;  %v1237_v62 = vld [vmem:[%s2282_s12 + $0x88] sm:$0xff] (%p1916_p9) }
 0x1c2   : > { %v824_v3 = vadd.f32 %v823_v1, %v2276_v38  ;;  %v1016_v4 = vadd.f32 %v1015_v2, %v2276_v38  ;;  %1220 = vst [vmem:[%s2555_s17 + $0xc0] sm:$0xff] (%p1916_p9), %v1219_v53  ;;  %1222 = vst [vmem:[%s2555_s17 + $0xc8] sm:$0xff] (%p1916_p9), %v1221_v54  ;;  %v1243_v1 = vld [vmem:[%s2282_s12 + $0xa0] sm:$0xff] (%p1916_p9)  ;;  %v1245_v2 = vld [vmem:[%s2282_s12 + $0xa8] sm:$0xff] (%p1916_p9) }
 0x1c3   : > { %1100 = vst [vmem:[%s2282_s12 + $0x1a0] sm:$0xff] %v822_v63  ;;  %1164 = vst [vmem:[%s2282_s12 + $0x3a0] sm:$0xff] %v1014_v0  ;;  %v1239_v63 = vld [vmem:[%s2282_s12 + $0x90] sm:$0xff] (%p1916_p9)  ;;  %v1241_v0 = vld [vmem:[%s2282_s12 + $0x98] sm:$0xff] (%p1916_p9) }
 0x1c4   : > { %1101 = vst [vmem:[%s2282_s12 + $0x1a8] sm:$0xff] %v824_v3  ;;  %1165 = vst [vmem:[%s2282_s12 + $0x3a8] sm:$0xff] %v1016_v4  ;;  %v827_v5 = vpop.f32.mrb[54].mxu0  ;;  %v1019_v6 = vpop.f32.mrb[54].mxu1  ;;  %v1247_v3 = vld [vmem:[%s2282_s12 + $0xb0] sm:$0xff] (%p1916_p9)  ;;  %v1249_v4 = vld [vmem:[%s2282_s12 + $0xb8] sm:$0xff] (%p1916_p9) }
 0x1c5   : > { %v828_v7 = vadd.f32 %v827_v5, %v2274_v37  ;;  %v1020_v8 = vadd.f32 %v1019_v6, %v2274_v37  ;;  %v829_v9 = vpop.f32.mrb[55].mxu0  ;;  %v1021_v10 = vpop.f32.mrb[55].mxu1  ;;  %1224 = vst [vmem:[%s2555_s17 + $0xf0] sm:$0xff] (%p1916_p9), %v1223_v55  ;;  %1226 = vst [vmem:[%s2555_s17 + $0xf8] sm:$0xff] (%p1916_p9), %v1225_v56  ;;  %v1251_v5 = vld [vmem:[%s2282_s12 + $0xc0] sm:$0xff] (%p1916_p9)  ;;  %v1253_v6 = vld [vmem:[%s2282_s12 + $0xc8] sm:$0xff] (%p1916_p9) }
 0x1c6   : > { %v830_v11 = vadd.f32 %v829_v9, %v2276_v38  ;;  %v1022_v12 = vadd.f32 %v1021_v10, %v2276_v38  ;;  %1228 = vst [vmem:[%s2555_s17 + $0x120] sm:$0xff] (%p1916_p9), %v1227_v57  ;;  %1230 = vst [vmem:[%s2555_s17 + $0x128] sm:$0xff] (%p1916_p9), %v1229_v58  ;;  %v1259_v9 = vld [vmem:[%s2282_s12 + $0xe0] sm:$0xff] (%p1916_p9)  ;;  %v1261_v10 = vld [vmem:[%s2282_s12 + $0xe8] sm:$0xff] (%p1916_p9) }
 0x1c7   : > { %1102 = vst [vmem:[%s2282_s12 + $0x1b0] sm:$0xff] %v828_v7  ;;  %1166 = vst [vmem:[%s2282_s12 + $0x3b0] sm:$0xff] %v1020_v8  ;;  %v1255_v7 = vld [vmem:[%s2282_s12 + $0xd0] sm:$0xff] (%p1916_p9)  ;;  %v1257_v8 = vld [vmem:[%s2282_s12 + $0xd8] sm:$0xff] (%p1916_p9) }
 0x1c8   : > { %1103 = vst [vmem:[%s2282_s12 + $0x1b8] sm:$0xff] %v830_v11  ;;  %1167 = vst [vmem:[%s2282_s12 + $0x3b8] sm:$0xff] %v1022_v12  ;;  %v833_v13 = vpop.f32.mrb[56].mxu0  ;;  %v1025_v14 = vpop.f32.mrb[56].mxu1  ;;  %v1263_v11 = vld [vmem:[%s2282_s12 + $0xf0] sm:$0xff] (%p1916_p9)  ;;  %v1265_v12 = vld [vmem:[%s2282_s12 + $0xf8] sm:$0xff] (%p1916_p9) }
 0x1c9   : > { %v834_v15 = vadd.f32 %v833_v13, %v2274_v37  ;;  %v1026_v16 = vadd.f32 %v1025_v14, %v2274_v37  ;;  %v835_v17 = vpop.f32.mrb[57].mxu0  ;;  %v1027_v18 = vpop.f32.mrb[57].mxu1  ;;  %1232 = vst [vmem:[%s2555_s17 + $0x150] sm:$0xff] (%p1916_p9), %v1231_v59  ;;  %1234 = vst [vmem:[%s2555_s17 + $0x158] sm:$0xff] (%p1916_p9), %v1233_v60  ;;  %v1267_v13 = vld [vmem:[%s2282_s12 + $0x100] sm:$0xff] (%p1916_p9)  ;;  %v1269_v14 = vld [vmem:[%s2282_s12 + $0x108] sm:$0xff] (%p1916_p9) }
 0x1ca   : > { %v836_v19 = vadd.f32 %v835_v17, %v2276_v38  ;;  %v1028_v20 = vadd.f32 %v1027_v18, %v2276_v38  ;;  %1236 = vst [vmem:[%s2555_s17 + $0x180] sm:$0xff] (%p1916_p9), %v1235_v61  ;;  %1238 = vst [vmem:[%s2555_s17 + $0x188] sm:$0xff] (%p1916_p9), %v1237_v62  ;;  %v1275_v17 = vld [vmem:[%s2282_s12 + $0x120] sm:$0xff] (%p1916_p9)  ;;  %v1277_v18 = vld [vmem:[%s2282_s12 + $0x128] sm:$0xff] (%p1916_p9) }
 0x1cb   : > { %1104 = vst [vmem:[%s2282_s12 + $0x1c0] sm:$0xff] %v834_v15  ;;  %1168 = vst [vmem:[%s2282_s12 + $0x3c0] sm:$0xff] %v1026_v16  ;;  %v1271_v15 = vld [vmem:[%s2282_s12 + $0x110] sm:$0xff] (%p1916_p9)  ;;  %v1273_v16 = vld [vmem:[%s2282_s12 + $0x118] sm:$0xff] (%p1916_p9) }
 0x1cc   : > { %1105 = vst [vmem:[%s2282_s12 + $0x1c8] sm:$0xff] %v836_v19  ;;  %1169 = vst [vmem:[%s2282_s12 + $0x3c8] sm:$0xff] %v1028_v20  ;;  %v839_v21 = vpop.f32.mrb[58].mxu0  ;;  %v1031_v22 = vpop.f32.mrb[58].mxu1  ;;  %v1279_v19 = vld [vmem:[%s2282_s12 + $0x130] sm:$0xff] (%p1916_p9)  ;;  %v1281_v20 = vld [vmem:[%s2282_s12 + $0x138] sm:$0xff] (%p1916_p9) }
 0x1cd   : > { %v840_v23 = vadd.f32 %v839_v21, %v2274_v37  ;;  %v1032_v24 = vadd.f32 %v1031_v22, %v2274_v37  ;;  %v841_v25 = vpop.f32.mrb[59].mxu0  ;;  %v1033_v26 = vpop.f32.mrb[59].mxu1  ;;  %1240 = vst [vmem:[%s2555_s17 + $0x1b0] sm:$0xff] (%p1916_p9), %v1239_v63  ;;  %1242 = vst [vmem:[%s2555_s17 + $0x1b8] sm:$0xff] (%p1916_p9), %v1241_v0  ;;  %v1283_v21 = vld [vmem:[%s2282_s12 + $0x140] sm:$0xff] (%p1916_p9)  ;;  %v1285_v22 = vld [vmem:[%s2282_s12 + $0x148] sm:$0xff] (%p1916_p9) }
 0x1ce   : > { %v842_v27 = vadd.f32 %v841_v25, %v2276_v38  ;;  %v1034_v28 = vadd.f32 %v1033_v26, %v2276_v38  ;;  %1244 = vst [vmem:[%s2555_s17 + $0x1e0] sm:$0xff] (%p1916_p9), %v1243_v1  ;;  %1246 = vst [vmem:[%s2555_s17 + $0x1e8] sm:$0xff] (%p1916_p9), %v1245_v2  ;;  %v1291_v25 = vld [vmem:[%s2282_s12 + $0x160] sm:$0xff] (%p1916_p9)  ;;  %v1293_v26 = vld [vmem:[%s2282_s12 + $0x168] sm:$0xff] (%p1916_p9) }
 0x1cf   : > { %1106 = vst [vmem:[%s2282_s12 + $0x1d0] sm:$0xff] %v840_v23  ;;  %1170 = vst [vmem:[%s2282_s12 + $0x3d0] sm:$0xff] %v1032_v24  ;;  %v1287_v23 = vld [vmem:[%s2282_s12 + $0x150] sm:$0xff] (%p1916_p9)  ;;  %v1289_v24 = vld [vmem:[%s2282_s12 + $0x158] sm:$0xff] (%p1916_p9) }
 0x1d0   : > { %1107 = vst [vmem:[%s2282_s12 + $0x1d8] sm:$0xff] %v842_v27  ;;  %1171 = vst [vmem:[%s2282_s12 + $0x3d8] sm:$0xff] %v1034_v28  ;;  %v845_v29 = vpop.f32.mrb[60].mxu0  ;;  %v1037_v30 = vpop.f32.mrb[60].mxu1  ;;  %v1295_v27 = vld [vmem:[%s2282_s12 + $0x170] sm:$0xff] (%p1916_p9)  ;;  %v1297_v28 = vld [vmem:[%s2282_s12 + $0x178] sm:$0xff] (%p1916_p9) }
 0x1d1   : > { %v846_v31 = vadd.f32 %v845_v29, %v2274_v37  ;;  %v1038_v32 = vadd.f32 %v1037_v30, %v2274_v37  ;;  %v847_v33 = vpop.f32.mrb[61].mxu0  ;;  %v1039_v34 = vpop.f32.mrb[61].mxu1  ;;  %1248 = vst [vmem:[%s2555_s17 + $0x210] sm:$0xff] (%p1916_p9), %v1247_v3  ;;  %1250 = vst [vmem:[%s2555_s17 + $0x218] sm:$0xff] (%p1916_p9), %v1249_v4  ;;  %v1299_v29 = vld [vmem:[%s2282_s12 + $0x180] sm:$0xff] (%p1916_p9)  ;;  %v1301_v30 = vld [vmem:[%s2282_s12 + $0x188] sm:$0xff] (%p1916_p9) }
 0x1d2   : > { %v848_v35 = vadd.f32 %v847_v33, %v2276_v38  ;;  %v1040_v36 = vadd.f32 %v1039_v34, %v2276_v38  ;;  %1182 = sbr.rel (!%p1916_p9) target bundleno = 523 (0x20b), region = 59  ;;  %1252 = vst [vmem:[%s2555_s17 + $0x240] sm:$0xff] (%p1916_p9), %v1251_v5  ;;  %1254 = vst [vmem:[%s2555_s17 + $0x248] sm:$0xff] (%p1916_p9), %v1253_v6  ;;  %v1307_v33 = vld [vmem:[%s2282_s12 + $0x1a0] sm:$0xff] (%p1916_p9)  ;;  %v1309_v34 = vld [vmem:[%s2282_s12 + $0x1a8] sm:$0xff] (%p1916_p9) }
 0x1d3   : > { %1108 = vst [vmem:[%s2282_s12 + $0x1e0] sm:$0xff] %v846_v31  ;;  %1172 = vst [vmem:[%s2282_s12 + $0x3e0] sm:$0xff] %v1038_v32  ;;  %v1303_v31 = vld [vmem:[%s2282_s12 + $0x190] sm:$0xff] (%p1916_p9)  ;;  %v1305_v32 = vld [vmem:[%s2282_s12 + $0x198] sm:$0xff] (%p1916_p9) }
 0x1d4   : > { %1109 = vst [vmem:[%s2282_s12 + $0x1e8] sm:$0xff] %v848_v35  ;;  %1173 = vst [vmem:[%s2282_s12 + $0x3e8] sm:$0xff] %v1040_v36  ;;  %v851_v39 = vpop.f32.mrb[62].mxu0  ;;  %v1043_v40 = vpop.f32.mrb[62].mxu1  ;;  %v1311_v35 = vld [vmem:[%s2282_s12 + $0x1b0] sm:$0xff] (%p1916_p9)  ;;  %v1313_v36 = vld [vmem:[%s2282_s12 + $0x1b8] sm:$0xff] (%p1916_p9) }
 0x1d5   : > { %v852_v41 = vadd.f32 %v851_v39, %v2274_v37  ;;  %v1044_v42 = vadd.f32 %v1043_v40, %v2274_v37  ;;  %v853_v43 = vpop.f32.mrb[63].mxu0  ;;  %v1045_v44 = vpop.f32.mrb[63].mxu1  ;;  %v1203_v37 = vld [vmem:[%s2282_s12] sm:$0xff] (%p1916_p9)  ;;  %1256 = vst [vmem:[%s2555_s17 + $0x270] sm:$0xff] (%p1916_p9), %v1255_v7  ;;  %1258 = vst [vmem:[%s2555_s17 + $0x278] sm:$0xff] (%p1916_p9), %v1257_v8  ;;  %v1317_v40 = vld [vmem:[%s2282_s12 + $0x1c8] sm:$0xff] (%p1916_p9) }
 0x1d6   : > { %v854_v45 = vadd.f32 %v853_v43, %v2276_v38  ;;  %v1046_v46 = vadd.f32 %v1045_v44, %v2276_v38  ;;  %v1205_v38 = vld [vmem:[%s2282_s12 + $0x8] sm:$0xff] (%p1916_p9)  ;;  %1204 = vst [vmem:[%s2555_s17] sm:$0xff] (%p1916_p9), %v1203_v37  ;;  %1260 = vst [vmem:[%s2555_s17 + $0x2a0] sm:$0xff] (%p1916_p9), %v1259_v9  ;;  %v1315_v39 = vld [vmem:[%s2282_s12 + $0x1c0] sm:$0xff] (%p1916_p9) }
 0x1d7   : > { %1110 = vst [vmem:[%s2282_s12 + $0x1f0] sm:$0xff] %v852_v41  ;;  %1174 = vst [vmem:[%s2282_s12 + $0x3f0] sm:$0xff] %v1044_v42  ;;  %v1319_v41 = vld [vmem:[%s2282_s12 + $0x1d0] sm:$0xff] (%p1916_p9)  ;;  %v1321_v42 = vld [vmem:[%s2282_s12 + $0x1d8] sm:$0xff] (%p1916_p9) }
 0x1d8   : > { %1111 = vst [vmem:[%s2282_s12 + $0x1f8] sm:$0xff] %v854_v45  ;;  %1175 = vst [vmem:[%s2282_s12 + $0x3f8] sm:$0xff] %v1046_v46  ;;  %v1331_v37 = vld [vmem:[%s2282_s12 + $0x200] sm:$0xff] (%p1916_p9)  ;;  %v1335_v47 = vld [vmem:[%s2282_s12 + $0x210] sm:$0xff] (%p1916_p9) }
 0x1d9   : > { %1206 = vst [vmem:[%s2555_s17 + $0x8] sm:$0xff] %v1205_v38  ;;  %1262 = vst [vmem:[%s2555_s17 + $0x2a8] sm:$0xff] %v1261_v10  ;;  %v1333_v38 = vld [vmem:[%s2282_s12 + $0x208] sm:$0xff]  ;;  %v1337_v48 = vld [vmem:[%s2282_s12 + $0x218] sm:$0xff] }
 0x1da   : > { %1264 = vst [vmem:[%s2555_s17 + $0x2d0] sm:$0xff] %v1263_v11  ;;  %1266 = vst [vmem:[%s2555_s17 + $0x2d8] sm:$0xff] %v1265_v12  ;;  %v1323_v43 = vld [vmem:[%s2282_s12 + $0x1e0] sm:$0xff]  ;;  %v1341_v50 = vld [vmem:[%s2282_s12 + $0x228] sm:$0xff] }
 0x1db   : > { %1268 = vst [vmem:[%s2555_s17 + $0x300] sm:$0xff] %v1267_v13  ;;  %1270 = vst [vmem:[%s2555_s17 + $0x308] sm:$0xff] %v1269_v14  ;;  %v1325_v44 = vld [vmem:[%s2282_s12 + $0x1e8] sm:$0xff]  ;;  %v1339_v49 = vld [vmem:[%s2282_s12 + $0x220] sm:$0xff] }
 0x1dc   : > { %1272 = vst [vmem:[%s2555_s17 + $0x330] sm:$0xff] %v1271_v15  ;;  %1274 = vst [vmem:[%s2555_s17 + $0x338] sm:$0xff] %v1273_v16  ;;  %v1343_v51 = vld [vmem:[%s2282_s12 + $0x230] sm:$0xff]  ;;  %v1345_v52 = vld [vmem:[%s2282_s12 + $0x238] sm:$0xff] }
 0x1dd   : > { %1276 = vst [vmem:[%s2555_s17 + $0x360] sm:$0xff] %v1275_v17  ;;  %1278 = vst [vmem:[%s2555_s17 + $0x368] sm:$0xff] %v1277_v18  ;;  %v1347_v53 = vld [vmem:[%s2282_s12 + $0x240] sm:$0xff]  ;;  %v1349_v54 = vld [vmem:[%s2282_s12 + $0x248] sm:$0xff] }
 0x1de   : > { %1280 = vst [vmem:[%s2555_s17 + $0x390] sm:$0xff] %v1279_v19  ;;  %1282 = vst [vmem:[%s2555_s17 + $0x398] sm:$0xff] %v1281_v20  ;;  %v1327_v45 = vld [vmem:[%s2282_s12 + $0x1f0] sm:$0xff]  ;;  %v1353_v56 = vld [vmem:[%s2282_s12 + $0x258] sm:$0xff] }
 0x1df   : > { %1284 = vst [vmem:[%s2555_s17 + $0x3c0] sm:$0xff] %v1283_v21  ;;  %1286 = vst [vmem:[%s2555_s17 + $0x3c8] sm:$0xff] %v1285_v22  ;;  %v1329_v46 = vld [vmem:[%s2282_s12 + $0x1f8] sm:$0xff]  ;;  %v1351_v55 = vld [vmem:[%s2282_s12 + $0x250] sm:$0xff] }
 0x1e0   : > { %1288 = vst [vmem:[%s2555_s17 + $0x3f0] sm:$0xff] %v1287_v23  ;;  %1290 = vst [vmem:[%s2555_s17 + $0x3f8] sm:$0xff] %v1289_v24  ;;  %v1355_v57 = vld [vmem:[%s2282_s12 + $0x260] sm:$0xff]  ;;  %v1357_v58 = vld [vmem:[%s2282_s12 + $0x268] sm:$0xff] }
 0x1e1   : > { %1292 = vst [vmem:[%s2555_s17 + $0x420] sm:$0xff] %v1291_v25  ;;  %1294 = vst [vmem:[%s2555_s17 + $0x428] sm:$0xff] %v1293_v26  ;;  %v1359_v59 = vld [vmem:[%s2282_s12 + $0x270] sm:$0xff]  ;;  %v1361_v60 = vld [vmem:[%s2282_s12 + $0x278] sm:$0xff] }
 0x1e2   : > { %1296 = vst [vmem:[%s2555_s17 + $0x450] sm:$0xff] %v1295_v27  ;;  %1298 = vst [vmem:[%s2555_s17 + $0x458] sm:$0xff] %v1297_v28  ;;  %v1363_v61 = vld [vmem:[%s2282_s12 + $0x280] sm:$0xff]  ;;  %v1365_v62 = vld [vmem:[%s2282_s12 + $0x288] sm:$0xff] }
 0x1e3   : > { %1300 = vst [vmem:[%s2555_s17 + $0x480] sm:$0xff] %v1299_v29  ;;  %1302 = vst [vmem:[%s2555_s17 + $0x488] sm:$0xff] %v1301_v30  ;;  %v1367_v63 = vld [vmem:[%s2282_s12 + $0x290] sm:$0xff]  ;;  %v1369_v0 = vld [vmem:[%s2282_s12 + $0x298] sm:$0xff] }
 0x1e4   : > { %1304 = vst [vmem:[%s2555_s17 + $0x4b0] sm:$0xff] %v1303_v31  ;;  %1306 = vst [vmem:[%s2555_s17 + $0x4b8] sm:$0xff] %v1305_v32  ;;  %v1371_v1 = vld [vmem:[%s2282_s12 + $0x2a0] sm:$0xff]  ;;  %v1373_v2 = vld [vmem:[%s2282_s12 + $0x2a8] sm:$0xff] }
 0x1e5   : > { %1308 = vst [vmem:[%s2555_s17 + $0x4e0] sm:$0xff] %v1307_v33  ;;  %1310 = vst [vmem:[%s2555_s17 + $0x4e8] sm:$0xff] %v1309_v34  ;;  %v1375_v3 = vld [vmem:[%s2282_s12 + $0x2b0] sm:$0xff]  ;;  %v1377_v4 = vld [vmem:[%s2282_s12 + $0x2b8] sm:$0xff] }
 0x1e6   : > { %1312 = vst [vmem:[%s2555_s17 + $0x510] sm:$0xff] %v1311_v35  ;;  %1314 = vst [vmem:[%s2555_s17 + $0x518] sm:$0xff] %v1313_v36  ;;  %v1379_v5 = vld [vmem:[%s2282_s12 + $0x2c0] sm:$0xff]  ;;  %v1381_v6 = vld [vmem:[%s2282_s12 + $0x2c8] sm:$0xff] }
 0x1e7   : > { %1316 = vst [vmem:[%s2555_s17 + $0x540] sm:$0xff] %v1315_v39  ;;  %1318 = vst [vmem:[%s2555_s17 + $0x548] sm:$0xff] %v1317_v40  ;;  %v1383_v7 = vld [vmem:[%s2282_s12 + $0x2d0] sm:$0xff]  ;;  %v1385_v8 = vld [vmem:[%s2282_s12 + $0x2d8] sm:$0xff] }
 0x1e8   : > { %1320 = vst [vmem:[%s2555_s17 + $0x570] sm:$0xff] %v1319_v41  ;;  %1322 = vst [vmem:[%s2555_s17 + $0x578] sm:$0xff] %v1321_v42  ;;  %v1387_v9 = vld [vmem:[%s2282_s12 + $0x2e0] sm:$0xff]  ;;  %v1389_v10 = vld [vmem:[%s2282_s12 + $0x2e8] sm:$0xff] }
 0x1e9   : > { %1324 = vst [vmem:[%s2555_s17 + $0x5a0] sm:$0xff] %v1323_v43  ;;  %1326 = vst [vmem:[%s2555_s17 + $0x5a8] sm:$0xff] %v1325_v44  ;;  %v1391_v11 = vld [vmem:[%s2282_s12 + $0x2f0] sm:$0xff]  ;;  %v1393_v12 = vld [vmem:[%s2282_s12 + $0x2f8] sm:$0xff] }
 0x1ea   : > { %1328 = vst [vmem:[%s2555_s17 + $0x5d0] sm:$0xff] %v1327_v45  ;;  %1330 = vst [vmem:[%s2555_s17 + $0x5d8] sm:$0xff] %v1329_v46  ;;  %v1395_v13 = vld [vmem:[%s2282_s12 + $0x300] sm:$0xff]  ;;  %v1397_v14 = vld [vmem:[%s2282_s12 + $0x308] sm:$0xff] }
 0x1eb   : > { %1332 = vst [vmem:[%s2555_s17 + $0x600] sm:$0xff] %v1331_v37  ;;  %1334 = vst [vmem:[%s2555_s17 + $0x608] sm:$0xff] %v1333_v38  ;;  %v1399_v15 = vld [vmem:[%s2282_s12 + $0x310] sm:$0xff]  ;;  %v1401_v16 = vld [vmem:[%s2282_s12 + $0x318] sm:$0xff] }
 0x1ec   : > { %1336 = vst [vmem:[%s2555_s17 + $0x630] sm:$0xff] %v1335_v47  ;;  %1338 = vst [vmem:[%s2555_s17 + $0x638] sm:$0xff] %v1337_v48  ;;  %v1403_v17 = vld [vmem:[%s2282_s12 + $0x320] sm:$0xff]  ;;  %v1405_v18 = vld [vmem:[%s2282_s12 + $0x328] sm:$0xff] }
 0x1ed   : > { %1340 = vst [vmem:[%s2555_s17 + $0x660] sm:$0xff] %v1339_v49  ;;  %1342 = vst [vmem:[%s2555_s17 + $0x668] sm:$0xff] %v1341_v50  ;;  %v1407_v19 = vld [vmem:[%s2282_s12 + $0x330] sm:$0xff]  ;;  %v1409_v20 = vld [vmem:[%s2282_s12 + $0x338] sm:$0xff] }
 0x1ee   : > { %1344 = vst [vmem:[%s2555_s17 + $0x690] sm:$0xff] %v1343_v51  ;;  %1346 = vst [vmem:[%s2555_s17 + $0x698] sm:$0xff] %v1345_v52  ;;  %v1411_v21 = vld [vmem:[%s2282_s12 + $0x340] sm:$0xff]  ;;  %v1413_v22 = vld [vmem:[%s2282_s12 + $0x348] sm:$0xff] }
 0x1ef   : > { %1348 = vst [vmem:[%s2555_s17 + $0x6c0] sm:$0xff] %v1347_v53  ;;  %1350 = vst [vmem:[%s2555_s17 + $0x6c8] sm:$0xff] %v1349_v54  ;;  %v1415_v23 = vld [vmem:[%s2282_s12 + $0x350] sm:$0xff]  ;;  %v1417_v24 = vld [vmem:[%s2282_s12 + $0x358] sm:$0xff] }
 0x1f0   : > { %1352 = vst [vmem:[%s2555_s17 + $0x6f0] sm:$0xff] %v1351_v55  ;;  %1354 = vst [vmem:[%s2555_s17 + $0x6f8] sm:$0xff] %v1353_v56  ;;  %v1419_v25 = vld [vmem:[%s2282_s12 + $0x360] sm:$0xff]  ;;  %v1421_v26 = vld [vmem:[%s2282_s12 + $0x368] sm:$0xff] }
 0x1f1   : > { %1356 = vst [vmem:[%s2555_s17 + $0x720] sm:$0xff] %v1355_v57  ;;  %1358 = vst [vmem:[%s2555_s17 + $0x728] sm:$0xff] %v1357_v58  ;;  %v1423_v27 = vld [vmem:[%s2282_s12 + $0x370] sm:$0xff]  ;;  %v1425_v28 = vld [vmem:[%s2282_s12 + $0x378] sm:$0xff] }
 0x1f2   : > { %1360 = vst [vmem:[%s2555_s17 + $0x750] sm:$0xff] %v1359_v59  ;;  %1362 = vst [vmem:[%s2555_s17 + $0x758] sm:$0xff] %v1361_v60  ;;  %v1427_v29 = vld [vmem:[%s2282_s12 + $0x380] sm:$0xff]  ;;  %v1429_v30 = vld [vmem:[%s2282_s12 + $0x388] sm:$0xff] }
 0x1f3   : > { %1364 = vst [vmem:[%s2555_s17 + $0x780] sm:$0xff] %v1363_v61  ;;  %1366 = vst [vmem:[%s2555_s17 + $0x788] sm:$0xff] %v1365_v62  ;;  %v1431_v31 = vld [vmem:[%s2282_s12 + $0x390] sm:$0xff]  ;;  %v1433_v32 = vld [vmem:[%s2282_s12 + $0x398] sm:$0xff] }
 0x1f4   : > { %1368 = vst [vmem:[%s2555_s17 + $0x7b0] sm:$0xff] %v1367_v63  ;;  %1370 = vst [vmem:[%s2555_s17 + $0x7b8] sm:$0xff] %v1369_v0  ;;  %v1435_v33 = vld [vmem:[%s2282_s12 + $0x3a0] sm:$0xff]  ;;  %v1437_v34 = vld [vmem:[%s2282_s12 + $0x3a8] sm:$0xff] }
 0x1f5   : > { %1372 = vst [vmem:[%s2555_s17 + $0x7e0] sm:$0xff] %v1371_v1  ;;  %1374 = vst [vmem:[%s2555_s17 + $0x7e8] sm:$0xff] %v1373_v2  ;;  %v1439_v35 = vld [vmem:[%s2282_s12 + $0x3b0] sm:$0xff]  ;;  %v1441_v36 = vld [vmem:[%s2282_s12 + $0x3b8] sm:$0xff] }
 0x1f6   : > { %1376 = vst [vmem:[%s2555_s17 + $0x810] sm:$0xff] %v1375_v3  ;;  %1378 = vst [vmem:[%s2555_s17 + $0x818] sm:$0xff] %v1377_v4  ;;  %v1443_v39 = vld [vmem:[%s2282_s12 + $0x3c0] sm:$0xff]  ;;  %v1445_v40 = vld [vmem:[%s2282_s12 + $0x3c8] sm:$0xff] }
 0x1f7   : > { %1380 = vst [vmem:[%s2555_s17 + $0x840] sm:$0xff] %v1379_v5  ;;  %1382 = vst [vmem:[%s2555_s17 + $0x848] sm:$0xff] %v1381_v6  ;;  %v1447_v41 = vld [vmem:[%s2282_s12 + $0x3d0] sm:$0xff]  ;;  %v1449_v42 = vld [vmem:[%s2282_s12 + $0x3d8] sm:$0xff] }
 0x1f8   : > { %1384 = vst [vmem:[%s2555_s17 + $0x870] sm:$0xff] %v1383_v7  ;;  %1386 = vst [vmem:[%s2555_s17 + $0x878] sm:$0xff] %v1385_v8  ;;  %v1451_v43 = vld [vmem:[%s2282_s12 + $0x3e0] sm:$0xff]  ;;  %v1453_v44 = vld [vmem:[%s2282_s12 + $0x3e8] sm:$0xff] }
 0x1f9   : > { %1388 = vst [vmem:[%s2555_s17 + $0x8a0] sm:$0xff] %v1387_v9  ;;  %1390 = vst [vmem:[%s2555_s17 + $0x8a8] sm:$0xff] %v1389_v10  ;;  %v1455_v45 = vld [vmem:[%s2282_s12 + $0x3f0] sm:$0xff]  ;;  %v1457_v46 = vld [vmem:[%s2282_s12 + $0x3f8] sm:$0xff] }
 0x1fa   : > { %1392 = vst [vmem:[%s2555_s17 + $0x8d0] sm:$0xff] %v1391_v11  ;;  %1394 = vst [vmem:[%s2555_s17 + $0x8d8] sm:$0xff] %v1393_v12 }
 0x1fb   : > { %1396 = vst [vmem:[%s2555_s17 + $0x900] sm:$0xff] %v1395_v13  ;;  %1398 = vst [vmem:[%s2555_s17 + $0x908] sm:$0xff] %v1397_v14 }
 0x1fc   : > { %1400 = vst [vmem:[%s2555_s17 + $0x930] sm:$0xff] %v1399_v15  ;;  %1402 = vst [vmem:[%s2555_s17 + $0x938] sm:$0xff] %v1401_v16 }
 0x1fd   : > { %1404 = vst [vmem:[%s2555_s17 + $0x960] sm:$0xff] %v1403_v17  ;;  %1406 = vst [vmem:[%s2555_s17 + $0x968] sm:$0xff] %v1405_v18 }
 0x1fe   : > { %1408 = vst [vmem:[%s2555_s17 + $0x990] sm:$0xff] %v1407_v19  ;;  %1410 = vst [vmem:[%s2555_s17 + $0x998] sm:$0xff] %v1409_v20 }
 0x1ff   : > { %1412 = vst [vmem:[%s2555_s17 + $0x9c0] sm:$0xff] %v1411_v21  ;;  %1414 = vst [vmem:[%s2555_s17 + $0x9c8] sm:$0xff] %v1413_v22 }
 0x200   : > { %1416 = vst [vmem:[%s2555_s17 + $0x9f0] sm:$0xff] %v1415_v23  ;;  %1418 = vst [vmem:[%s2555_s17 + $0x9f8] sm:$0xff] %v1417_v24 }
 0x201   : > { %1420 = vst [vmem:[%s2555_s17 + $0xa20] sm:$0xff] %v1419_v25  ;;  %1422 = vst [vmem:[%s2555_s17 + $0xa28] sm:$0xff] %v1421_v26 }
 0x202   : > { %1424 = vst [vmem:[%s2555_s17 + $0xa50] sm:$0xff] %v1423_v27  ;;  %1426 = vst [vmem:[%s2555_s17 + $0xa58] sm:$0xff] %v1425_v28 }
 0x203   : > { %1428 = vst [vmem:[%s2555_s17 + $0xa80] sm:$0xff] %v1427_v29  ;;  %1430 = vst [vmem:[%s2555_s17 + $0xa88] sm:$0xff] %v1429_v30 }
 0x204   : > { %1432 = vst [vmem:[%s2555_s17 + $0xab0] sm:$0xff] %v1431_v31  ;;  %1434 = vst [vmem:[%s2555_s17 + $0xab8] sm:$0xff] %v1433_v32 }
 0x205   : > { %1436 = vst [vmem:[%s2555_s17 + $0xae0] sm:$0xff] %v1435_v33  ;;  %1438 = vst [vmem:[%s2555_s17 + $0xae8] sm:$0xff] %v1437_v34 }
 0x206   : > { %1440 = vst [vmem:[%s2555_s17 + $0xb10] sm:$0xff] %v1439_v35  ;;  %1442 = vst [vmem:[%s2555_s17 + $0xb18] sm:$0xff] %v1441_v36 }
 0x207   : > { %1444 = vst [vmem:[%s2555_s17 + $0xb40] sm:$0xff] %v1443_v39  ;;  %1446 = vst [vmem:[%s2555_s17 + $0xb48] sm:$0xff] %v1445_v40 }
 0x208   : > { %1448 = vst [vmem:[%s2555_s17 + $0xb70] sm:$0xff] %v1447_v41  ;;  %1450 = vst [vmem:[%s2555_s17 + $0xb78] sm:$0xff] %v1449_v42 }
 0x209   : > { %1452 = vst [vmem:[%s2555_s17 + $0xba0] sm:$0xff] %v1451_v43  ;;  %1454 = vst [vmem:[%s2555_s17 + $0xba8] sm:$0xff] %v1453_v44 }
 0x20a   : > { %1456 = vst [vmem:[%s2555_s17 + $0xbd0] sm:$0xff] %v1455_v45  ;;  %1458 = vst [vmem:[%s2555_s17 + $0xbd8] sm:$0xff] %v1457_v46 }
 0x20b PF: > { %s13_s20 = sadd.s32 1, %s1827_s20   ;;  %s2833_s12 = smov %s1799_s13 }
 0x20c   : > { %p10_p2 = scmp.ge.s32.totalorder %s13_s20, 8   ;;  %s2834_s13 = smov %s1921_s4 }
 0x20d   : > { %s2835_s14 = smov %s1807_s15  ;;  %s2836_s15 = smov %s1910_s27 }
 0x20e   : > { %s2837_s16 = smov %s1819_s18  ;;  %s2838_s17 = smov %s1823_s19 }
 0x20f   : > { %s2839_s18 = smov %s2842_s22  ;;  %s2840_s19 = smov %s2846_s23 }
 0x210   :  { %12 = sbr.rel (!%p10_p2) target bundleno = 5 (0x5), region = 119 }

// kernel: multihead_attention.5
= control target key start
LH: loop header
LB: loop body
LE: loop exit
PB: predicated region body
PF: predicated region fallthrough
CT: control target
= control target key end

     0   :  { %8 = vsyncpa [#allocation3], 0  ;;  %s2148_s0 = inlined_call_operand.vmem [shape: f32[2,512,256], index: 0, kind: input, shape index: {}]   ;;  %s2149_s1 = inlined_call_operand.vmem [shape: f32[256,256], index: 1, kind: input, shape index: {}]   ;;  %s2150_s2 = inlined_call_operand.vmem [shape: f32[1,256], index: 2, kind: input, shape index: {}]   ;;  %s2151_s3 = inlined_call_operand.hbm [shape: f32[2,512,256], index: 3, kind: output, shape index: {}]  }
   0x1   :  { %10 = vsyncpa [#allocation3 + $0x1], 0  ;;  %s1441_s12 = smov 0   ;;  %s1443_s13 = smov 0  }
   0x2   :  { %s1445_s14 = smov 0   ;;  %s1447_s15 = smov 0  }
   0x3   :  { %s1449_s16 = smov 0   ;;  %s1451_s17 = smov 0  }
   0x4 LB: > { %s1168_s18 = sadd.s32 4294967295, %s1416_s17   ;;  %s1169_s19 = sadd.s32 4294967294, %s1416_s17   ;;  %s1416_s17 = sphi %s1451_s17, %s16_s17   ;;  %s1412_s16 = sphi %s1449_s16, %s2158_s16   ;;  %s1408_s15 = sphi %s1447_s15, %s2157_s15   ;;  %s1404_s14 = sphi %s1445_s14, %s2156_s14   ;;  %s1400_s13 = sphi %s1443_s13, %s2155_s13   ;;  %s1396_s12 = sphi %s1441_s12, %s2154_s12  }
   0x5   : > { %s35_s20 = sadd.s32 1, %s1412_s16  ;;  %s126_s21 = sadd.s32 1, %s1404_s14 }
   0x6   : > { %p37_p0 = scmp.ge.s32.totalorder %s35_s20, 2  ;;  %p136_p1 = scmp.ne.s32.totalorder %s1404_s14, %s1400_s13 }
   0x7   : > { %p137_p2 = scmp.eq.s32.totalorder %s1168_s18, 1  ;;  %p142_p3 = scmp.ne.s32.totalorder %s1400_s13, %s1396_s12 }
   0x8   : > { %s2160_s20 = smov (%p37_p0, %s35_s20), 0  ;;  %p143_p5 = scmp.eq.s32.totalorder %s1169_s19, 1 }
   0x9   : > { %p1481_p4 = por %p137_p2, %p136_p1  ;;  %s119_s23 = ssub.s32 %s1412_s16, %s2160_s20 }
   0xa   : > { %p1174_p6 = scmp.ge.s32.totalorder %s1416_s17, 1  ;;  %p124_p7 = scmp.eq.s32.totalorder %s119_s23, 0 }
   0xb   : > { %p1488_p8 = por %p143_p5, %p142_p3  ;;  %p192_p9 = scmp.lt.s32.totalorder %s1416_s17, 3 }
   0xc   : > { %s1494_s25 = scalar_select %p124_p7, %s1404_s14, %s126_s21  }
   0xd   : > { %p193_p10 = pnand %p1174_p6, %p192_p9 }
   0xe   : > { %v383_v0 = vld [vmem:[%s2149_s1 + $0x8] sm:$0xff] (!%p193_p10)  ;;  %v385_v1 = vld [vmem:[%s2149_s1 + $0x18] sm:$0xff] (!%p193_p10)  ;;  %v382_v2 = vld [vmem:[%s2149_s1] sm:$0xff] (!%p193_p10)  ;;  %p231_p11 = scmp.lt.s32.totalorder (!%p193_p10), %s1408_s15, 1  ;;  %s227_s27 = sand.u32 (!%p193_p10), 1, %s1400_s13  }
   0xf   : > { %196 = sbr.rel (%p193_p10) target bundleno = 435 (0x1b3), region = 32  ;;  %v1185_v3 = vpack.c.bf16 (!%p193_p10), %v385_v1, %v383_v0  ;;  %v384_v4 = vld [vmem:[%s2149_s1 + $0x10] sm:$0xff] (!%p193_p10)  ;;  %v387_v5 = vld [vmem:[%s2149_s1 + $0x28] sm:$0xff] (!%p193_p10)  ;;  %v389_v6 = vld [vmem:[%s2149_s1 + $0x38] sm:$0xff] (!%p193_p10)  ;;  %s1175_s30 = sshll.u32 (!%p193_p10), %s227_s27, 10 }
  0x10   : > { %v1187_v7 = vpack.c.bf16 (!%p193_p10), %v384_v4, %v382_v2  ;;  %v1189_v8 = vpack.c.bf16 (!%p193_p10), %v389_v6, %v387_v5  ;;  %v386_v9 = vld [vmem:[%s2149_s1 + $0x20] sm:$0xff] (!%p193_p10)  ;;  %v388_v10 = vld [vmem:[%s2149_s1 + $0x30] sm:$0xff] (!%p193_p10)  ;;  %v391_v11 = vld [vmem:[%s2149_s1 + $0x48] sm:$0xff] (!%p193_p10)  ;;  %s1184_s5 = sshll.u32 (!%p193_p10), %s1408_s15, 14  ;;  %s2102_s9 = scalar_lea.sflag (!%p193_p10), [#allocation3], %s227_s27 }
  0x11   : > { %1186 = vmatprep.subr.bf16.mxu0 (!%p193_p10), %v1185_v3  ;;  %1249 = vmatprep.subr.bf16.mxu1 (!%p193_p10), %v1185_v3  ;;  %v393_v12 = vld [vmem:[%s2149_s1 + $0x58] sm:$0xff] (!%p193_p10)  ;;  %v1191_v13 = vpack.c.bf16 (!%p193_p10), %v388_v10, %v386_v9  ;;  %v390_v15 = vld [vmem:[%s2149_s1 + $0x40] sm:$0xff] (!%p193_p10)  ;;  %v392_v16 = vld [vmem:[%s2149_s1 + $0x50] sm:$0xff] (!%p193_p10)  ;;  %s2090_s8 = scalar_lea.hbm (!%p193_p10), %s2151_s3, %s1184_s5  ;;  %s1418_s11 = smov (!%p193_p10), [#allocation2]  }
  0x12   : > { %1188 = vmatpush1.bf16.msra.mxu0 (!%p193_p10), %v1187_v7  ;;  %1265 = vmatpush1.bf16.msra.mxu1 (!%p193_p10), %v1187_v7  ;;  %v1193_v14 = vpack.c.bf16 (!%p193_p10), %v393_v12, %v391_v11  ;;  %v395_v17 = vld [vmem:[%s2149_s1 + $0x68] sm:$0xff] (!%p193_p10)  ;;  %v397_v18 = vld [vmem:[%s2149_s1 + $0x78] sm:$0xff] (!%p193_p10)  ;;  %v1195_v19 = vpack.c.bf16 (!%p193_p10), %v392_v16, %v390_v15  ;;  %v394_v21 = vld [vmem:[%s2149_s1 + $0x60] sm:$0xff] (!%p193_p10)  ;;  %s1342_s18 = sshll.u32 (!%p193_p10), %s1418_s11, 4  ;;  %s1343_s18 = int_to_ptr.vmem [resolvable:$false] %s1342_s18 }
  0x13   : > { %1190 = vmatprep.subr.bf16.mxu0 (!%p193_p10), %v1189_v8  ;;  %1250 = vmatprep.subr.bf16.mxu1 (!%p193_p10), %v1189_v8  ;;  %v1197_v20 = vpack.c.bf16 (!%p193_p10), %v397_v18, %v395_v17  ;;  %v396_v22 = vld [vmem:[%s2149_s1 + $0x70] sm:$0xff] (!%p193_p10)  ;;  %v399_v23 = vld [vmem:[%s2149_s1 + $0x88] sm:$0xff] (!%p193_p10)  ;;  %v401_v24 = vld [vmem:[%s2149_s1 + $0x98] sm:$0xff] (!%p193_p10)  ;;  %s1344_s19 = scalar_lea.vmem (!%p193_p10), %s1343_s18, 32768 }
  0x14   : > { %v1199_v25 = vpack.c.bf16 (!%p193_p10), %v396_v22, %v394_v21  ;;  %v1201_v26 = vpack.c.bf16 (!%p193_p10), %v401_v24, %v399_v23  ;;  %v398_v27 = vld [vmem:[%s2149_s1 + $0x80] sm:$0xff] (!%p193_p10)  ;;  %v400_v28 = vld [vmem:[%s2149_s1 + $0x90] sm:$0xff] (!%p193_p10)  ;;  %v403_v29 = vld [vmem:[%s2149_s1 + $0xa8] sm:$0xff] (!%p193_p10) }
  0x15   : > { %v405_v30 = vld [vmem:[%s2149_s1 + $0xb8] sm:$0xff] (!%p193_p10)  ;;  %v1203_v31 = vpack.c.bf16 (!%p193_p10), %v400_v28, %v398_v27  ;;  %v402_v33 = vld [vmem:[%s2149_s1 + $0xa0] sm:$0xff] (!%p193_p10)  ;;  %v404_v34 = vld [vmem:[%s2149_s1 + $0xb0] sm:$0xff] (!%p193_p10) }
  0x16   : > { %1192 = vmatpush1.bf16.msra.mxu0 %v1191_v13  ;;  %1266 = vmatpush1.bf16.msra.mxu1 %v1191_v13  ;;  %s232_s28 = scalar_select %p231_p11, %s1408_s15, 1  ;;  %v1205_v32 = vpack.c.bf16 %v405_v30, %v403_v29  ;;  %v407_v35 = vld [vmem:[%s2149_s1 + $0xc8] sm:$0xff]  ;;  %v409_v36 = vld [vmem:[%s2149_s1 + $0xd8] sm:$0xff]  ;;  %v1207_v37 = vpack.c.bf16 %v404_v34, %v402_v33  ;;  %v406_v38 = vld [vmem:[%s2149_s1 + $0xc0] sm:$0xff] }
  0x17   : > { %1194 = vmatprep.subr.bf16.mxu0 %v1193_v14  ;;  %1251 = vmatprep.subr.bf16.mxu1 %v1193_v14  ;;  %v1209_v39 = vpack.c.bf16 %v409_v36, %v407_v35  ;;  %v408_v40 = vld [vmem:[%s2149_s1 + $0xd0] sm:$0xff]  ;;  %v411_v43 = vld [vmem:[%s2149_s1 + $0xe8] sm:$0xff]  ;;  %v413_v44 = vld [vmem:[%s2149_s1 + $0xf8] sm:$0xff] }
  0x18   : > { %s1183_s10 = sshll.u32 %s232_s28, 10  ;;  %v1211_v45 = vpack.c.bf16 %v408_v40, %v406_v38  ;;  %v1213_v46 = vpack.c.bf16 %v413_v44, %v411_v43  ;;  %v410_v47 = vld [vmem:[%s2149_s1 + $0xe0] sm:$0xff]  ;;  %v412_v48 = vld [vmem:[%s2149_s1 + $0xf0] sm:$0xff]  ;;  %v415_v49 = vld [vmem:[%s2149_s1 + $0x108] sm:$0xff] }
  0x19   : > { %s1579_s4 = scalar_lea.vmem %s2148_s0, %s1183_s10  ;;  %v417_v50 = vld [vmem:[%s2149_s1 + $0x118] sm:$0xff]  ;;  %v1215_v51 = vpack.c.bf16 %v412_v48, %v410_v47  ;;  %v414_v53 = vld [vmem:[%s2149_s1 + $0x100] sm:$0xff]  ;;  %v416_v54 = vld [vmem:[%s2149_s1 + $0x110] sm:$0xff] }
  0x1a   : > { %1196 = vmatpush1.bf16.msra.mxu0 %v1195_v19  ;;  %1267 = vmatpush1.bf16.msra.mxu1 %v1195_v19  ;;  %v255_v41 = vld [vmem:[%s1579_s4 + $0x8] sm:$0xff]  ;;  %v1217_v52 = vpack.c.bf16 %v417_v50, %v415_v49  ;;  %v421_v56 = vld [vmem:[%s2149_s1 + $0x138] sm:$0xff]  ;;  %v1219_v57 = vpack.c.bf16 %v416_v54, %v414_v53  ;;  %v418_v59 = vld [vmem:[%s2149_s1 + $0x120] sm:$0xff] }
  0x1b   : > { %1198 = vmatprep.subr.bf16.mxu0 %v1197_v20  ;;  %1252 = vmatprep.subr.bf16.mxu1 %v1197_v20  ;;  %v319_v42 = vld [vmem:[%s1579_s4 + $0x208] sm:$0xff]  ;;  %v420_v60 = vld [vmem:[%s2149_s1 + $0x130] sm:$0xff]  ;;  %v425_v62 = vld [vmem:[%s2149_s1 + $0x158] sm:$0xff] }
  0x1c   : > { %522 = vmatprep.mubr.f32.mxu0 %v255_v41  ;;  %714 = vmatprep.mubr.f32.mxu1 %v319_v42  ;;  %v419_v55 = vld [vmem:[%s2149_s1 + $0x128] sm:$0xff]  ;;  %v1223_v63 = vpack.c.bf16 %v420_v60, %v418_v59  ;;  %v422_v1 = vld [vmem:[%s2149_s1 + $0x140] sm:$0xff]  ;;  %v424_v2 = vld [vmem:[%s2149_s1 + $0x150] sm:$0xff] }
  0x1d   : > { %v1221_v58 = vpack.c.bf16 %v421_v56, %v419_v55  ;;  %v423_v61 = vld [vmem:[%s2149_s1 + $0x148] sm:$0xff]  ;;  %v429_v4 = vld [vmem:[%s2149_s1 + $0x178] sm:$0xff]  ;;  %v1227_v5 = vpack.c.bf16 %v424_v2, %v422_v1  ;;  %v426_v7 = vld [vmem:[%s2149_s1 + $0x160] sm:$0xff] }
  0x1e   : > { %1200 = vmatpush1.bf16.msra.mxu0 %v1199_v25  ;;  %1268 = vmatpush1.bf16.msra.mxu1 %v1199_v25  ;;  %v1225_v0 = vpack.c.bf16 %v425_v62, %v423_v61  ;;  %v427_v3 = vld [vmem:[%s2149_s1 + $0x168] sm:$0xff]  ;;  %v428_v8 = vld [vmem:[%s2149_s1 + $0x170] sm:$0xff]  ;;  %v433_v10 = vld [vmem:[%s2149_s1 + $0x198] sm:$0xff] }
  0x1f   : > { %1202 = vmatprep.subr.bf16.mxu0 %v1201_v26  ;;  %1253 = vmatprep.subr.bf16.mxu1 %v1201_v26  ;;  %v1229_v6 = vpack.c.bf16 %v429_v4, %v427_v3  ;;  %v431_v9 = vld [vmem:[%s2149_s1 + $0x188] sm:$0xff]  ;;  %v1231_v11 = vpack.c.bf16 %v428_v8, %v426_v7  ;;  %v430_v13 = vld [vmem:[%s2149_s1 + $0x180] sm:$0xff]  ;;  %v432_v14 = vld [vmem:[%s2149_s1 + $0x190] sm:$0xff] }
  0x20   : > { %v1233_v12 = vpack.c.bf16 %v433_v10, %v431_v9  ;;  %v435_v15 = vld [vmem:[%s2149_s1 + $0x1a8] sm:$0xff]  ;;  %v437_v16 = vld [vmem:[%s2149_s1 + $0x1b8] sm:$0xff]  ;;  %v1235_v17 = vpack.c.bf16 %v432_v14, %v430_v13  ;;  %v434_v19 = vld [vmem:[%s2149_s1 + $0x1a0] sm:$0xff] }
  0x21   : > { %v1237_v18 = vpack.c.bf16 %v437_v16, %v435_v15  ;;  %v436_v20 = vld [vmem:[%s2149_s1 + $0x1b0] sm:$0xff]  ;;  %v439_v21 = vld [vmem:[%s2149_s1 + $0x1c8] sm:$0xff]  ;;  %v441_v22 = vld [vmem:[%s2149_s1 + $0x1d8] sm:$0xff] }
  0x22   : > { %1204 = vmatpush1.bf16.msra.mxu0 %v1203_v31  ;;  %1269 = vmatpush1.bf16.msra.mxu1 %v1203_v31  ;;  %v1239_v23 = vpack.c.bf16 %v436_v20, %v434_v19  ;;  %v1241_v24 = vpack.c.bf16 %v441_v22, %v439_v21  ;;  %v438_v25 = vld [vmem:[%s2149_s1 + $0x1c0] sm:$0xff]  ;;  %v440_v26 = vld [vmem:[%s2149_s1 + $0x1d0] sm:$0xff]  ;;  %v443_v27 = vld [vmem:[%s2149_s1 + $0x1e8] sm:$0xff] }
  0x23   : > { %1206 = vmatprep.subr.bf16.mxu0 %v1205_v32  ;;  %1254 = vmatprep.subr.bf16.mxu1 %v1205_v32  ;;  %v445_v28 = vld [vmem:[%s2149_s1 + $0x1f8] sm:$0xff]  ;;  %v1243_v29 = vpack.c.bf16 %v440_v26, %v438_v25  ;;  %v442_v31 = vld [vmem:[%s2149_s1 + $0x1e0] sm:$0xff]  ;;  %v444_v32 = vld [vmem:[%s2149_s1 + $0x1f0] sm:$0xff] }
  0x24   : > { %v1245_v30 = vpack.c.bf16 %v445_v28, %v443_v27  ;;  %v1247_v33 = vpack.c.bf16 %v444_v32, %v442_v31  ;;  %v254_v34 = vld [vmem:[%s1579_s4] sm:$0xff]  ;;  %v257_v36 = vld [vmem:[%s1579_s4 + $0x18] sm:$0xff]  ;;  %v256_v38 = vld [vmem:[%s1579_s4 + $0x10] sm:$0xff] }
  0x25   : > { %v318_v35 = vld [vmem:[%s1579_s4 + $0x200] sm:$0xff]  ;;  %v259_v40 = vld [vmem:[%s1579_s4 + $0x28] sm:$0xff]  ;;  %v261_v44 = vld [vmem:[%s1579_s4 + $0x38] sm:$0xff] }
  0x26   : > { %1208 = vmatpush1.bf16.msra.mxu0 %v1207_v37  ;;  %1270 = vmatpush1.bf16.msra.mxu1 %v1207_v37  ;;  %v321_v37 = vld [vmem:[%s1579_s4 + $0x218] sm:$0xff]  ;;  %v323_v41 = vld [vmem:[%s1579_s4 + $0x228] sm:$0xff]  ;;  %v258_v42 = vld [vmem:[%s1579_s4 + $0x20] sm:$0xff] }
  0x27   : > { %1210 = vmatprep.subr.bf16.mxu0 %v1209_v39  ;;  %1255 = vmatprep.subr.bf16.mxu1 %v1209_v39  ;;  %v320_v39 = vld [vmem:[%s1579_s4 + $0x210] sm:$0xff]  ;;  %v322_v43 = vld [vmem:[%s1579_s4 + $0x220] sm:$0xff]  ;;  %v263_v48 = vld [vmem:[%s1579_s4 + $0x48] sm:$0xff] }
  0x28   : > { %v324_v47 = vld [vmem:[%s1579_s4 + $0x230] sm:$0xff]  ;;  %v327_v49 = vld [vmem:[%s1579_s4 + $0x248] sm:$0xff]  ;;  %v262_v50 = vld [vmem:[%s1579_s4 + $0x40] sm:$0xff] }
  0x29   : > { %v329_v53 = vld [vmem:[%s1579_s4 + $0x258] sm:$0xff]  ;;  %v264_v54 = vld [vmem:[%s1579_s4 + $0x50] sm:$0xff]  ;;  %v267_v56 = vld [vmem:[%s1579_s4 + $0x68] sm:$0xff] }
  0x2a   : > { %1212 = vmatpush1.bf16.msra.mxu0 %v1211_v45  ;;  %1271 = vmatpush1.bf16.msra.mxu1 %v1211_v45  ;;  %v325_v45 = vld [vmem:[%s1579_s4 + $0x238] sm:$0xff]  ;;  %v328_v55 = vld [vmem:[%s1579_s4 + $0x250] sm:$0xff]  ;;  %v330_v59 = vld [vmem:[%s1579_s4 + $0x260] sm:$0xff] }
  0x2b   : > { %1214 = vmatprep.subr.bf16.mxu0 %v1213_v46  ;;  %1256 = vmatprep.subr.bf16.mxu1 %v1213_v46  ;;  %v260_v46 = vld [vmem:[%s1579_s4 + $0x30] sm:$0xff]  ;;  %v269_v60 = vld [vmem:[%s1579_s4 + $0x78] sm:$0xff]  ;;  %v335_v1 = vld [vmem:[%s1579_s4 + $0x288] sm:$0xff] }
  0x2c   : > { %v333_v61 = vld [vmem:[%s1579_s4 + $0x278] sm:$0xff]  ;;  %v268_v62 = vld [vmem:[%s1579_s4 + $0x70] sm:$0xff]  ;;  %v270_v2 = vld [vmem:[%s1579_s4 + $0x80] sm:$0xff] }
  0x2d   : > { %v334_v3 = vld [vmem:[%s1579_s4 + $0x280] sm:$0xff]  ;;  %v273_v4 = vld [vmem:[%s1579_s4 + $0x98] sm:$0xff]  ;;  %v336_v7 = vld [vmem:[%s1579_s4 + $0x290] sm:$0xff] }
  0x2e   : > { %1216 = vmatpush1.bf16.msra.mxu0 %v1215_v51  ;;  %1272 = vmatpush1.bf16.msra.mxu1 %v1215_v51  ;;  %v326_v51 = vld [vmem:[%s1579_s4 + $0x240] sm:$0xff]  ;;  %v275_v8 = vld [vmem:[%s1579_s4 + $0xa8] sm:$0xff]  ;;  %v341_v13 = vld [vmem:[%s1579_s4 + $0x2b8] sm:$0xff] }
  0x2f   : > { %1218 = vmatprep.subr.bf16.mxu0 %v1217_v52  ;;  %1257 = vmatprep.subr.bf16.mxu1 %v1217_v52  ;;  %v265_v52 = vld [vmem:[%s1579_s4 + $0x58] sm:$0xff]  ;;  %v339_v9 = vld [vmem:[%s1579_s4 + $0x2a8] sm:$0xff]  ;;  %v274_v10 = vld [vmem:[%s1579_s4 + $0xa0] sm:$0xff] }
  0x30   : > { %v276_v14 = vld [vmem:[%s1579_s4 + $0xb0] sm:$0xff]  ;;  %v279_v16 = vld [vmem:[%s1579_s4 + $0xc8] sm:$0xff]  ;;  %v342_v19 = vld [vmem:[%s1579_s4 + $0x2c0] sm:$0xff] }
  0x31   : > { %v340_v15 = vld [vmem:[%s1579_s4 + $0x2b0] sm:$0xff]  ;;  %v281_v20 = vld [vmem:[%s1579_s4 + $0xd8] sm:$0xff]  ;;  %v347_v25 = vld [vmem:[%s1579_s4 + $0x2e8] sm:$0xff] }
  0x32   : > { %1220 = vmatpush1.bf16.msra.mxu0 %v1219_v57  ;;  %1273 = vmatpush1.bf16.msra.mxu1 %v1219_v57  ;;  %v331_v57 = vld [vmem:[%s1579_s4 + $0x268] sm:$0xff]  ;;  %v345_v21 = vld [vmem:[%s1579_s4 + $0x2d8] sm:$0xff]  ;;  %v280_v22 = vld [vmem:[%s1579_s4 + $0xd0] sm:$0xff] }
  0x33   : > { %1222 = vmatprep.subr.bf16.mxu0 %v1221_v58  ;;  %1258 = vmatprep.subr.bf16.mxu1 %v1221_v58  ;;  %v266_v58 = vld [vmem:[%s1579_s4 + $0x60] sm:$0xff]  ;;  %v285_v28 = vld [vmem:[%s1579_s4 + $0xf8] sm:$0xff]  ;;  %v348_v31 = vld [vmem:[%s1579_s4 + $0x2f0] sm:$0xff] }
  0x34   : > { %v282_v26 = vld [vmem:[%s1579_s4 + $0xe0] sm:$0xff]  ;;  %v287_v32 = vld [vmem:[%s1579_s4 + $0x108] sm:$0xff] }
  0x35   : > { %v346_v27 = vld [vmem:[%s1579_s4 + $0x2e0] sm:$0xff] }
  0x36   : > { %1224 = vmatpush1.bf16.msra.mxu0 %v1223_v63  ;;  %1274 = vmatpush1.bf16.msra.mxu1 %v1223_v63  ;;  %v332_v63 = vld [vmem:[%s1579_s4 + $0x270] sm:$0xff] }
  0x37   : > { %1226 = vmatprep.subr.bf16.mxu0 %v1225_v0  ;;  %1259 = vmatprep.subr.bf16.mxu1 %v1225_v0  ;;  %v271_v0 = vld [vmem:[%s1579_s4 + $0x88] sm:$0xff] }
  0x3a   : > { %1228 = vmatpush1.bf16.msra.mxu0 %v1227_v5  ;;  %1275 = vmatpush1.bf16.msra.mxu1 %v1227_v5  ;;  %v337_v5 = vld [vmem:[%s1579_s4 + $0x298] sm:$0xff] }
  0x3b   : > { %1230 = vmatprep.subr.bf16.mxu0 %v1229_v6  ;;  %1260 = vmatprep.subr.bf16.mxu1 %v1229_v6  ;;  %v272_v6 = vld [vmem:[%s1579_s4 + $0x90] sm:$0xff] }
  0x3e   : > { %1232 = vmatpush1.bf16.msra.mxu0 %v1231_v11  ;;  %1276 = vmatpush1.bf16.msra.mxu1 %v1231_v11  ;;  %v338_v11 = vld [vmem:[%s1579_s4 + $0x2a0] sm:$0xff] }
  0x3f   : > { %1234 = vmatprep.subr.bf16.mxu0 %v1233_v12  ;;  %1261 = vmatprep.subr.bf16.mxu1 %v1233_v12  ;;  %v277_v12 = vld [vmem:[%s1579_s4 + $0xb8] sm:$0xff] }
  0x42   : > { %1236 = vmatpush1.bf16.msra.mxu0 %v1235_v17  ;;  %1277 = vmatpush1.bf16.msra.mxu1 %v1235_v17  ;;  %v343_v17 = vld [vmem:[%s1579_s4 + $0x2c8] sm:$0xff] }
  0x43   : > { %1238 = vmatprep.subr.bf16.mxu0 %v1237_v18  ;;  %1262 = vmatprep.subr.bf16.mxu1 %v1237_v18  ;;  %v278_v18 = vld [vmem:[%s1579_s4 + $0xc0] sm:$0xff] }
  0x46   : > { %1240 = vmatpush1.bf16.msra.mxu0 %v1239_v23  ;;  %1278 = vmatpush1.bf16.msra.mxu1 %v1239_v23  ;;  %v344_v23 = vld [vmem:[%s1579_s4 + $0x2d0] sm:$0xff] }
  0x47   : > { %1242 = vmatprep.subr.bf16.mxu0 %v1241_v24  ;;  %1263 = vmatprep.subr.bf16.mxu1 %v1241_v24  ;;  %v283_v24 = vld [vmem:[%s1579_s4 + $0xe8] sm:$0xff] }
  0x4a   : > { %1244 = vmatpush1.bf16.msra.mxu0 %v1243_v29  ;;  %1279 = vmatpush1.bf16.msra.mxu1 %v1243_v29  ;;  %v349_v29 = vld [vmem:[%s1579_s4 + $0x2f8] sm:$0xff] }
  0x4b   : > { %1246 = vmatprep.subr.bf16.mxu0 %v1245_v30  ;;  %1264 = vmatprep.subr.bf16.mxu1 %v1245_v30  ;;  %v284_v30 = vld [vmem:[%s1579_s4 + $0xf0] sm:$0xff] }
  0x4e   : > { %1248 = vmatpush1.bf16.msra.mxu0 %v1247_v33  ;;  %1280 = vmatpush1.bf16.msra.mxu1 %v1247_v33  ;;  %v351_v33 = vld [vmem:[%s1579_s4 + $0x308] sm:$0xff] }
  0x51   : > { %523 = vmatmul.mubr.f32.vlgmr.msra.gmra.mrb[0].mxu0 %v254_v34  ;;  %715 = vmatmul.mubr.f32.vlgmr.msra.gmra.mrb[0].mxu1 %v318_v35  ;;  %v286_v34 = vld [vmem:[%s1579_s4 + $0x100] sm:$0xff] }
  0x52   : > { %528 = vmatprep.mubr.f32.mxu0 %v257_v36  ;;  %720 = vmatprep.mubr.f32.mxu1 %v321_v37  ;;  %v350_v35 = vld [vmem:[%s1579_s4 + $0x300] sm:$0xff]  ;;  %v289_v36 = vld [vmem:[%s1579_s4 + $0x118] sm:$0xff] }
  0x53   : > { %v353_v37 = vld [vmem:[%s1579_s4 + $0x318] sm:$0xff] }
  0x55   : > { %529 = vmatmul.mubr.f32.gmra.mrb[2].mxu0 %v256_v38  ;;  %721 = vmatmul.mubr.f32.gmra.mrb[2].mxu1 %v320_v39  ;;  %v288_v38 = vld [vmem:[%s1579_s4 + $0x110] sm:$0xff] }
  0x56   : > { %534 = vmatprep.mubr.f32.mxu0 %v259_v40  ;;  %726 = vmatprep.mubr.f32.mxu1 %v323_v41  ;;  %v352_v39 = vld [vmem:[%s1579_s4 + $0x310] sm:$0xff]  ;;  %v291_v40 = vld [vmem:[%s1579_s4 + $0x128] sm:$0xff] }
  0x57   : > { %v355_v41 = vld [vmem:[%s1579_s4 + $0x328] sm:$0xff] }
  0x59   : > { %535 = vmatmul.mubr.f32.gmra.mrb[4].mxu0 %v258_v42  ;;  %727 = vmatmul.mubr.f32.gmra.mrb[4].mxu1 %v322_v43  ;;  %v290_v42 = vld [vmem:[%s1579_s4 + $0x120] sm:$0xff] }
  0x5a   : > { %540 = vmatprep.mubr.f32.mxu0 %v261_v44  ;;  %732 = vmatprep.mubr.f32.mxu1 %v325_v45  ;;  %v354_v43 = vld [vmem:[%s1579_s4 + $0x320] sm:$0xff]  ;;  %v293_v44 = vld [vmem:[%s1579_s4 + $0x138] sm:$0xff] }
  0x5b   : > { %v357_v45 = vld [vmem:[%s1579_s4 + $0x338] sm:$0xff] }
  0x5d   : > { %541 = vmatmul.mubr.f32.gmra.mrb[6].mxu0 %v260_v46  ;;  %733 = vmatmul.mubr.f32.gmra.mrb[6].mxu1 %v324_v47  ;;  %v292_v46 = vld [vmem:[%s1579_s4 + $0x130] sm:$0xff] }
  0x5e   : > { %546 = vmatprep.mubr.f32.mxu0 %v263_v48  ;;  %738 = vmatprep.mubr.f32.mxu1 %v327_v49  ;;  %v356_v47 = vld [vmem:[%s1579_s4 + $0x330] sm:$0xff]  ;;  %v295_v48 = vld [vmem:[%s1579_s4 + $0x148] sm:$0xff] }
  0x5f   : > { %v359_v49 = vld [vmem:[%s1579_s4 + $0x348] sm:$0xff] }
  0x61   : > { %547 = vmatmul.mubr.f32.gmra.mrb[8].mxu0 %v262_v50  ;;  %739 = vmatmul.mubr.f32.gmra.mrb[8].mxu1 %v326_v51  ;;  %v294_v50 = vld [vmem:[%s1579_s4 + $0x140] sm:$0xff] }
  0x62   : > { %552 = vmatprep.mubr.f32.mxu0 %v265_v52  ;;  %744 = vmatprep.mubr.f32.mxu1 %v329_v53  ;;  %v358_v51 = vld [vmem:[%s1579_s4 + $0x340] sm:$0xff]  ;;  %v297_v52 = vld [vmem:[%s1579_s4 + $0x158] sm:$0xff] }
  0x63   : > { %v361_v53 = vld [vmem:[%s1579_s4 + $0x358] sm:$0xff] }
  0x65   : > { %553 = vmatmul.mubr.f32.gmra.mrb[10].mxu0 %v264_v54  ;;  %745 = vmatmul.mubr.f32.gmra.mrb[10].mxu1 %v328_v55  ;;  %v296_v54 = vld [vmem:[%s1579_s4 + $0x150] sm:$0xff] }
  0x66   : > { %558 = vmatprep.mubr.f32.mxu0 %v267_v56  ;;  %750 = vmatprep.mubr.f32.mxu1 %v331_v57  ;;  %v360_v55 = vld [vmem:[%s1579_s4 + $0x350] sm:$0xff]  ;;  %v299_v56 = vld [vmem:[%s1579_s4 + $0x168] sm:$0xff] }
  0x67   : > { %v363_v57 = vld [vmem:[%s1579_s4 + $0x368] sm:$0xff] }
  0x69   : > { %559 = vmatmul.mubr.f32.gmra.mrb[12].mxu0 %v266_v58  ;;  %751 = vmatmul.mubr.f32.gmra.mrb[12].mxu1 %v330_v59  ;;  %v298_v58 = vld [vmem:[%s1579_s4 + $0x160] sm:$0xff] }
  0x6a   : > { %564 = vmatprep.mubr.f32.mxu0 %v269_v60  ;;  %756 = vmatprep.mubr.f32.mxu1 %v333_v61  ;;  %v362_v59 = vld [vmem:[%s1579_s4 + $0x360] sm:$0xff]  ;;  %v301_v60 = vld [vmem:[%s1579_s4 + $0x178] sm:$0xff] }
  0x6b   : > { %v365_v61 = vld [vmem:[%s1579_s4 + $0x378] sm:$0xff] }
  0x6d   : > { %565 = vmatmul.mubr.f32.gmra.mrb[14].mxu0 %v268_v62  ;;  %757 = vmatmul.mubr.f32.gmra.mrb[14].mxu1 %v332_v63  ;;  %v300_v62 = vld [vmem:[%s1579_s4 + $0x170] sm:$0xff] }
  0x6e   : > { %570 = vmatprep.mubr.f32.mxu0 %v271_v0  ;;  %762 = vmatprep.mubr.f32.mxu1 %v335_v1  ;;  %v364_v63 = vld [vmem:[%s1579_s4 + $0x370] sm:$0xff]  ;;  %v303_v0 = vld [vmem:[%s1579_s4 + $0x188] sm:$0xff] }
  0x6f   : > { %v367_v1 = vld [vmem:[%s1579_s4 + $0x388] sm:$0xff] }
  0x71   : > { %571 = vmatmul.mubr.f32.gmra.mrb[16].mxu0 %v270_v2  ;;  %763 = vmatmul.mubr.f32.gmra.mrb[16].mxu1 %v334_v3  ;;  %v302_v2 = vld [vmem:[%s1579_s4 + $0x180] sm:$0xff] }
  0x72   : > { %576 = vmatprep.mubr.f32.mxu0 %v273_v4  ;;  %768 = vmatprep.mubr.f32.mxu1 %v337_v5  ;;  %v366_v3 = vld [vmem:[%s1579_s4 + $0x380] sm:$0xff]  ;;  %v305_v4 = vld [vmem:[%s1579_s4 + $0x198] sm:$0xff] }
  0x73   : > { %v369_v5 = vld [vmem:[%s1579_s4 + $0x398] sm:$0xff] }
  0x75   : > { %577 = vmatmul.mubr.f32.gmra.mrb[18].mxu0 %v272_v6  ;;  %769 = vmatmul.mubr.f32.gmra.mrb[18].mxu1 %v336_v7  ;;  %v304_v6 = vld [vmem:[%s1579_s4 + $0x190] sm:$0xff] }
  0x76   : > { %582 = vmatprep.mubr.f32.mxu0 %v275_v8  ;;  %774 = vmatprep.mubr.f32.mxu1 %v339_v9  ;;  %v368_v7 = vld [vmem:[%s1579_s4 + $0x390] sm:$0xff]  ;;  %v307_v8 = vld [vmem:[%s1579_s4 + $0x1a8] sm:$0xff] }
  0x77   : > { %v371_v9 = vld [vmem:[%s1579_s4 + $0x3a8] sm:$0xff] }
  0x79   : > { %583 = vmatmul.mubr.f32.gmra.mrb[20].mxu0 %v274_v10  ;;  %775 = vmatmul.mubr.f32.gmra.mrb[20].mxu1 %v338_v11  ;;  %v306_v10 = vld [vmem:[%s1579_s4 + $0x1a0] sm:$0xff] }
  0x7a   : > { %588 = vmatprep.mubr.f32.mxu0 %v277_v12  ;;  %780 = vmatprep.mubr.f32.mxu1 %v341_v13  ;;  %v370_v11 = vld [vmem:[%s1579_s4 + $0x3a0] sm:$0xff]  ;;  %v309_v12 = vld [vmem:[%s1579_s4 + $0x1b8] sm:$0xff] }
  0x7b   : > { %v373_v13 = vld [vmem:[%s1579_s4 + $0x3b8] sm:$0xff] }
  0x7d   : > { %589 = vmatmul.mubr.f32.gmra.mrb[22].mxu0 %v276_v14  ;;  %781 = vmatmul.mubr.f32.gmra.mrb[22].mxu1 %v340_v15  ;;  %v308_v14 = vld [vmem:[%s1579_s4 + $0x1b0] sm:$0xff] }
  0x7e   : > { %594 = vmatprep.mubr.f32.mxu0 %v279_v16  ;;  %786 = vmatprep.mubr.f32.mxu1 %v343_v17  ;;  %v372_v15 = vld [vmem:[%s1579_s4 + $0x3b0] sm:$0xff]  ;;  %v311_v16 = vld [vmem:[%s1579_s4 + $0x1c8] sm:$0xff] }
  0x7f   : > { %v375_v17 = vld [vmem:[%s1579_s4 + $0x3c8] sm:$0xff] }
  0x81   : > { %595 = vmatmul.mubr.f32.gmra.mrb[24].mxu0 %v278_v18  ;;  %787 = vmatmul.mubr.f32.gmra.mrb[24].mxu1 %v342_v19  ;;  %v310_v18 = vld [vmem:[%s1579_s4 + $0x1c0] sm:$0xff] }
  0x82   : > { %600 = vmatprep.mubr.f32.mxu0 %v281_v20  ;;  %792 = vmatprep.mubr.f32.mxu1 %v345_v21  ;;  %v374_v19 = vld [vmem:[%s1579_s4 + $0x3c0] sm:$0xff]  ;;  %v313_v20 = vld [vmem:[%s1579_s4 + $0x1d8] sm:$0xff] }
  0x83   : > { %v377_v21 = vld [vmem:[%s1579_s4 + $0x3d8] sm:$0xff] }
  0x85   : > { %601 = vmatmul.mubr.f32.gmra.mrb[26].mxu0 %v280_v22  ;;  %793 = vmatmul.mubr.f32.gmra.mrb[26].mxu1 %v344_v23  ;;  %v312_v22 = vld [vmem:[%s1579_s4 + $0x1d0] sm:$0xff] }
  0x86   : > { %606 = vmatprep.mubr.f32.mxu0 %v283_v24  ;;  %798 = vmatprep.mubr.f32.mxu1 %v347_v25  ;;  %v376_v23 = vld [vmem:[%s1579_s4 + $0x3d0] sm:$0xff]  ;;  %v315_v24 = vld [vmem:[%s1579_s4 + $0x1e8] sm:$0xff] }
  0x87   : > { %v379_v25 = vld [vmem:[%s1579_s4 + $0x3e8] sm:$0xff] }
  0x89   : > { %607 = vmatmul.mubr.f32.gmra.mrb[28].mxu0 %v282_v26  ;;  %799 = vmatmul.mubr.f32.gmra.mrb[28].mxu1 %v346_v27  ;;  %v314_v26 = vld [vmem:[%s1579_s4 + $0x1e0] sm:$0xff] }
  0x8a   : > { %612 = vmatprep.mubr.f32.mxu0 %v285_v28  ;;  %804 = vmatprep.mubr.f32.mxu1 %v349_v29  ;;  %v378_v27 = vld [vmem:[%s1579_s4 + $0x3e0] sm:$0xff]  ;;  %v317_v28 = vld [vmem:[%s1579_s4 + $0x1f8] sm:$0xff] }
  0x8b   : > { %v381_v29 = vld [vmem:[%s1579_s4 + $0x3f8] sm:$0xff] }
  0x8d   : > { %613 = vmatmul.mubr.f32.gmra.mrb[30].mxu0 %v284_v30  ;;  %805 = vmatmul.mubr.f32.gmra.mrb[30].mxu1 %v348_v31  ;;  %v316_v30 = vld [vmem:[%s1579_s4 + $0x1f0] sm:$0xff] }
  0x8e   : > { %618 = vmatprep.mubr.f32.mxu0 %v287_v32  ;;  %810 = vmatprep.mubr.f32.mxu1 %v351_v33  ;;  %v380_v31 = vld [vmem:[%s1579_s4 + $0x3f0] sm:$0xff]  ;;  %v448_v32 = vlaneseq  ;;  %s1837_s4 = scalar_lea.vmem [#allocation2], %s1175_s30 }
  0x8f   : > { %s1054_s6 = sshll.u32 %s1837_s4, 4  ;;  %s2092_s6 = int_to_ptr.vmem [resolvable:$true] %s1054_s6 }
  0x90   : > { %v449_v33 = vshrl.u32 %v448_v32, 7  ;;  %s1338_s10 = scalar_lea.vmem %s2092_s6, 16384  ;;  %p1345_p1 = scmp.lt.s32.totalorder %s2092_s6, %s1343_s18 }
  0x91   : > { %619 = vmatmul.mubr.f32.gmra.mrb[32].mxu0 %v286_v34  ;;  %811 = vmatmul.mubr.f32.gmra.mrb[32].mxu1 %v350_v35  ;;  %v446_v35 = vld [vmem:[%s2150_s2] sm:$0x3]  ;;  %p1339_p12 = scmp.ne.s32.totalorder %s2092_s6, %s1338_s10  ;;  %p1346_p2 = scmp.lt.s32.totalorder %s1344_s19, %s1338_s10 }
  0x92   : > { %624 = vmatprep.mubr.f32.mxu0 %v289_v36  ;;  %816 = vmatprep.mubr.f32.mxu1 %v353_v37  ;;  %v450_v34 = vsub.s32 0, %v449_v33  ;;  %v454_v36 = vsub.s32 1, %v449_v33 }
  0x93   : > { %p1340_p13 = pnand %p1339_p12, %p1481_p4  ;;  %p1347_p3 = por %p1346_p2, %p1345_p1 }
  0x94   : > { %v1829_v37 = vrot.slane %v446_v35, %v450_v34 }
  0x95   : > { %625 = vmatmul.mubr.f32.gmra.mrb[34].mxu0 %v288_v38  ;;  %817 = vmatmul.mubr.f32.gmra.mrb[34].mxu1 %v352_v39  ;;  %v1831_v38 = vrot.slane %v446_v35, %v454_v36  ;;  %p1341_p0 = pneg %p1340_p13 }
  0x96   : > { %630 = vmatprep.mubr.f32.mxu0 %v291_v40  ;;  %822 = vmatprep.mubr.f32.mxu1 %v355_v41 }
  0x97   : > { %p1348_p5 = pnand %p1347_p3, %p1341_p0 }
  0x99   : > { %631 = vmatmul.mubr.f32.gmra.mrb[36].mxu0 %v290_v42  ;;  %823 = vmatmul.mubr.f32.gmra.mrb[36].mxu1 %v354_v43 }
  0x9a   : > { %636 = vmatprep.mubr.f32.mxu0 %v293_v44  ;;  %828 = vmatprep.mubr.f32.mxu1 %v357_v45 }
  0x9d   : > { %637 = vmatmul.mubr.f32.gmra.mrb[38].mxu0 %v292_v46  ;;  %829 = vmatmul.mubr.f32.gmra.mrb[38].mxu1 %v356_v47 }
  0x9e   : > { %642 = vmatprep.mubr.f32.mxu0 %v295_v48  ;;  %834 = vmatprep.mubr.f32.mxu1 %v359_v49 }
  0xa1   : > { %643 = vmatmul.mubr.f32.gmra.mrb[40].mxu0 %v294_v50  ;;  %835 = vmatmul.mubr.f32.gmra.mrb[40].mxu1 %v358_v51 }
  0xa2   : > { %648 = vmatprep.mubr.f32.mxu0 %v297_v52  ;;  %840 = vmatprep.mubr.f32.mxu1 %v361_v53 }
  0xa5   : > { %649 = vmatmul.mubr.f32.gmra.mrb[42].mxu0 %v296_v54  ;;  %841 = vmatmul.mubr.f32.gmra.mrb[42].mxu1 %v360_v55 }
  0xa6   : > { %654 = vmatprep.mubr.f32.mxu0 %v299_v56  ;;  %846 = vmatprep.mubr.f32.mxu1 %v363_v57 }
  0xa9   : > { %655 = vmatmul.mubr.f32.gmra.mrb[44].mxu0 %v298_v58  ;;  %847 = vmatmul.mubr.f32.gmra.mrb[44].mxu1 %v362_v59 }
  0xaa   : > { %660 = vmatprep.mubr.f32.mxu0 %v301_v60  ;;  %852 = vmatprep.mubr.f32.mxu1 %v365_v61 }
  0xad   : > { %661 = vmatmul.mubr.f32.gmra.mrb[46].mxu0 %v300_v62  ;;  %853 = vmatmul.mubr.f32.gmra.mrb[46].mxu1 %v364_v63 }
  0xae   : > { %666 = vmatprep.mubr.f32.mxu0 %v303_v0  ;;  %858 = vmatprep.mubr.f32.mxu1 %v367_v1 }
  0xb1   : > { %667 = vmatmul.mubr.f32.gmra.mrb[48].mxu0 %v302_v2  ;;  %859 = vmatmul.mubr.f32.gmra.mrb[48].mxu1 %v366_v3 }
  0xb2   : > { %672 = vmatprep.mubr.f32.mxu0 %v305_v4  ;;  %864 = vmatprep.mubr.f32.mxu1 %v369_v5 }
  0xb5   : > { %673 = vmatmul.mubr.f32.gmra.mrb[50].mxu0 %v304_v6  ;;  %865 = vmatmul.mubr.f32.gmra.mrb[50].mxu1 %v368_v7 }
  0xb6   : > { %678 = vmatprep.mubr.f32.mxu0 %v307_v8  ;;  %870 = vmatprep.mubr.f32.mxu1 %v371_v9 }
  0xb9   : > { %679 = vmatmul.mubr.f32.gmra.mrb[52].mxu0 %v306_v10  ;;  %871 = vmatmul.mubr.f32.gmra.mrb[52].mxu1 %v370_v11 }
  0xba   : > { %684 = vmatprep.mubr.f32.mxu0 %v309_v12  ;;  %876 = vmatprep.mubr.f32.mxu1 %v373_v13 }
  0xbd   : > { %685 = vmatmul.mubr.f32.gmra.mrb[54].mxu0 %v308_v14  ;;  %877 = vmatmul.mubr.f32.gmra.mrb[54].mxu1 %v372_v15 }
  0xbe   : > { %690 = vmatprep.mubr.f32.mxu0 %v311_v16  ;;  %882 = vmatprep.mubr.f32.mxu1 %v375_v17 }
  0xc1   : > { %691 = vmatmul.mubr.f32.gmra.mrb[56].mxu0 %v310_v18  ;;  %883 = vmatmul.mubr.f32.gmra.mrb[56].mxu1 %v374_v19 }
  0xc2   : > { %696 = vmatprep.mubr.f32.mxu0 %v313_v20  ;;  %888 = vmatprep.mubr.f32.mxu1 %v377_v21 }
  0xc5   : > { %697 = vmatmul.mubr.f32.gmra.mrb[58].mxu0 %v312_v22  ;;  %889 = vmatmul.mubr.f32.gmra.mrb[58].mxu1 %v376_v23 }
  0xc6   : > { %702 = vmatprep.mubr.f32.mxu0 %v315_v24  ;;  %894 = vmatprep.mubr.f32.mxu1 %v379_v25 }
  0xc9   : > { %703 = vmatmul.mubr.f32.gmra.mrb[60].mxu0 %v314_v26  ;;  %895 = vmatmul.mubr.f32.gmra.mrb[60].mxu1 %v378_v27 }
  0xca   : > { %708 = vmatprep.mubr.f32.mxu0 %v317_v28  ;;  %900 = vmatprep.mubr.f32.mxu1 %v381_v29 }
  0xcd   : > { %709 = vmatmul.mubr.f32.gmra.mrb[62].mxu0 %v316_v30  ;;  %901 = vmatmul.mubr.f32.gmra.mrb[62].mxu1 %v380_v31 }
 0x124   : > { %v524_v39 = vpop.f32.mrb[0].mxu0  ;;  %v716_v40 = vpop.f32.mrb[0].mxu1 }
 0x125   : > { %v525_v41 = vadd.f32 %v524_v39, %v1829_v37  ;;  %v717_v42 = vadd.f32 %v716_v40, %v1829_v37  ;;  %v526_v43 = vpop.f32.mrb[1].mxu0  ;;  %v718_v44 = vpop.f32.mrb[1].mxu1 }
 0x126   : > { %v527_v45 = vadd.f32 %v526_v43, %v1831_v38  ;;  %v719_v46 = vadd.f32 %v718_v44, %v1831_v38 }
 0x127   : > { %907 = vst [vmem:[%s1837_s4] sm:$0xff] %v525_v41  ;;  %971 = vst [vmem:[%s1837_s4 + $0x200] sm:$0xff] %v717_v42 }
 0x128   : > { %908 = vst [vmem:[%s1837_s4 + $0x8] sm:$0xff] %v527_v45  ;;  %972 = vst [vmem:[%s1837_s4 + $0x208] sm:$0xff] %v719_v46  ;;  %v530_v47 = vpop.f32.mrb[2].mxu0  ;;  %v722_v48 = vpop.f32.mrb[2].mxu1 }
 0x129   : > { %v531_v49 = vadd.f32 %v530_v47, %v1829_v37  ;;  %v723_v50 = vadd.f32 %v722_v48, %v1829_v37  ;;  %v532_v51 = vpop.f32.mrb[3].mxu0  ;;  %v724_v52 = vpop.f32.mrb[3].mxu1 }
 0x12a   : > { %v533_v53 = vadd.f32 %v532_v51, %v1831_v38  ;;  %v725_v54 = vadd.f32 %v724_v52, %v1831_v38 }
 0x12b   : > { %909 = vst [vmem:[%s1837_s4 + $0x10] sm:$0xff] %v531_v49  ;;  %973 = vst [vmem:[%s1837_s4 + $0x210] sm:$0xff] %v723_v50 }
 0x12c   : > { %910 = vst [vmem:[%s1837_s4 + $0x18] sm:$0xff] %v533_v53  ;;  %974 = vst [vmem:[%s1837_s4 + $0x218] sm:$0xff] %v725_v54  ;;  %v536_v55 = vpop.f32.mrb[4].mxu0  ;;  %v728_v56 = vpop.f32.mrb[4].mxu1 }
 0x12d   : > { %v537_v57 = vadd.f32 %v536_v55, %v1829_v37  ;;  %v729_v58 = vadd.f32 %v728_v56, %v1829_v37  ;;  %v538_v59 = vpop.f32.mrb[5].mxu0  ;;  %v730_v60 = vpop.f32.mrb[5].mxu1 }
 0x12e   : > { %v539_v61 = vadd.f32 %v538_v59, %v1831_v38  ;;  %v731_v62 = vadd.f32 %v730_v60, %v1831_v38 }
 0x12f   : > { %911 = vst [vmem:[%s1837_s4 + $0x20] sm:$0xff] %v537_v57  ;;  %975 = vst [vmem:[%s1837_s4 + $0x220] sm:$0xff] %v729_v58 }
 0x130   : > { %912 = vst [vmem:[%s1837_s4 + $0x28] sm:$0xff] %v539_v61  ;;  %976 = vst [vmem:[%s1837_s4 + $0x228] sm:$0xff] %v731_v62  ;;  %v542_v63 = vpop.f32.mrb[6].mxu0  ;;  %v734_v0 = vpop.f32.mrb[6].mxu1 }
 0x131   : > { %v543_v1 = vadd.f32 %v542_v63, %v1829_v37  ;;  %v735_v2 = vadd.f32 %v734_v0, %v1829_v37  ;;  %v544_v3 = vpop.f32.mrb[7].mxu0  ;;  %v736_v4 = vpop.f32.mrb[7].mxu1 }
 0x132   : > { %v545_v5 = vadd.f32 %v544_v3, %v1831_v38  ;;  %v737_v6 = vadd.f32 %v736_v4, %v1831_v38 }
 0x133   : > { %913 = vst [vmem:[%s1837_s4 + $0x30] sm:$0xff] %v543_v1  ;;  %977 = vst [vmem:[%s1837_s4 + $0x230] sm:$0xff] %v735_v2 }
 0x134   : > { %914 = vst [vmem:[%s1837_s4 + $0x38] sm:$0xff] %v545_v5  ;;  %978 = vst [vmem:[%s1837_s4 + $0x238] sm:$0xff] %v737_v6  ;;  %v548_v7 = vpop.f32.mrb[8].mxu0  ;;  %v740_v8 = vpop.f32.mrb[8].mxu1 }
 0x135   : > { %v549_v9 = vadd.f32 %v548_v7, %v1829_v37  ;;  %v741_v10 = vadd.f32 %v740_v8, %v1829_v37  ;;  %v550_v11 = vpop.f32.mrb[9].mxu0  ;;  %v742_v12 = vpop.f32.mrb[9].mxu1 }
 0x136   : > { %v551_v13 = vadd.f32 %v550_v11, %v1831_v38  ;;  %v743_v14 = vadd.f32 %v742_v12, %v1831_v38 }
 0x137   : > { %915 = vst [vmem:[%s1837_s4 + $0x40] sm:$0xff] %v549_v9  ;;  %979 = vst [vmem:[%s1837_s4 + $0x240] sm:$0xff] %v741_v10 }
 0x138   : > { %916 = vst [vmem:[%s1837_s4 + $0x48] sm:$0xff] %v551_v13  ;;  %980 = vst [vmem:[%s1837_s4 + $0x248] sm:$0xff] %v743_v14  ;;  %v554_v15 = vpop.f32.mrb[10].mxu0  ;;  %v746_v16 = vpop.f32.mrb[10].mxu1 }
 0x139   : > { %v555_v17 = vadd.f32 %v554_v15, %v1829_v37  ;;  %v747_v18 = vadd.f32 %v746_v16, %v1829_v37  ;;  %v556_v19 = vpop.f32.mrb[11].mxu0  ;;  %v748_v20 = vpop.f32.mrb[11].mxu1 }
 0x13a   : > { %v557_v21 = vadd.f32 %v556_v19, %v1831_v38  ;;  %v749_v22 = vadd.f32 %v748_v20, %v1831_v38 }
 0x13b   : > { %917 = vst [vmem:[%s1837_s4 + $0x50] sm:$0xff] %v555_v17  ;;  %981 = vst [vmem:[%s1837_s4 + $0x250] sm:$0xff] %v747_v18 }
 0x13c   : > { %918 = vst [vmem:[%s1837_s4 + $0x58] sm:$0xff] %v557_v21  ;;  %982 = vst [vmem:[%s1837_s4 + $0x258] sm:$0xff] %v749_v22  ;;  %v560_v23 = vpop.f32.mrb[12].mxu0  ;;  %v752_v24 = vpop.f32.mrb[12].mxu1 }
 0x13d   : > { %v561_v25 = vadd.f32 %v560_v23, %v1829_v37  ;;  %v753_v26 = vadd.f32 %v752_v24, %v1829_v37  ;;  %v562_v27 = vpop.f32.mrb[13].mxu0  ;;  %v754_v28 = vpop.f32.mrb[13].mxu1 }
 0x13e   : > { %v563_v29 = vadd.f32 %v562_v27, %v1831_v38  ;;  %v755_v30 = vadd.f32 %v754_v28, %v1831_v38 }
 0x13f   : > { %919 = vst [vmem:[%s1837_s4 + $0x60] sm:$0xff] %v561_v25  ;;  %983 = vst [vmem:[%s1837_s4 + $0x260] sm:$0xff] %v753_v26 }
 0x140   : > { %920 = vst [vmem:[%s1837_s4 + $0x68] sm:$0xff] %v563_v29  ;;  %984 = vst [vmem:[%s1837_s4 + $0x268] sm:$0xff] %v755_v30  ;;  %v566_v31 = vpop.f32.mrb[14].mxu0  ;;  %v758_v32 = vpop.f32.mrb[14].mxu1 }
 0x141   : > { %v567_v33 = vadd.f32 %v566_v31, %v1829_v37  ;;  %v759_v34 = vadd.f32 %v758_v32, %v1829_v37  ;;  %v568_v35 = vpop.f32.mrb[15].mxu0  ;;  %v760_v36 = vpop.f32.mrb[15].mxu1 }
 0x142   : > { %v569_v39 = vadd.f32 %v568_v35, %v1831_v38  ;;  %v761_v40 = vadd.f32 %v760_v36, %v1831_v38 }
 0x143   : > { %921 = vst [vmem:[%s1837_s4 + $0x70] sm:$0xff] %v567_v33  ;;  %985 = vst [vmem:[%s1837_s4 + $0x270] sm:$0xff] %v759_v34 }
 0x144   : > { %922 = vst [vmem:[%s1837_s4 + $0x78] sm:$0xff] %v569_v39  ;;  %986 = vst [vmem:[%s1837_s4 + $0x278] sm:$0xff] %v761_v40  ;;  %v572_v41 = vpop.f32.mrb[16].mxu0  ;;  %v764_v42 = vpop.f32.mrb[16].mxu1 }
 0x145   : > { %v573_v43 = vadd.f32 %v572_v41, %v1829_v37  ;;  %v765_v44 = vadd.f32 %v764_v42, %v1829_v37  ;;  %v574_v45 = vpop.f32.mrb[17].mxu0  ;;  %v766_v46 = vpop.f32.mrb[17].mxu1 }
 0x146   : > { %v575_v47 = vadd.f32 %v574_v45, %v1831_v38  ;;  %v767_v48 = vadd.f32 %v766_v46, %v1831_v38 }
 0x147   : > { %923 = vst [vmem:[%s1837_s4 + $0x80] sm:$0xff] %v573_v43  ;;  %987 = vst [vmem:[%s1837_s4 + $0x280] sm:$0xff] %v765_v44 }
 0x148   : > { %924 = vst [vmem:[%s1837_s4 + $0x88] sm:$0xff] %v575_v47  ;;  %988 = vst [vmem:[%s1837_s4 + $0x288] sm:$0xff] %v767_v48  ;;  %v578_v49 = vpop.f32.mrb[18].mxu0  ;;  %v770_v50 = vpop.f32.mrb[18].mxu1 }
 0x149   : > { %v579_v51 = vadd.f32 %v578_v49, %v1829_v37  ;;  %v771_v52 = vadd.f32 %v770_v50, %v1829_v37  ;;  %v580_v53 = vpop.f32.mrb[19].mxu0  ;;  %v772_v54 = vpop.f32.mrb[19].mxu1 }
 0x14a   : > { %v581_v55 = vadd.f32 %v580_v53, %v1831_v38  ;;  %v773_v56 = vadd.f32 %v772_v54, %v1831_v38 }
 0x14b   : > { %925 = vst [vmem:[%s1837_s4 + $0x90] sm:$0xff] %v579_v51  ;;  %989 = vst [vmem:[%s1837_s4 + $0x290] sm:$0xff] %v771_v52 }
 0x14c   : > { %926 = vst [vmem:[%s1837_s4 + $0x98] sm:$0xff] %v581_v55  ;;  %990 = vst [vmem:[%s1837_s4 + $0x298] sm:$0xff] %v773_v56  ;;  %v584_v57 = vpop.f32.mrb[20].mxu0  ;;  %v776_v58 = vpop.f32.mrb[20].mxu1 }
 0x14d   : > { %v585_v59 = vadd.f32 %v584_v57, %v1829_v37  ;;  %v777_v60 = vadd.f32 %v776_v58, %v1829_v37  ;;  %v586_v61 = vpop.f32.mrb[21].mxu0  ;;  %v778_v62 = vpop.f32.mrb[21].mxu1 }
 0x14e   : > { %v587_v63 = vadd.f32 %v586_v61, %v1831_v38  ;;  %v779_v0 = vadd.f32 %v778_v62, %v1831_v38 }
 0x14f   : > { %927 = vst [vmem:[%s1837_s4 + $0xa0] sm:$0xff] %v585_v59  ;;  %991 = vst [vmem:[%s1837_s4 + $0x2a0] sm:$0xff] %v777_v60 }
 0x150   : > { %928 = vst [vmem:[%s1837_s4 + $0xa8] sm:$0xff] %v587_v63  ;;  %992 = vst [vmem:[%s1837_s4 + $0x2a8] sm:$0xff] %v779_v0  ;;  %v590_v1 = vpop.f32.mrb[22].mxu0  ;;  %v782_v2 = vpop.f32.mrb[22].mxu1 }
 0x151   : > { %v591_v3 = vadd.f32 %v590_v1, %v1829_v37  ;;  %v783_v4 = vadd.f32 %v782_v2, %v1829_v37  ;;  %v592_v5 = vpop.f32.mrb[23].mxu0  ;;  %v784_v6 = vpop.f32.mrb[23].mxu1 }
 0x152   : > { %v593_v7 = vadd.f32 %v592_v5, %v1831_v38  ;;  %v785_v8 = vadd.f32 %v784_v6, %v1831_v38 }
 0x153   : > { %929 = vst [vmem:[%s1837_s4 + $0xb0] sm:$0xff] %v591_v3  ;;  %993 = vst [vmem:[%s1837_s4 + $0x2b0] sm:$0xff] %v783_v4 }
 0x154   : > { %930 = vst [vmem:[%s1837_s4 + $0xb8] sm:$0xff] %v593_v7  ;;  %994 = vst [vmem:[%s1837_s4 + $0x2b8] sm:$0xff] %v785_v8  ;;  %v596_v9 = vpop.f32.mrb[24].mxu0  ;;  %v788_v10 = vpop.f32.mrb[24].mxu1 }
 0x155   : > { %v597_v11 = vadd.f32 %v596_v9, %v1829_v37  ;;  %v789_v12 = vadd.f32 %v788_v10, %v1829_v37  ;;  %v598_v13 = vpop.f32.mrb[25].mxu0  ;;  %v790_v14 = vpop.f32.mrb[25].mxu1 }
 0x156   : > { %v599_v15 = vadd.f32 %v598_v13, %v1831_v38  ;;  %v791_v16 = vadd.f32 %v790_v14, %v1831_v38 }
 0x157   : > { %931 = vst [vmem:[%s1837_s4 + $0xc0] sm:$0xff] %v597_v11  ;;  %995 = vst [vmem:[%s1837_s4 + $0x2c0] sm:$0xff] %v789_v12 }
 0x158   : > { %932 = vst [vmem:[%s1837_s4 + $0xc8] sm:$0xff] %v599_v15  ;;  %996 = vst [vmem:[%s1837_s4 + $0x2c8] sm:$0xff] %v791_v16  ;;  %v602_v17 = vpop.f32.mrb[26].mxu0  ;;  %v794_v18 = vpop.f32.mrb[26].mxu1 }
 0x159   : > { %v603_v19 = vadd.f32 %v602_v17, %v1829_v37  ;;  %v795_v20 = vadd.f32 %v794_v18, %v1829_v37  ;;  %v604_v21 = vpop.f32.mrb[27].mxu0  ;;  %v796_v22 = vpop.f32.mrb[27].mxu1 }
 0x15a   : > { %v605_v23 = vadd.f32 %v604_v21, %v1831_v38  ;;  %v797_v24 = vadd.f32 %v796_v22, %v1831_v38 }
 0x15b   : > { %933 = vst [vmem:[%s1837_s4 + $0xd0] sm:$0xff] %v603_v19  ;;  %997 = vst [vmem:[%s1837_s4 + $0x2d0] sm:$0xff] %v795_v20 }
 0x15c   : > { %934 = vst [vmem:[%s1837_s4 + $0xd8] sm:$0xff] %v605_v23  ;;  %998 = vst [vmem:[%s1837_s4 + $0x2d8] sm:$0xff] %v797_v24  ;;  %v608_v25 = vpop.f32.mrb[28].mxu0  ;;  %v800_v26 = vpop.f32.mrb[28].mxu1 }
 0x15d   : > { %v609_v27 = vadd.f32 %v608_v25, %v1829_v37  ;;  %v801_v28 = vadd.f32 %v800_v26, %v1829_v37  ;;  %v610_v29 = vpop.f32.mrb[29].mxu0  ;;  %v802_v30 = vpop.f32.mrb[29].mxu1 }
 0x15e   : > { %v611_v31 = vadd.f32 %v610_v29, %v1831_v38  ;;  %v803_v32 = vadd.f32 %v802_v30, %v1831_v38 }
 0x15f   : > { %935 = vst [vmem:[%s1837_s4 + $0xe0] sm:$0xff] %v609_v27  ;;  %999 = vst [vmem:[%s1837_s4 + $0x2e0] sm:$0xff] %v801_v28 }
 0x160   : > { %936 = vst [vmem:[%s1837_s4 + $0xe8] sm:$0xff] %v611_v31  ;;  %1000 = vst [vmem:[%s1837_s4 + $0x2e8] sm:$0xff] %v803_v32  ;;  %v614_v33 = vpop.f32.mrb[30].mxu0  ;;  %v806_v34 = vpop.f32.mrb[30].mxu1 }
 0x161   : > { %v615_v35 = vadd.f32 %v614_v33, %v1829_v37  ;;  %v807_v36 = vadd.f32 %v806_v34, %v1829_v37  ;;  %v616_v39 = vpop.f32.mrb[31].mxu0  ;;  %v808_v40 = vpop.f32.mrb[31].mxu1 }
 0x162   : > { %v617_v41 = vadd.f32 %v616_v39, %v1831_v38  ;;  %v809_v42 = vadd.f32 %v808_v40, %v1831_v38 }
 0x163   : > { %937 = vst [vmem:[%s1837_s4 + $0xf0] sm:$0xff] %v615_v35  ;;  %1001 = vst [vmem:[%s1837_s4 + $0x2f0] sm:$0xff] %v807_v36 }
 0x164   : > { %938 = vst [vmem:[%s1837_s4 + $0xf8] sm:$0xff] %v617_v41  ;;  %1002 = vst [vmem:[%s1837_s4 + $0x2f8] sm:$0xff] %v809_v42  ;;  %v620_v43 = vpop.f32.mrb[32].mxu0  ;;  %v812_v44 = vpop.f32.mrb[32].mxu1 }
 0x165   : > { %v621_v45 = vadd.f32 %v620_v43, %v1829_v37  ;;  %v813_v46 = vadd.f32 %v812_v44, %v1829_v37  ;;  %v622_v47 = vpop.f32.mrb[33].mxu0  ;;  %v814_v48 = vpop.f32.mrb[33].mxu1 }
 0x166   : > { %v623_v49 = vadd.f32 %v622_v47, %v1831_v38  ;;  %v815_v50 = vadd.f32 %v814_v48, %v1831_v38 }
 0x167   : > { %939 = vst [vmem:[%s1837_s4 + $0x100] sm:$0xff] %v621_v45  ;;  %1003 = vst [vmem:[%s1837_s4 + $0x300] sm:$0xff] %v813_v46 }
 0x168   : > { %940 = vst [vmem:[%s1837_s4 + $0x108] sm:$0xff] %v623_v49  ;;  %1004 = vst [vmem:[%s1837_s4 + $0x308] sm:$0xff] %v815_v50  ;;  %v626_v51 = vpop.f32.mrb[34].mxu0  ;;  %v818_v52 = vpop.f32.mrb[34].mxu1 }
 0x169   : > { %v627_v53 = vadd.f32 %v626_v51, %v1829_v37  ;;  %v819_v54 = vadd.f32 %v818_v52, %v1829_v37  ;;  %v628_v55 = vpop.f32.mrb[35].mxu0  ;;  %v820_v56 = vpop.f32.mrb[35].mxu1 }
 0x16a   : > { %v629_v57 = vadd.f32 %v628_v55, %v1831_v38  ;;  %v821_v58 = vadd.f32 %v820_v56, %v1831_v38 }
 0x16b   : > { %941 = vst [vmem:[%s1837_s4 + $0x110] sm:$0xff] %v627_v53  ;;  %1005 = vst [vmem:[%s1837_s4 + $0x310] sm:$0xff] %v819_v54 }
 0x16c   : > { %942 = vst [vmem:[%s1837_s4 + $0x118] sm:$0xff] %v629_v57  ;;  %1006 = vst [vmem:[%s1837_s4 + $0x318] sm:$0xff] %v821_v58  ;;  %v632_v59 = vpop.f32.mrb[36].mxu0  ;;  %v824_v60 = vpop.f32.mrb[36].mxu1 }
 0x16d   : > { %v633_v61 = vadd.f32 %v632_v59, %v1829_v37  ;;  %v825_v62 = vadd.f32 %v824_v60, %v1829_v37  ;;  %v634_v63 = vpop.f32.mrb[37].mxu0  ;;  %v826_v0 = vpop.f32.mrb[37].mxu1 }
 0x16e   : > { %v635_v1 = vadd.f32 %v634_v63, %v1831_v38  ;;  %v827_v2 = vadd.f32 %v826_v0, %v1831_v38 }
 0x16f   : > { %943 = vst [vmem:[%s1837_s4 + $0x120] sm:$0xff] %v633_v61  ;;  %1007 = vst [vmem:[%s1837_s4 + $0x320] sm:$0xff] %v825_v62 }
 0x170   : > { %944 = vst [vmem:[%s1837_s4 + $0x128] sm:$0xff] %v635_v1  ;;  %1008 = vst [vmem:[%s1837_s4 + $0x328] sm:$0xff] %v827_v2  ;;  %v638_v3 = vpop.f32.mrb[38].mxu0  ;;  %v830_v4 = vpop.f32.mrb[38].mxu1 }
 0x171   : > { %v639_v5 = vadd.f32 %v638_v3, %v1829_v37  ;;  %v831_v6 = vadd.f32 %v830_v4, %v1829_v37  ;;  %v640_v7 = vpop.f32.mrb[39].mxu0  ;;  %v832_v8 = vpop.f32.mrb[39].mxu1 }
 0x172   : > { %v641_v9 = vadd.f32 %v640_v7, %v1831_v38  ;;  %v833_v10 = vadd.f32 %v832_v8, %v1831_v38 }
 0x173   : > { %945 = vst [vmem:[%s1837_s4 + $0x130] sm:$0xff] %v639_v5  ;;  %1009 = vst [vmem:[%s1837_s4 + $0x330] sm:$0xff] %v831_v6 }
 0x174   : > { %946 = vst [vmem:[%s1837_s4 + $0x138] sm:$0xff] %v641_v9  ;;  %1010 = vst [vmem:[%s1837_s4 + $0x338] sm:$0xff] %v833_v10  ;;  %v644_v11 = vpop.f32.mrb[40].mxu0  ;;  %v836_v12 = vpop.f32.mrb[40].mxu1 }
 0x175   : > { %v645_v13 = vadd.f32 %v644_v11, %v1829_v37  ;;  %v837_v14 = vadd.f32 %v836_v12, %v1829_v37  ;;  %v646_v15 = vpop.f32.mrb[41].mxu0  ;;  %v838_v16 = vpop.f32.mrb[41].mxu1 }
 0x176   : > { %v647_v17 = vadd.f32 %v646_v15, %v1831_v38  ;;  %v839_v18 = vadd.f32 %v838_v16, %v1831_v38 }
 0x177   : > { %947 = vst [vmem:[%s1837_s4 + $0x140] sm:$0xff] %v645_v13  ;;  %1011 = vst [vmem:[%s1837_s4 + $0x340] sm:$0xff] %v837_v14 }
 0x178   : > { %948 = vst [vmem:[%s1837_s4 + $0x148] sm:$0xff] %v647_v17  ;;  %1012 = vst [vmem:[%s1837_s4 + $0x348] sm:$0xff] %v839_v18  ;;  %v650_v19 = vpop.f32.mrb[42].mxu0  ;;  %v842_v20 = vpop.f32.mrb[42].mxu1 }
 0x179   : > { %v651_v21 = vadd.f32 %v650_v19, %v1829_v37  ;;  %v843_v22 = vadd.f32 %v842_v20, %v1829_v37  ;;  %v652_v23 = vpop.f32.mrb[43].mxu0  ;;  %v844_v24 = vpop.f32.mrb[43].mxu1 }
 0x17a   : > { %v653_v25 = vadd.f32 %v652_v23, %v1831_v38  ;;  %v845_v26 = vadd.f32 %v844_v24, %v1831_v38 }
 0x17b   : > { %949 = vst [vmem:[%s1837_s4 + $0x150] sm:$0xff] %v651_v21  ;;  %1013 = vst [vmem:[%s1837_s4 + $0x350] sm:$0xff] %v843_v22 }
 0x17c   : > { %950 = vst [vmem:[%s1837_s4 + $0x158] sm:$0xff] %v653_v25  ;;  %1014 = vst [vmem:[%s1837_s4 + $0x358] sm:$0xff] %v845_v26  ;;  %v656_v27 = vpop.f32.mrb[44].mxu0  ;;  %v848_v28 = vpop.f32.mrb[44].mxu1 }
 0x17d   : > { %v657_v29 = vadd.f32 %v656_v27, %v1829_v37  ;;  %v849_v30 = vadd.f32 %v848_v28, %v1829_v37  ;;  %v658_v31 = vpop.f32.mrb[45].mxu0  ;;  %v850_v32 = vpop.f32.mrb[45].mxu1 }
 0x17e   : > { %v659_v33 = vadd.f32 %v658_v31, %v1831_v38  ;;  %v851_v34 = vadd.f32 %v850_v32, %v1831_v38 }
 0x17f   : > { %951 = vst [vmem:[%s1837_s4 + $0x160] sm:$0xff] %v657_v29  ;;  %1015 = vst [vmem:[%s1837_s4 + $0x360] sm:$0xff] %v849_v30 }
 0x180   : > { %952 = vst [vmem:[%s1837_s4 + $0x168] sm:$0xff] %v659_v33  ;;  %1016 = vst [vmem:[%s1837_s4 + $0x368] sm:$0xff] %v851_v34  ;;  %v662_v35 = vpop.f32.mrb[46].mxu0  ;;  %v854_v36 = vpop.f32.mrb[46].mxu1 }
 0x181   : > { %v663_v39 = vadd.f32 %v662_v35, %v1829_v37  ;;  %v855_v40 = vadd.f32 %v854_v36, %v1829_v37  ;;  %v664_v41 = vpop.f32.mrb[47].mxu0  ;;  %v856_v42 = vpop.f32.mrb[47].mxu1 }
 0x182   : > { %v665_v43 = vadd.f32 %v664_v41, %v1831_v38  ;;  %v857_v44 = vadd.f32 %v856_v42, %v1831_v38 }
 0x183   : > { %953 = vst [vmem:[%s1837_s4 + $0x170] sm:$0xff] %v663_v39  ;;  %1017 = vst [vmem:[%s1837_s4 + $0x370] sm:$0xff] %v855_v40 }
 0x184   : > { %954 = vst [vmem:[%s1837_s4 + $0x178] sm:$0xff] %v665_v43  ;;  %1018 = vst [vmem:[%s1837_s4 + $0x378] sm:$0xff] %v857_v44  ;;  %v668_v45 = vpop.f32.mrb[48].mxu0  ;;  %v860_v46 = vpop.f32.mrb[48].mxu1 }
 0x185   : > { %v669_v47 = vadd.f32 %v668_v45, %v1829_v37  ;;  %v861_v48 = vadd.f32 %v860_v46, %v1829_v37  ;;  %v670_v49 = vpop.f32.mrb[49].mxu0  ;;  %v862_v50 = vpop.f32.mrb[49].mxu1 }
 0x186   : > { %v671_v51 = vadd.f32 %v670_v49, %v1831_v38  ;;  %v863_v52 = vadd.f32 %v862_v50, %v1831_v38 }
 0x187   : > { %955 = vst [vmem:[%s1837_s4 + $0x180] sm:$0xff] %v669_v47  ;;  %1019 = vst [vmem:[%s1837_s4 + $0x380] sm:$0xff] %v861_v48 }
 0x188   : > { %956 = vst [vmem:[%s1837_s4 + $0x188] sm:$0xff] %v671_v51  ;;  %1020 = vst [vmem:[%s1837_s4 + $0x388] sm:$0xff] %v863_v52  ;;  %v674_v53 = vpop.f32.mrb[50].mxu0  ;;  %v866_v54 = vpop.f32.mrb[50].mxu1 }
 0x189   : > { %v675_v55 = vadd.f32 %v674_v53, %v1829_v37  ;;  %v867_v56 = vadd.f32 %v866_v54, %v1829_v37  ;;  %v676_v57 = vpop.f32.mrb[51].mxu0  ;;  %v868_v58 = vpop.f32.mrb[51].mxu1 }
 0x18a   : > { %v677_v59 = vadd.f32 %v676_v57, %v1831_v38  ;;  %v869_v60 = vadd.f32 %v868_v58, %v1831_v38 }
 0x18b   : > { %957 = vst [vmem:[%s1837_s4 + $0x190] sm:$0xff] %v675_v55  ;;  %1021 = vst [vmem:[%s1837_s4 + $0x390] sm:$0xff] %v867_v56 }
 0x18c   : > { %958 = vst [vmem:[%s1837_s4 + $0x198] sm:$0xff] %v677_v59  ;;  %1022 = vst [vmem:[%s1837_s4 + $0x398] sm:$0xff] %v869_v60  ;;  %v680_v61 = vpop.f32.mrb[52].mxu0  ;;  %v872_v62 = vpop.f32.mrb[52].mxu1 }
 0x18d   : > { %v681_v63 = vadd.f32 %v680_v61, %v1829_v37  ;;  %v873_v0 = vadd.f32 %v872_v62, %v1829_v37  ;;  %v682_v1 = vpop.f32.mrb[53].mxu0  ;;  %v874_v2 = vpop.f32.mrb[53].mxu1 }
 0x18e   : > { %v683_v3 = vadd.f32 %v682_v1, %v1831_v38  ;;  %v875_v4 = vadd.f32 %v874_v2, %v1831_v38 }
 0x18f   : > { %959 = vst [vmem:[%s1837_s4 + $0x1a0] sm:$0xff] %v681_v63  ;;  %1023 = vst [vmem:[%s1837_s4 + $0x3a0] sm:$0xff] %v873_v0 }
 0x190   : > { %960 = vst [vmem:[%s1837_s4 + $0x1a8] sm:$0xff] %v683_v3  ;;  %1024 = vst [vmem:[%s1837_s4 + $0x3a8] sm:$0xff] %v875_v4  ;;  %v686_v5 = vpop.f32.mrb[54].mxu0  ;;  %v878_v6 = vpop.f32.mrb[54].mxu1 }
 0x191   : > { %v687_v7 = vadd.f32 %v686_v5, %v1829_v37  ;;  %v879_v8 = vadd.f32 %v878_v6, %v1829_v37  ;;  %v688_v9 = vpop.f32.mrb[55].mxu0  ;;  %v880_v10 = vpop.f32.mrb[55].mxu1 }
 0x192   : > { %v689_v11 = vadd.f32 %v688_v9, %v1831_v38  ;;  %v881_v12 = vadd.f32 %v880_v10, %v1831_v38 }
 0x193   : > { %961 = vst [vmem:[%s1837_s4 + $0x1b0] sm:$0xff] %v687_v7  ;;  %1025 = vst [vmem:[%s1837_s4 + $0x3b0] sm:$0xff] %v879_v8 }
 0x194   : > { %962 = vst [vmem:[%s1837_s4 + $0x1b8] sm:$0xff] %v689_v11  ;;  %1026 = vst [vmem:[%s1837_s4 + $0x3b8] sm:$0xff] %v881_v12  ;;  %v692_v13 = vpop.f32.mrb[56].mxu0  ;;  %v884_v14 = vpop.f32.mrb[56].mxu1 }
 0x195   : > { %v693_v15 = vadd.f32 %v692_v13, %v1829_v37  ;;  %v885_v16 = vadd.f32 %v884_v14, %v1829_v37  ;;  %v694_v17 = vpop.f32.mrb[57].mxu0  ;;  %v886_v18 = vpop.f32.mrb[57].mxu1 }
 0x196   : > { %v695_v19 = vadd.f32 %v694_v17, %v1831_v38  ;;  %v887_v20 = vadd.f32 %v886_v18, %v1831_v38 }
 0x197   : > { %963 = vst [vmem:[%s1837_s4 + $0x1c0] sm:$0xff] %v693_v15  ;;  %1027 = vst [vmem:[%s1837_s4 + $0x3c0] sm:$0xff] %v885_v16 }
 0x198   : > { %964 = vst [vmem:[%s1837_s4 + $0x1c8] sm:$0xff] %v695_v19  ;;  %1028 = vst [vmem:[%s1837_s4 + $0x3c8] sm:$0xff] %v887_v20  ;;  %v698_v21 = vpop.f32.mrb[58].mxu0  ;;  %v890_v22 = vpop.f32.mrb[58].mxu1 }
 0x199   : > { %v699_v23 = vadd.f32 %v698_v21, %v1829_v37  ;;  %v891_v24 = vadd.f32 %v890_v22, %v1829_v37  ;;  %v700_v25 = vpop.f32.mrb[59].mxu0  ;;  %v892_v26 = vpop.f32.mrb[59].mxu1 }
 0x19a   : > { %v701_v27 = vadd.f32 %v700_v25, %v1831_v38  ;;  %v893_v28 = vadd.f32 %v892_v26, %v1831_v38 }
 0x19b   : > { %965 = vst [vmem:[%s1837_s4 + $0x1d0] sm:$0xff] %v699_v23  ;;  %1029 = vst [vmem:[%s1837_s4 + $0x3d0] sm:$0xff] %v891_v24 }
 0x19c   : > { %966 = vst [vmem:[%s1837_s4 + $0x1d8] sm:$0xff] %v701_v27  ;;  %1030 = vst [vmem:[%s1837_s4 + $0x3d8] sm:$0xff] %v893_v28  ;;  %v704_v29 = vpop.f32.mrb[60].mxu0  ;;  %v896_v30 = vpop.f32.mrb[60].mxu1 }
 0x19d   : > { %v705_v31 = vadd.f32 %v704_v29, %v1829_v37  ;;  %v897_v32 = vadd.f32 %v896_v30, %v1829_v37  ;;  %v706_v33 = vpop.f32.mrb[61].mxu0  ;;  %v898_v34 = vpop.f32.mrb[61].mxu1 }
 0x19e   : > { %v707_v35 = vadd.f32 %v706_v33, %v1831_v38  ;;  %v899_v36 = vadd.f32 %v898_v34, %v1831_v38 }
 0x19f   : > { %967 = vst [vmem:[%s1837_s4 + $0x1e0] sm:$0xff] %v705_v31  ;;  %1031 = vst [vmem:[%s1837_s4 + $0x3e0] sm:$0xff] %v897_v32 }
 0x1a0   : > { %968 = vst [vmem:[%s1837_s4 + $0x1e8] sm:$0xff] %v707_v35  ;;  %1032 = vst [vmem:[%s1837_s4 + $0x3e8] sm:$0xff] %v899_v36  ;;  %v710_v39 = vpop.f32.mrb[62].mxu0  ;;  %v902_v40 = vpop.f32.mrb[62].mxu1 }
 0x1a1   : > { %v711_v41 = vadd.f32 %v710_v39, %v1829_v37  ;;  %v903_v42 = vadd.f32 %v902_v40, %v1829_v37  ;;  %v712_v43 = vpop.f32.mrb[63].mxu0  ;;  %v904_v44 = vpop.f32.mrb[63].mxu1 }
 0x1a2   : > { %v713_v45 = vadd.f32 %v712_v43, %v1831_v38  ;;  %v905_v46 = vadd.f32 %v904_v44, %v1831_v38 }
 0x1a3   : > { %969 = vst [vmem:[%s1837_s4 + $0x1f0] sm:$0xff] %v711_v41  ;;  %1033 = vst [vmem:[%s1837_s4 + $0x3f0] sm:$0xff] %v903_v42 }
 0x1a4   : > { %970 = vst [vmem:[%s1837_s4 + $0x1f8] sm:$0xff] %v713_v45  ;;  %1034 = vst [vmem:[%s1837_s4 + $0x3f8] sm:$0xff] %v905_v46 }
 0x1a5   : > { %1351 = shalt.err (!%p1348_p5)
}
 0x1a6   : > { %s1352_s21 = scalar_lea.hbm %s2090_s8, 16384  ;;  %s1356_s27 = scalar_lea.hbm %s2151_s3, 32768 }
 0x1a7   : > { %p1353_p6 = scmp.ne.s32.totalorder %s2090_s8, %s1352_s21  ;;  %p1357_p10 = scmp.lt.u32.totalorder %s2090_s8, %s2151_s3 }
 0x1a8   : > { %p1358_p11 = scmp.lt.u32.totalorder %s1356_s27, %s1352_s21  ;;  %p1360_p13 = scmp.lt.u32.totalorder %s1352_s21, %s2090_s8 }
 0x1a9   : > { %p1354_p7 = pnand %p1353_p6, %p1481_p4 }
 0x1aa   : > { %p1359_p12 = por %p1358_p11, %p1357_p10 }
 0x1ab   : > { %p1355_p9 = pneg %p1354_p7 }
 0x1ac   : > { %p1361_p0 = por %p1360_p13, %p1359_p12 }
 0x1ae   : > { %p1362_p1 = pnand %p1361_p0, %p1355_p9 }
 0x1b0   : > { %1365 = shalt.err (!%p1362_p1)
}
 0x1b1   : > { %s1419_s30 = smov 256   ;;  %s1420_s4 = smov 16  }
 0x1b2   : > { %1281 = dma.vmem_to_hbm [thread:$0]  (%p1481_p4), %s2092_s6, 16384, %s2090_s8, %s2102_s9, %s1419_s30, %s1419_s30, %s1420_s4  }
 0x1b3 PF: > { %p1287_p2 = scmp.ge.s32.totalorder %s1416_s17, 2  ;;  %s1069_s5 = sand.u32 1, %s1396_s12  }
 0x1b4   : > { %s1070_s15 = scalar_lea.sflag [#allocation3], %s1069_s5 }
 0x1b5   : > { %p1284_p3 = pnand %p1287_p2, %p1488_p8 }
 0x1b7   : > { %1391 = dma.done.wait (!%p1284_p3), %s1070_s15, 16384  }
 0x1b8   : > { %1393 = vsyncadd (!%p1284_p3), %s1070_s15, 4294950912  ;;  %s16_s17 = sadd.s32 1, %s1416_s17   ;;  %s2154_s12 = smov %s1400_s13 }
 0x1b9   : > { %p13_p5 = scmp.ge.s32.totalorder %s16_s17, 4   ;;  %s2155_s13 = smov %s1404_s14 }
 0x1ba   : > { %s2156_s14 = smov %s1494_s25  ;;  %s2157_s15 = smov %s1412_s16 }
 0x1bb   : > { %s2158_s16 = smov %s2160_s20  ;;  %15 = sbr.rel (!%p13_p5) target bundleno = 4 (0x4), region = 73 }
 0x1c2   :  { %1075 = vsyncpa [#allocation3], 1 }
 0x1c3   :  { %1077 = vsyncpa [#allocation3 + $0x1], 1 }

</bundles_post_ra>
